<compile_context>
chip_gen: v7x
topology: tpu7x:2x2x1
jax: 0.10.0
libtpu: 0.0.40
codegen_flags: <defaults>
</compile_context>

<pallas_src>
import functools

import jax
import jax.numpy as jnp
from jax.experimental import pallas as pl
from jax.experimental.pallas import tpu as pltpu


# ----------------------------------------------------------------------------
# LSTM cell math (PyTorch gate order i, f, g, o)
# ----------------------------------------------------------------------------
def _lstm_cell(gates, c_prev, H):
    i_g = jax.nn.sigmoid(gates[:, 0 * H:1 * H])
    f_g = jax.nn.sigmoid(gates[:, 1 * H:2 * H])
    g_g = jnp.tanh(gates[:, 2 * H:3 * H])
    o_g = jax.nn.sigmoid(gates[:, 3 * H:4 * H])
    c = f_g * c_prev + i_g * g_g
    h = o_g * jnp.tanh(c)
    return h, c


# ----------------------------------------------------------------------------
# Fused encoder kernel: 2 bidirectional LSTM layers + VAE head, all in VMEM.
#
# x_ref     : (T*B, Din)   time-major flattened input rows (rows [t*B:(t+1)*B] = time t)
# wx{1,2}   : (Din_l, 8H)  [wx_fw | wx_bw]            (input projection, both dirs)
# wh{1,2}   : (2H, 8H)     block-diag([wh_fw, wh_bw]) (recurrent, both dirs in one matmul)
# b{1,2}    : (1, 8H)      [b_ih_fw+b_hh_fw | b_ih_bw+b_hh_bw]
# w_head    : (2H, 2L)     [W_mu^T | W_sigma^T],  b_head : (1, 2L)
# eps       : (B, L)
# out       : (B, 3L)      [mu | sigma | z]  (lane-dense packed output)
# y1_sc     : (T*B, 2H)    VMEM scratch holding the layer-1 sequence output
# ----------------------------------------------------------------------------
def _encoder_kernel(x_ref, wx1_ref, wh1_ref, b1_ref,
                    wx2_ref, wh2_ref, b2_ref,
                    w_head_ref, b_head_ref, eps_ref,
                    out_ref, y1_sc, *, seq_len):
    f32 = jnp.float32
    B, L = eps_ref.shape
    H = wh1_ref.shape[0] // 2
    G = 4 * H
    T = seq_len

    # ---------------- Layer 1 ----------------
    # Hoisted input projection: one big MXU matmul for all timesteps / both dirs.
    xp1 = (jnp.dot(x_ref[...], wx1_ref[...], preferred_element_type=f32)
           + b1_ref[...])                                        # (T*B, 8H)

    h_fw = jnp.zeros((B, H), f32)
    c_fw = jnp.zeros((B, H), f32)
    h_bw = jnp.zeros((B, H), f32)
    c_bw = jnp.zeros((B, H), f32)
    for s in range(T):                    # fully unrolled (T is static)
        hcat = jnp.concatenate([h_fw, h_bw], axis=-1)            # (B, 2H)
        gh = jnp.dot(hcat, wh1_ref[...], preferred_element_type=f32)  # (B, 8H)
        r_f = s * B                       # fw processes time s
        r_b = (T - 1 - s) * B             # bw processes time T-1-s
        gates_fw = gh[:, :G] + xp1[r_f:r_f + B, :G]
        gates_bw = gh[:, G:] + xp1[r_b:r_b + B, G:]
        h_fw, c_fw = _lstm_cell(gates_fw, c_fw, H)
        h_bw, c_bw = _lstm_cell(gates_bw, c_bw, H)
        # layer-1 output stays in VMEM scratch (never written to HBM)
        y1_sc[r_f:r_f + B, 0:H] = h_fw
        y1_sc[r_b:r_b + B, H:2 * H] = h_bw

    # ---------------- Layer 2 ----------------
    xp2 = (jnp.dot(y1_sc[...], wx2_ref[...], preferred_element_type=f32)
           + b2_ref[...])                                        # (T*B, 8H)

    h_fw2 = jnp.zeros((B, H), f32)
    c_fw2 = jnp.zeros((B, H), f32)
    h_bw2 = jnp.zeros((B, H), f32)
    c_bw2 = jnp.zeros((B, H), f32)
    h_bw2_at_last_t = None
    for s in range(T):
        hcat = jnp.concatenate([h_fw2, h_bw2], axis=-1)
        gh = jnp.dot(hcat, wh2_ref[...], preferred_element_type=f32)
        r_f = s * B
        r_b = (T - 1 - s) * B
        gates_fw = gh[:, :G] + xp2[r_f:r_f + B, :G]
        gates_bw = gh[:, G:] + xp2[r_b:r_b + B, G:]
        h_fw2, c_fw2 = _lstm_cell(gates_fw, c_fw2, H)
        h_bw2, c_bw2 = _lstm_cell(gates_bw, c_bw2, H)
        if s == 0:
            # bw hidden at time index T-1 == output[:, -1, H:2H] of the stack
            h_bw2_at_last_t = h_bw2

    # output[:, -1, :] of the bidirectional layer-2 output
    h_T = jnp.concatenate([h_fw2, h_bw2_at_last_t], axis=-1)     # (B, 2H)

    # ---------------- VAE head (fused) ----------------
    head = (jnp.dot(h_T, w_head_ref[...], preferred_element_type=f32)
            + b_head_ref[...])                                   # (B, 2L)
    mu = head[:, :L]
    s_lin = head[:, L:]
    # numerically-stable, mathematically-equal form of log(exp(x) + 1)
    sigma = jnp.maximum(s_lin, 0.0) + jnp.log(jnp.exp(-jnp.abs(s_lin)) + 1.0)
    z = mu + eps_ref[...] * sigma
    out_ref[...] = jnp.concatenate([mu, sigma, z], axis=-1)      # (B, 3L)


# ----------------------------------------------------------------------------
# Wrapper
# ----------------------------------------------------------------------------
def encoder_forward(packed, x_btd, eps):
    """x_btd: (B, T, input_size) batch_first; eps: (B, latent_dim). Returns (mu, sigma, z)."""
    B, T, Din = x_btd.shape
    H, L = packed["H"], packed["L"]
    # Layout plumbing only: time-major flattened rows so the kernel is pure 2-D.
    x_2d = jnp.transpose(x_btd, (1, 0, 2)).reshape(T * B, Din).astype(jnp.float32)
    out = pl.pallas_call(
        functools.partial(_encoder_kernel, seq_len=T),
        out_shape=jax.ShapeDtypeStruct((B, 3 * L), jnp.float32),
        scratch_shapes=[pltpu.VMEM((T * B, 2 * H), jnp.float32)],   # layer-1 sequence
    )(x_2d,
      packed["wx1"], packed["wh1"], packed["b1"],
      packed["wx2"], packed["wh2"], packed["b2"],
      packed["w_head"], packed["b_head"],
      eps.astype(jnp.float32))
    return out[:, :L], out[:, L:2 * L], out[:, 2 * L:]


# ----------------------------------------------------------------------------
# Parameter init (PyTorch-style U(-1/sqrt(fan), 1/sqrt(fan)), PyTorch shapes)
# and packing into the fused-kernel layout.
# ----------------------------------------------------------------------------
def init_raw_params(key, input_size, hidden_size, latent_dim):
    H, L = hidden_size, latent_dim

    def u(k, shape, bound):
        return jax.random.uniform(k, shape, jnp.float32, minval=-bound, maxval=bound)

    k_lstm = 1.0 / float(H) ** 0.5
    raw = {"lstm": []}
    for layer in range(2):
        din = input_size if layer == 0 else 2 * H
        layer_p = {}
        for direction in ("fw", "bw"):
            key, k1, k2, k3, k4 = jax.random.split(key, 5)
            layer_p[direction] = {
                "w_ih": u(k1, (4 * H, din), k_lstm),
                "w_hh": u(k2, (4 * H, H), k_lstm),
                "b_ih": u(k3, (4 * H,), k_lstm),
                "b_hh": u(k4, (4 * H,), k_lstm),
            }
        raw["lstm"].append(layer_p)

    k_fc = 1.0 / float(2 * H) ** 0.5
    key, k1, k2, k3, k4 = jax.random.split(key, 5)
    raw["w_mu"] = u(k1, (L, 2 * H), k_fc)
    raw["b_mu"] = u(k2, (L,), k_fc)
    raw["w_sigma"] = u(k3, (L, 2 * H), k_fc)
    raw["b_sigma"] = u(k4, (L,), k_fc)
    return raw


def pack_params(raw, hidden_size, latent_dim):
    H = hidden_size
    packed = {"H": H, "L": latent_dim}
    for layer in range(2):
        fw, bw = raw["lstm"][layer]["fw"], raw["lstm"][layer]["bw"]
        wx = jnp.concatenate([fw["w_ih"].T, bw["w_ih"].T], axis=1)         # (din, 8H)
        z = jnp.zeros((H, 4 * H), jnp.float32)
        wh = jnp.concatenate([                                            # (2H, 8H) block-diag
            jnp.concatenate([fw["w_hh"].T, z], axis=1),
            jnp.concatenate([z, bw["w_hh"].T], axis=1)], axis=0)
        b = jnp.concatenate([fw["b_ih"] + fw["b_hh"],
                             bw["b_ih"] + bw["b_hh"]])[None, :]            # (1, 8H)
        packed[f"wx{layer + 1}"] = wx
        packed[f"wh{layer + 1}"] = wh
        packed[f"b{layer + 1}"] = b
    packed["w_head"] = jnp.concatenate([raw["w_mu"].T, raw["w_sigma"].T], axis=1)  # (2H, 2L)
    packed["b_head"] = jnp.concatenate([raw["b_mu"], raw["b_sigma"]])[None, :]     # (1, 2L)
    return packed


# ----------------------------------------------------------------------------
# Pure-JAX reference (mirrors the PyTorch module) for correctness checking.
# ----------------------------------------------------------------------------
def _lstm_direction_ref(x_tbd, p):
    T, B, _ = x_tbd.shape
    H = p["w_hh"].shape[1]
    h = jnp.zeros((B, H), jnp.float32)
    c = jnp.zeros((B, H), jnp.float32)
    outs = []
    for t in range(T):
        gates = x_tbd[t] @ p["w_ih"].T + p["b_ih"] + h @ p["w_hh"].T + p["b_hh"]
        i = jax.nn.sigmoid(gates[:, 0 * H:1 * H])
        f = jax.nn.sigmoid(gates[:, 1 * H:2 * H])
        g = jnp.tanh(gates[:, 2 * H:3 * H])
        o = jax.nn.sigmoid(gates[:, 3 * H:4 * H])
        c = f * c + i * g
        h = o * jnp.tanh(c)
        outs.append(h)
    return jnp.stack(outs, axis=0)


def encoder_reference(raw, x_btd, eps):
    x = jnp.transpose(x_btd, (1, 0, 2)).astype(jnp.float32)
    layer_in = x
    for layer in range(2):
        fw = _lstm_direction_ref(layer_in, raw["lstm"][layer]["fw"])
        bw = _lstm_direction_ref(layer_in[::-1], raw["lstm"][layer]["bw"])[::-1]
        layer_in = jnp.concatenate([fw, bw], axis=-1)
    h_T = layer_in[-1]
    mu = h_T @ raw["w_mu"].T + raw["b_mu"]
    s_lin = h_T @ raw["w_sigma"].T + raw["b_sigma"]
    sigma = jnp.log(jnp.exp(s_lin) + 1.0)
    z = mu + eps * sigma
    return mu, sigma, z


if __name__ == "__main__":
    B, T = 2, 8
    INPUT_SIZE, HIDDEN_SIZE, LATENT_DIM = 16, 32, 16

    key = jax.random.PRNGKey(0)
    key, kp, kx, ke = jax.random.split(key, 4)
    raw = init_raw_params(kp, INPUT_SIZE, HIDDEN_SIZE, LATENT_DIM)
    packed = pack_params(raw, HIDDEN_SIZE, LATENT_DIM)
    x = jax.random.normal(kx, (B, T, INPUT_SIZE), jnp.float32)
    eps = jax.random.normal(ke, (B, LATENT_DIM), jnp.float32)   # torch.randn_like(sigma)

    mu, sigma, z = encoder_forward(packed, x, eps)
    jax.block_until_ready((mu, sigma, z))

    mu_r, sigma_r, z_r = encoder_reference(raw, x, eps)

    assert mu.shape == (B, LATENT_DIM)
    assert sigma.shape == (B, LATENT_DIM)
    assert z.shape == (B, LATENT_DIM)
    assert bool(jnp.all(sigma > 0))
    assert bool(jnp.allclose(mu, mu_r, atol=2e-3, rtol=2e-3))
    assert bool(jnp.allclose(sigma, sigma_r, atol=2e-3, rtol=2e-3))
    assert bool(jnp.allclose(z, z_r, atol=2e-3, rtol=2e-3))
    print("KERNEL_OK")
</pallas_src>

<mosaic_0001>
module attributes {stable_mosaic.version = 11 : i64} {
  func.func @_encoder_kernel(%arg0: memref<16x16xf32, #tpu.memory_space<vmem>>, %arg1: memref<16x256xf32, #tpu.memory_space<vmem>>, %arg2: memref<64x256xf32, #tpu.memory_space<vmem>>, %arg3: memref<1x256xf32, #tpu.memory_space<vmem>>, %arg4: memref<64x256xf32, #tpu.memory_space<vmem>>, %arg5: memref<64x256xf32, #tpu.memory_space<vmem>>, %arg6: memref<1x256xf32, #tpu.memory_space<vmem>>, %arg7: memref<64x32xf32, #tpu.memory_space<vmem>>, %arg8: memref<1x32xf32, #tpu.memory_space<vmem>>, %arg9: memref<2x16xf32, #tpu.memory_space<vmem>>, %arg10: memref<2x48xf32, #tpu.memory_space<vmem>>, %arg11: memref<16x64xf32, #tpu.memory_space<vmem>>) attributes {dimension_semantics = [], scalar_prefetch = 0 : i64, scratch_operands = 1 : i64, tpu.core_type = #tpu.core_type<tc>} {
    %c0 = arith.constant 0 : index
    %c0_0 = arith.constant 0 : index
    %0 = vector.load %arg0[%c0, %c0_0] : memref<16x16xf32, #tpu.memory_space<vmem>>, vector<16x16xf32>
    %c0_1 = arith.constant 0 : index
    %c0_2 = arith.constant 0 : index
    %1 = vector.load %arg1[%c0_1, %c0_2] : memref<16x256xf32, #tpu.memory_space<vmem>>, vector<16x256xf32>
    %cst = arith.constant dense<0.000000e+00> : vector<16x256xf32>
    %2 = tpu.matmul %0, %1, %cst {dimension_numbers = #tpu.dot_dimension_numbers<[1], [0], [0], [1], [0, 0, 1, 1], [], []>} : vector<16x16xf32>, vector<16x256xf32>, vector<16x256xf32> -> vector<16x256xf32>
    %c0_3 = arith.constant 0 : index
    %c0_4 = arith.constant 0 : index
    %3 = vector.load %arg3[%c0_3, %c0_4] : memref<1x256xf32, #tpu.memory_space<vmem>>, vector<1x256xf32>
    %4 = vector.broadcast %3 : vector<1x256xf32> to vector<16x256xf32>
    %5 = arith.addf %2, %4 : vector<16x256xf32>
    %cst_5 = arith.constant 0.000000e+00 : f32
    %6 = vector.broadcast %cst_5 : f32 to vector<2x32xf32>
    %cst_6 = arith.constant 0.000000e+00 : f32
    %7 = vector.broadcast %cst_6 : f32 to vector<2x32xf32>
    %cst_7 = arith.constant 0.000000e+00 : f32
    %8 = vector.broadcast %cst_7 : f32 to vector<2x32xf32>
    %cst_8 = arith.constant 0.000000e+00 : f32
    %9 = vector.broadcast %cst_8 : f32 to vector<2x32xf32>
    %10 = tpu.concatenate %6, %8 in 1 : vector<2x32xf32>, vector<2x32xf32> -> vector<2x64xf32>
    %c0_9 = arith.constant 0 : index
    %c0_10 = arith.constant 0 : index
    %11 = vector.load %arg2[%c0_9, %c0_10] : memref<64x256xf32, #tpu.memory_space<vmem>>, vector<64x256xf32>
    %cst_11 = arith.constant dense<0.000000e+00> : vector<2x256xf32>
    %12 = tpu.matmul %10, %11, %cst_11 {dimension_numbers = #tpu.dot_dimension_numbers<[1], [0], [0], [1], [0, 0, 1, 1], [], []>} : vector<2x64xf32>, vector<64x256xf32>, vector<2x256xf32> -> vector<2x256xf32>
    %13 = vector.extract_strided_slice %12 {offsets = [0, 0], sizes = [2, 128], strides = [1, 1]} : vector<2x256xf32> to vector<2x128xf32>
    %14 = vector.extract_strided_slice %5 {offsets = [0, 0], sizes = [2, 128], strides = [1, 1]} : vector<16x256xf32> to vector<2x128xf32>
    %15 = arith.addf %13, %14 : vector<2x128xf32>
    %16 = vector.extract_strided_slice %12 {offsets = [0, 128], sizes = [2, 128], strides = [1, 1]} : vector<2x256xf32> to vector<2x128xf32>
    %17 = vector.extract_strided_slice %5 {offsets = [14, 128], sizes = [2, 128], strides = [1, 1]} : vector<16x256xf32> to vector<2x128xf32>
    %18 = arith.addf %16, %17 : vector<2x128xf32>
    %19 = vector.extract_strided_slice %15 {offsets = [0, 0], sizes = [2, 32], strides = [1, 1]} : vector<2x128xf32> to vector<2x32xf32>
    %20 = arith.negf %19 : vector<2x32xf32>
    %21 = math.exp %20 : vector<2x32xf32>
    %cst_12 = arith.constant 1.000000e+00 : f32
    %22 = vector.broadcast %cst_12 : f32 to vector<2x32xf32>
    %23 = arith.addf %22, %21 : vector<2x32xf32>
    %24 = arith.divf %22, %23 : vector<2x32xf32>
    %25 = vector.extract_strided_slice %15 {offsets = [0, 32], sizes = [2, 32], strides = [1, 1]} : vector<2x128xf32> to vector<2x32xf32>
    %26 = arith.negf %25 : vector<2x32xf32>
    %27 = math.exp %26 : vector<2x32xf32>
    %cst_13 = arith.constant 1.000000e+00 : f32
    %28 = vector.broadcast %cst_13 : f32 to vector<2x32xf32>
    %29 = arith.addf %28, %27 : vector<2x32xf32>
    %30 = arith.divf %28, %29 : vector<2x32xf32>
    %31 = vector.extract_strided_slice %15 {offsets = [0, 64], sizes = [2, 32], strides = [1, 1]} : vector<2x128xf32> to vector<2x32xf32>
    %32 = math.tanh %31 : vector<2x32xf32>
    %33 = vector.extract_strided_slice %15 {offsets = [0, 96], sizes = [2, 32], strides = [1, 1]} : vector<2x128xf32> to vector<2x32xf32>
    %34 = arith.negf %33 : vector<2x32xf32>
    %35 = math.exp %34 : vector<2x32xf32>
    %cst_14 = arith.constant 1.000000e+00 : f32
    %36 = vector.broadcast %cst_14 : f32 to vector<2x32xf32>
    %37 = arith.addf %36, %35 : vector<2x32xf32>
    %38 = arith.divf %36, %37 : vector<2x32xf32>
    %39 = arith.mulf %30, %7 : vector<2x32xf32>
    %40 = arith.mulf %24, %32 : vector<2x32xf32>
    %41 = arith.addf %39, %40 : vector<2x32xf32>
    %42 = math.tanh %41 : vector<2x32xf32>
    %43 = arith.mulf %38, %42 : vector<2x32xf32>
    %44 = vector.extract_strided_slice %18 {offsets = [0, 0], sizes = [2, 32], strides = [1, 1]} : vector<2x128xf32> to vector<2x32xf32>
    %45 = arith.negf %44 : vector<2x32xf32>
    %46 = math.exp %45 : vector<2x32xf32>
    %cst_15 = arith.constant 1.000000e+00 : f32
    %47 = vector.broadcast %cst_15 : f32 to vector<2x32xf32>
    %48 = arith.addf %47, %46 : vector<2x32xf32>
    %49 = arith.divf %47, %48 : vector<2x32xf32>
    %50 = vector.extract_strided_slice %18 {offsets = [0, 32], sizes = [2, 32], strides = [1, 1]} : vector<2x128xf32> to vector<2x32xf32>
    %51 = arith.negf %50 : vector<2x32xf32>
    %52 = math.exp %51 : vector<2x32xf32>
    %cst_16 = arith.constant 1.000000e+00 : f32
    %53 = vector.broadcast %cst_16 : f32 to vector<2x32xf32>
    %54 = arith.addf %53, %52 : vector<2x32xf32>
    %55 = arith.divf %53, %54 : vector<2x32xf32>
    %56 = vector.extract_strided_slice %18 {offsets = [0, 64], sizes = [2, 32], strides = [1, 1]} : vector<2x128xf32> to vector<2x32xf32>
    %57 = math.tanh %56 : vector<2x32xf32>
    %58 = vector.extract_strided_slice %18 {offsets = [0, 96], sizes = [2, 32], strides = [1, 1]} : vector<2x128xf32> to vector<2x32xf32>
    %59 = arith.negf %58 : vector<2x32xf32>
    %60 = math.exp %59 : vector<2x32xf32>
    %cst_17 = arith.constant 1.000000e+00 : f32
    %61 = vector.broadcast %cst_17 : f32 to vector<2x32xf32>
    %62 = arith.addf %61, %60 : vector<2x32xf32>
    %63 = arith.divf %61, %62 : vector<2x32xf32>
    %64 = arith.mulf %55, %9 : vector<2x32xf32>
    %65 = arith.mulf %49, %57 : vector<2x32xf32>
    %66 = arith.addf %64, %65 : vector<2x32xf32>
    %67 = math.tanh %66 : vector<2x32xf32>
    %68 = arith.mulf %63, %67 : vector<2x32xf32>
    %c0_18 = arith.constant 0 : index
    %c0_19 = arith.constant 0 : index
    %69 = vector.load %arg11[%c0_18, %c0_19] : memref<16x64xf32, #tpu.memory_space<vmem>>, vector<2x32xf32>
    tpu.vector_store %arg11[%c0_18, %c0_19], %43 {strides = array<i32>} : memref<16x64xf32, #tpu.memory_space<vmem>>, vector<2x32xf32>,
    %c14 = arith.constant 14 : index
    %c32 = arith.constant 32 : index
    %70 = vector.load %arg11[%c14, %c32] : memref<16x64xf32, #tpu.memory_space<vmem>>, vector<2x32xf32>
    tpu.vector_store %arg11[%c14, %c32], %68 {strides = array<i32>} : memref<16x64xf32, #tpu.memory_space<vmem>>, vector<2x32xf32>,
    %71 = tpu.concatenate %43, %68 in 1 : vector<2x32xf32>, vector<2x32xf32> -> vector<2x64xf32>
    %c0_20 = arith.constant 0 : index
    %c0_21 = arith.constant 0 : index
    %72 = vector.load %arg2[%c0_20, %c0_21] : memref<64x256xf32, #tpu.memory_space<vmem>>, vector<64x256xf32>
    %cst_22 = arith.constant dense<0.000000e+00> : vector<2x256xf32>
    %73 = tpu.matmul %71, %72, %cst_22 {dimension_numbers = #tpu.dot_dimension_numbers<[1], [0], [0], [1], [0, 0, 1, 1], [], []>} : vector<2x64xf32>, vector<64x256xf32>, vector<2x256xf32> -> vector<2x256xf32>
    %74 = vector.extract_strided_slice %73 {offsets = [0, 0], sizes = [2, 128], strides = [1, 1]} : vector<2x256xf32> to vector<2x128xf32>
    %75 = vector.extract_strided_slice %5 {offsets = [2, 0], sizes = [2, 128], strides = [1, 1]} : vector<16x256xf32> to vector<2x128xf32>
    %76 = arith.addf %74, %75 : vector<2x128xf32>
    %77 = vector.extract_strided_slice %73 {offsets = [0, 128], sizes = [2, 128], strides = [1, 1]} : vector<2x256xf32> to vector<2x128xf32>
    %78 = vector.extract_strided_slice %5 {offsets = [12, 128], sizes = [2, 128], strides = [1, 1]} : vector<16x256xf32> to vector<2x128xf32>
    %79 = arith.addf %77, %78 : vector<2x128xf32>
    %80 = vector.extract_strided_slice %76 {offsets = [0, 0], sizes = [2, 32], strides = [1, 1]} : vector<2x128xf32> to vector<2x32xf32>
    %81 = arith.negf %80 : vector<2x32xf32>
    %82 = math.exp %81 : vector<2x32xf32>
    %cst_23 = arith.constant 1.000000e+00 : f32
    %83 = vector.broadcast %cst_23 : f32 to vector<2x32xf32>
    %84 = arith.addf %83, %82 : vector<2x32xf32>
    %85 = arith.divf %83, %84 : vector<2x32xf32>
    %86 = vector.extract_strided_slice %76 {offsets = [0, 32], sizes = [2, 32], strides = [1, 1]} : vector<2x128xf32> to vector<2x32xf32>
    %87 = arith.negf %86 : vector<2x32xf32>
    %88 = math.exp %87 : vector<2x32xf32>
    %cst_24 = arith.constant 1.000000e+00 : f32
    %89 = vector.broadcast %cst_24 : f32 to vector<2x32xf32>
    %90 = arith.addf %89, %88 : vector<2x32xf32>
    %91 = arith.divf %89, %90 : vector<2x32xf32>
    %92 = vector.extract_strided_slice %76 {offsets = [0, 64], sizes = [2, 32], strides = [1, 1]} : vector<2x128xf32> to vector<2x32xf32>
    %93 = math.tanh %92 : vector<2x32xf32>
    %94 = vector.extract_strided_slice %76 {offsets = [0, 96], sizes = [2, 32], strides = [1, 1]} : vector<2x128xf32> to vector<2x32xf32>
    %95 = arith.negf %94 : vector<2x32xf32>
    %96 = math.exp %95 : vector<2x32xf32>
    %cst_25 = arith.constant 1.000000e+00 : f32
    %97 = vector.broadcast %cst_25 : f32 to vector<2x32xf32>
    %98 = arith.addf %97, %96 : vector<2x32xf32>
    %99 = arith.divf %97, %98 : vector<2x32xf32>
    %100 = arith.mulf %91, %41 : vector<2x32xf32>
    %101 = arith.mulf %85, %93 : vector<2x32xf32>
    %102 = arith.addf %100, %101 : vector<2x32xf32>
    %103 = math.tanh %102 : vector<2x32xf32>
    %104 = arith.mulf %99, %103 : vector<2x32xf32>
    %105 = vector.extract_strided_slice %79 {offsets = [0, 0], sizes = [2, 32], strides = [1, 1]} : vector<2x128xf32> to vector<2x32xf32>
    %106 = arith.negf %105 : vector<2x32xf32>
    %107 = math.exp %106 : vector<2x32xf32>
    %cst_26 = arith.constant 1.000000e+00 : f32
    %108 = vector.broadcast %cst_26 : f32 to vector<2x32xf32>
    %109 = arith.addf %108, %107 : vector<2x32xf32>
    %110 = arith.divf %108, %109 : vector<2x32xf32>
    %111 = vector.extract_strided_slice %79 {offsets = [0, 32], sizes = [2, 32], strides = [1, 1]} : vector<2x128xf32> to vector<2x32xf32>
    %112 = arith.negf %111 : vector<2x32xf32>
    %113 = math.exp %112 : vector<2x32xf32>
    %cst_27 = arith.constant 1.000000e+00 : f32
    %114 = vector.broadcast %cst_27 : f32 to vector<2x32xf32>
    %115 = arith.addf %114, %113 : vector<2x32xf32>
    %116 = arith.divf %114, %115 : vector<2x32xf32>
    %117 = vector.extract_strided_slice %79 {offsets = [0, 64], sizes = [2, 32], strides = [1, 1]} : vector<2x128xf32> to vector<2x32xf32>
    %118 = math.tanh %117 : vector<2x32xf32>
    %119 = vector.extract_strided_slice %79 {offsets = [0, 96], sizes = [2, 32], strides = [1, 1]} : vector<2x128xf32> to vector<2x32xf32>
    %120 = arith.negf %119 : vector<2x32xf32>
    %121 = math.exp %120 : vector<2x32xf32>
    %cst_28 = arith.constant 1.000000e+00 : f32
    %122 = vector.broadcast %cst_28 : f32 to vector<2x32xf32>
    %123 = arith.addf %122, %121 : vector<2x32xf32>
    %124 = arith.divf %122, %123 : vector<2x32xf32>
    %125 = arith.mulf %116, %66 : vector<2x32xf32>
    %126 = arith.mulf %110, %118 : vector<2x32xf32>
    %127 = arith.addf %125, %126 : vector<2x32xf32>
    %128 = math.tanh %127 : vector<2x32xf32>
    %129 = arith.mulf %124, %128 : vector<2x32xf32>
    %c2 = arith.constant 2 : index
    %c0_29 = arith.constant 0 : index
    %130 = vector.load %arg11[%c2, %c0_29] : memref<16x64xf32, #tpu.memory_space<vmem>>, vector<2x32xf32>
    tpu.vector_store %arg11[%c2, %c0_29], %104 {strides = array<i32>} : memref<16x64xf32, #tpu.memory_space<vmem>>, vector<2x32xf32>,
    %c12 = arith.constant 12 : index
    %c32_30 = arith.constant 32 : index
    %131 = vector.load %arg11[%c12, %c32_30] : memref<16x64xf32, #tpu.memory_space<vmem>>, vector<2x32xf32>
    tpu.vector_store %arg11[%c12, %c32_30], %129 {strides = array<i32>} : memref<16x64xf32, #tpu.memory_space<vmem>>, vector<2x32xf32>,
    %132 = tpu.concatenate %104, %129 in 1 : vector<2x32xf32>, vector<2x32xf32> -> vector<2x64xf32>
    %c0_31 = arith.constant 0 : index
    %c0_32 = arith.constant 0 : index
    %133 = vector.load %arg2[%c0_31, %c0_32] : memref<64x256xf32, #tpu.memory_space<vmem>>, vector<64x256xf32>
    %cst_33 = arith.constant dense<0.000000e+00> : vector<2x256xf32>
    %134 = tpu.matmul %132, %133, %cst_33 {dimension_numbers = #tpu.dot_dimension_numbers<[1], [0], [0], [1], [0, 0, 1, 1], [], []>} : vector<2x64xf32>, vector<64x256xf32>, vector<2x256xf32> -> vector<2x256xf32>
    %135 = vector.extract_strided_slice %134 {offsets = [0, 0], sizes = [2, 128], strides = [1, 1]} : vector<2x256xf32> to vector<2x128xf32>
    %136 = vector.extract_strided_slice %5 {offsets = [4, 0], sizes = [2, 128], strides = [1, 1]} : vector<16x256xf32> to vector<2x128xf32>
    %137 = arith.addf %135, %136 : vector<2x128xf32>
    %138 = vector.extract_strided_slice %134 {offsets = [0, 128], sizes = [2, 128], strides = [1, 1]} : vector<2x256xf32> to vector<2x128xf32>
    %139 = vector.extract_strided_slice %5 {offsets = [10, 128], sizes = [2, 128], strides = [1, 1]} : vector<16x256xf32> to vector<2x128xf32>
    %140 = arith.addf %138, %139 : vector<2x128xf32>
    %141 = vector.extract_strided_slice %137 {offsets = [0, 0], sizes = [2, 32], strides = [1, 1]} : vector<2x128xf32> to vector<2x32xf32>
    %142 = arith.negf %141 : vector<2x32xf32>
    %143 = math.exp %142 : vector<2x32xf32>
    %cst_34 = arith.constant 1.000000e+00 : f32
    %144 = vector.broadcast %cst_34 : f32 to vector<2x32xf32>
    %145 = arith.addf %144, %143 : vector<2x32xf32>
    %146 = arith.divf %144, %145 : vector<2x32xf32>
    %147 = vector.extract_strided_slice %137 {offsets = [0, 32], sizes = [2, 32], strides = [1, 1]} : vector<2x128xf32> to vector<2x32xf32>
    %148 = arith.negf %147 : vector<2x32xf32>
    %149 = math.exp %148 : vector<2x32xf32>
    %cst_35 = arith.constant 1.000000e+00 : f32
    %150 = vector.broadcast %cst_35 : f32 to vector<2x32xf32>
    %151 = arith.addf %150, %149 : vector<2x32xf32>
    %152 = arith.divf %150, %151 : vector<2x32xf32>
    %153 = vector.extract_strided_slice %137 {offsets = [0, 64], sizes = [2, 32], strides = [1, 1]} : vector<2x128xf32> to vector<2x32xf32>
    %154 = math.tanh %153 : vector<2x32xf32>
    %155 = vector.extract_strided_slice %137 {offsets = [0, 96], sizes = [2, 32], strides = [1, 1]} : vector<2x128xf32> to vector<2x32xf32>
    %156 = arith.negf %155 : vector<2x32xf32>
    %157 = math.exp %156 : vector<2x32xf32>
    %cst_36 = arith.constant 1.000000e+00 : f32
    %158 = vector.broadcast %cst_36 : f32 to vector<2x32xf32>
    %159 = arith.addf %158, %157 : vector<2x32xf32>
    %160 = arith.divf %158, %159 : vector<2x32xf32>
    %161 = arith.mulf %152, %102 : vector<2x32xf32>
    %162 = arith.mulf %146, %154 : vector<2x32xf32>
    %163 = arith.addf %161, %162 : vector<2x32xf32>
    %164 = math.tanh %163 : vector<2x32xf32>
    %165 = arith.mulf %160, %164 : vector<2x32xf32>
    %166 = vector.extract_strided_slice %140 {offsets = [0, 0], sizes = [2, 32], strides = [1, 1]} : vector<2x128xf32> to vector<2x32xf32>
    %167 = arith.negf %166 : vector<2x32xf32>
    %168 = math.exp %167 : vector<2x32xf32>
    %cst_37 = arith.constant 1.000000e+00 : f32
    %169 = vector.broadcast %cst_37 : f32 to vector<2x32xf32>
    %170 = arith.addf %169, %168 : vector<2x32xf32>
    %171 = arith.divf %169, %170 : vector<2x32xf32>
    %172 = vector.extract_strided_slice %140 {offsets = [0, 32], sizes = [2, 32], strides = [1, 1]} : vector<2x128xf32> to vector<2x32xf32>
    %173 = arith.negf %172 : vector<2x32xf32>
    %174 = math.exp %173 : vector<2x32xf32>
    %cst_38 = arith.constant 1.000000e+00 : f32
    %175 = vector.broadcast %cst_38 : f32 to vector<2x32xf32>
    %176 = arith.addf %175, %174 : vector<2x32xf32>
    %177 = arith.divf %175, %176 : vector<2x32xf32>
    %178 = vector.extract_strided_slice %140 {offsets = [0, 64], sizes = [2, 32], strides = [1, 1]} : vector<2x128xf32> to vector<2x32xf32>
    %179 = math.tanh %178 : vector<2x32xf32>
    %180 = vector.extract_strided_slice %140 {offsets = [0, 96], sizes = [2, 32], strides = [1, 1]} : vector<2x128xf32> to vector<2x32xf32>
    %181 = arith.negf %180 : vector<2x32xf32>
    %182 = math.exp %181 : vector<2x32xf32>
    %cst_39 = arith.constant 1.000000e+00 : f32
    %183 = vector.broadcast %cst_39 : f32 to vector<2x32xf32>
    %184 = arith.addf %183, %182 : vector<2x32xf32>
    %185 = arith.divf %183, %184 : vector<2x32xf32>
    %186 = arith.mulf %177, %127 : vector<2x32xf32>
    %187 = arith.mulf %171, %179 : vector<2x32xf32>
    %188 = arith.addf %186, %187 : vector<2x32xf32>
    %189 = math.tanh %188 : vector<2x32xf32>
    %190 = arith.mulf %185, %189 : vector<2x32xf32>
    %c4 = arith.constant 4 : index
    %c0_40 = arith.constant 0 : index
    %191 = vector.load %arg11[%c4, %c0_40] : memref<16x64xf32, #tpu.memory_space<vmem>>, vector<2x32xf32>
    tpu.vector_store %arg11[%c4, %c0_40], %165 {strides = array<i32>} : memref<16x64xf32, #tpu.memory_space<vmem>>, vector<2x32xf32>,
    %c10 = arith.constant 10 : index
    %c32_41 = arith.constant 32 : index
    %192 = vector.load %arg11[%c10, %c32_41] : memref<16x64xf32, #tpu.memory_space<vmem>>, vector<2x32xf32>
    tpu.vector_store %arg11[%c10, %c32_41], %190 {strides = array<i32>} : memref<16x64xf32, #tpu.memory_space<vmem>>, vector<2x32xf32>,
    %193 = tpu.concatenate %165, %190 in 1 : vector<2x32xf32>, vector<2x32xf32> -> vector<2x64xf32>
    %c0_42 = arith.constant 0 : index
    %c0_43 = arith.constant 0 : index
    %194 = vector.load %arg2[%c0_42, %c0_43] : memref<64x256xf32, #tpu.memory_space<vmem>>, vector<64x256xf32>
    %cst_44 = arith.constant dense<0.000000e+00> : vector<2x256xf32>
    %195 = tpu.matmul %193, %194, %cst_44 {dimension_numbers = #tpu.dot_dimension_numbers<[1], [0], [0], [1], [0, 0, 1, 1], [], []>} : vector<2x64xf32>, vector<64x256xf32>, vector<2x256xf32> -> vector<2x256xf32>
    %196 = vector.extract_strided_slice %195 {offsets = [0, 0], sizes = [2, 128], strides = [1, 1]} : vector<2x256xf32> to vector<2x128xf32>
    %197 = vector.extract_strided_slice %5 {offsets = [6, 0], sizes = [2, 128], strides = [1, 1]} : vector<16x256xf32> to vector<2x128xf32>
    %198 = arith.addf %196, %197 : vector<2x128xf32>
    %199 = vector.extract_strided_slice %195 {offsets = [0, 128], sizes = [2, 128], strides = [1, 1]} : vector<2x256xf32> to vector<2x128xf32>
    %200 = vector.extract_strided_slice %5 {offsets = [8, 128], sizes = [2, 128], strides = [1, 1]} : vector<16x256xf32> to vector<2x128xf32>
    %201 = arith.addf %199, %200 : vector<2x128xf32>
    %202 = vector.extract_strided_slice %198 {offsets = [0, 0], sizes = [2, 32], strides = [1, 1]} : vector<2x128xf32> to vector<2x32xf32>
    %203 = arith.negf %202 : vector<2x32xf32>
    %204 = math.exp %203 : vector<2x32xf32>
    %cst_45 = arith.constant 1.000000e+00 : f32
    %205 = vector.broadcast %cst_45 : f32 to vector<2x32xf32>
    %206 = arith.addf %205, %204 : vector<2x32xf32>
    %207 = arith.divf %205, %206 : vector<2x32xf32>
    %208 = vector.extract_strided_slice %198 {offsets = [0, 32], sizes = [2, 32], strides = [1, 1]} : vector<2x128xf32> to vector<2x32xf32>
    %209 = arith.negf %208 : vector<2x32xf32>
    %210 = math.exp %209 : vector<2x32xf32>
    %cst_46 = arith.constant 1.000000e+00 : f32
    %211 = vector.broadcast %cst_46 : f32 to vector<2x32xf32>
    %212 = arith.addf %211, %210 : vector<2x32xf32>
    %213 = arith.divf %211, %212 : vector<2x32xf32>
    %214 = vector.extract_strided_slice %198 {offsets = [0, 64], sizes = [2, 32], strides = [1, 1]} : vector<2x128xf32> to vector<2x32xf32>
    %215 = math.tanh %214 : vector<2x32xf32>
    %216 = vector.extract_strided_slice %198 {offsets = [0, 96], sizes = [2, 32], strides = [1, 1]} : vector<2x128xf32> to vector<2x32xf32>
    %217 = arith.negf %216 : vector<2x32xf32>
    %218 = math.exp %217 : vector<2x32xf32>
    %cst_47 = arith.constant 1.000000e+00 : f32
    %219 = vector.broadcast %cst_47 : f32 to vector<2x32xf32>
    %220 = arith.addf %219, %218 : vector<2x32xf32>
    %221 = arith.divf %219, %220 : vector<2x32xf32>
    %222 = arith.mulf %213, %163 : vector<2x32xf32>
    %223 = arith.mulf %207, %215 : vector<2x32xf32>
    %224 = arith.addf %222, %223 : vector<2x32xf32>
    %225 = math.tanh %224 : vector<2x32xf32>
    %226 = arith.mulf %221, %225 : vector<2x32xf32>
    %227 = vector.extract_strided_slice %201 {offsets = [0, 0], sizes = [2, 32], strides = [1, 1]} : vector<2x128xf32> to vector<2x32xf32>
    %228 = arith.negf %227 : vector<2x32xf32>
    %229 = math.exp %228 : vector<2x32xf32>
    %cst_48 = arith.constant 1.000000e+00 : f32
    %230 = vector.broadcast %cst_48 : f32 to vector<2x32xf32>
    %231 = arith.addf %230, %229 : vector<2x32xf32>
    %232 = arith.divf %230, %231 : vector<2x32xf32>
    %233 = vector.extract_strided_slice %201 {offsets = [0, 32], sizes = [2, 32], strides = [1, 1]} : vector<2x128xf32> to vector<2x32xf32>
    %234 = arith.negf %233 : vector<2x32xf32>
    %235 = math.exp %234 : vector<2x32xf32>
    %cst_49 = arith.constant 1.000000e+00 : f32
    %236 = vector.broadcast %cst_49 : f32 to vector<2x32xf32>
    %237 = arith.addf %236, %235 : vector<2x32xf32>
    %238 = arith.divf %236, %237 : vector<2x32xf32>
    %239 = vector.extract_strided_slice %201 {offsets = [0, 64], sizes = [2, 32], strides = [1, 1]} : vector<2x128xf32> to vector<2x32xf32>
    %240 = math.tanh %239 : vector<2x32xf32>
    %241 = vector.extract_strided_slice %201 {offsets = [0, 96], sizes = [2, 32], strides = [1, 1]} : vector<2x128xf32> to vector<2x32xf32>
    %242 = arith.negf %241 : vector<2x32xf32>
    %243 = math.exp %242 : vector<2x32xf32>
    %cst_50 = arith.constant 1.000000e+00 : f32
    %244 = vector.broadcast %cst_50 : f32 to vector<2x32xf32>
    %245 = arith.addf %244, %243 : vector<2x32xf32>
    %246 = arith.divf %244, %245 : vector<2x32xf32>
    %247 = arith.mulf %238, %188 : vector<2x32xf32>
    %248 = arith.mulf %232, %240 : vector<2x32xf32>
    %249 = arith.addf %247, %248 : vector<2x32xf32>
    %250 = math.tanh %249 : vector<2x32xf32>
    %251 = arith.mulf %246, %250 : vector<2x32xf32>
    %c6 = arith.constant 6 : index
    %c0_51 = arith.constant 0 : index
    %252 = vector.load %arg11[%c6, %c0_51] : memref<16x64xf32, #tpu.memory_space<vmem>>, vector<2x32xf32>
    tpu.vector_store %arg11[%c6, %c0_51], %226 {strides = array<i32>} : memref<16x64xf32, #tpu.memory_space<vmem>>, vector<2x32xf32>,
    %c8 = arith.constant 8 : index
    %c32_52 = arith.constant 32 : index
    %253 = vector.load %arg11[%c8, %c32_52] : memref<16x64xf32, #tpu.memory_space<vmem>>, vector<2x32xf32>
    tpu.vector_store %arg11[%c8, %c32_52], %251 {strides = array<i32>} : memref<16x64xf32, #tpu.memory_space<vmem>>, vector<2x32xf32>,
    %254 = tpu.concatenate %226, %251 in 1 : vector<2x32xf32>, vector<2x32xf32> -> vector<2x64xf32>
    %c0_53 = arith.constant 0 : index
    %c0_54 = arith.constant 0 : index
    %255 = vector.load %arg2[%c0_53, %c0_54] : memref<64x256xf32, #tpu.memory_space<vmem>>, vector<64x256xf32>
    %cst_55 = arith.constant dense<0.000000e+00> : vector<2x256xf32>
    %256 = tpu.matmul %254, %255, %cst_55 {dimension_numbers = #tpu.dot_dimension_numbers<[1], [0], [0], [1], [0, 0, 1, 1], [], []>} : vector<2x64xf32>, vector<64x256xf32>, vector<2x256xf32> -> vector<2x256xf32>
    %257 = vector.extract_strided_slice %256 {offsets = [0, 0], sizes = [2, 128], strides = [1, 1]} : vector<2x256xf32> to vector<2x128xf32>
    %258 = vector.extract_strided_slice %5 {offsets = [8, 0], sizes = [2, 128], strides = [1, 1]} : vector<16x256xf32> to vector<2x128xf32>
    %259 = arith.addf %257, %258 : vector<2x128xf32>
    %260 = vector.extract_strided_slice %256 {offsets = [0, 128], sizes = [2, 128], strides = [1, 1]} : vector<2x256xf32> to vector<2x128xf32>
    %261 = vector.extract_strided_slice %5 {offsets = [6, 128], sizes = [2, 128], strides = [1, 1]} : vector<16x256xf32> to vector<2x128xf32>
    %262 = arith.addf %260, %261 : vector<2x128xf32>
    %263 = vector.extract_strided_slice %259 {offsets = [0, 0], sizes = [2, 32], strides = [1, 1]} : vector<2x128xf32> to vector<2x32xf32>
    %264 = arith.negf %263 : vector<2x32xf32>
    %265 = math.exp %264 : vector<2x32xf32>
    %cst_56 = arith.constant 1.000000e+00 : f32
    %266 = vector.broadcast %cst_56 : f32 to vector<2x32xf32>
    %267 = arith.addf %266, %265 : vector<2x32xf32>
    %268 = arith.divf %266, %267 : vector<2x32xf32>
    %269 = vector.extract_strided_slice %259 {offsets = [0, 32], sizes = [2, 32], strides = [1, 1]} : vector<2x128xf32> to vector<2x32xf32>
    %270 = arith.negf %269 : vector<2x32xf32>
    %271 = math.exp %270 : vector<2x32xf32>
    %cst_57 = arith.constant 1.000000e+00 : f32
    %272 = vector.broadcast %cst_57 : f32 to vector<2x32xf32>
    %273 = arith.addf %272, %271 : vector<2x32xf32>
    %274 = arith.divf %272, %273 : vector<2x32xf32>
    %275 = vector.extract_strided_slice %259 {offsets = [0, 64], sizes = [2, 32], strides = [1, 1]} : vector<2x128xf32> to vector<2x32xf32>
    %276 = math.tanh %275 : vector<2x32xf32>
    %277 = vector.extract_strided_slice %259 {offsets = [0, 96], sizes = [2, 32], strides = [1, 1]} : vector<2x128xf32> to vector<2x32xf32>
    %278 = arith.negf %277 : vector<2x32xf32>
    %279 = math.exp %278 : vector<2x32xf32>
    %cst_58 = arith.constant 1.000000e+00 : f32
    %280 = vector.broadcast %cst_58 : f32 to vector<2x32xf32>
    %281 = arith.addf %280, %279 : vector<2x32xf32>
    %282 = arith.divf %280, %281 : vector<2x32xf32>
    %283 = arith.mulf %274, %224 : vector<2x32xf32>
    %284 = arith.mulf %268, %276 : vector<2x32xf32>
    %285 = arith.addf %283, %284 : vector<2x32xf32>
    %286 = math.tanh %285 : vector<2x32xf32>
    %287 = arith.mulf %282, %286 : vector<2x32xf32>
    %288 = vector.extract_strided_slice %262 {offsets = [0, 0], sizes = [2, 32], strides = [1, 1]} : vector<2x128xf32> to vector<2x32xf32>
    %289 = arith.negf %288 : vector<2x32xf32>
    %290 = math.exp %289 : vector<2x32xf32>
    %cst_59 = arith.constant 1.000000e+00 : f32
    %291 = vector.broadcast %cst_59 : f32 to vector<2x32xf32>
    %292 = arith.addf %291, %290 : vector<2x32xf32>
    %293 = arith.divf %291, %292 : vector<2x32xf32>
    %294 = vector.extract_strided_slice %262 {offsets = [0, 32], sizes = [2, 32], strides = [1, 1]} : vector<2x128xf32> to vector<2x32xf32>
    %295 = arith.negf %294 : vector<2x32xf32>
    %296 = math.exp %295 : vector<2x32xf32>
    %cst_60 = arith.constant 1.000000e+00 : f32
    %297 = vector.broadcast %cst_60 : f32 to vector<2x32xf32>
    %298 = arith.addf %297, %296 : vector<2x32xf32>
    %299 = arith.divf %297, %298 : vector<2x32xf32>
    %300 = vector.extract_strided_slice %262 {offsets = [0, 64], sizes = [2, 32], strides = [1, 1]} : vector<2x128xf32> to vector<2x32xf32>
    %301 = math.tanh %300 : vector<2x32xf32>
    %302 = vector.extract_strided_slice %262 {offsets = [0, 96], sizes = [2, 32], strides = [1, 1]} : vector<2x128xf32> to vector<2x32xf32>
    %303 = arith.negf %302 : vector<2x32xf32>
    %304 = math.exp %303 : vector<2x32xf32>
    %cst_61 = arith.constant 1.000000e+00 : f32
    %305 = vector.broadcast %cst_61 : f32 to vector<2x32xf32>
    %306 = arith.addf %305, %304 : vector<2x32xf32>
    %307 = arith.divf %305, %306 : vector<2x32xf32>
    %308 = arith.mulf %299, %249 : vector<2x32xf32>
    %309 = arith.mulf %293, %301 : vector<2x32xf32>
    %310 = arith.addf %308, %309 : vector<2x32xf32>
    %311 = math.tanh %310 : vector<2x32xf32>
    %312 = arith.mulf %307, %311 : vector<2x32xf32>
    %c8_62 = arith.constant 8 : index
    %c0_63 = arith.constant 0 : index
    %313 = vector.load %arg11[%c8_62, %c0_63] : memref<16x64xf32, #tpu.memory_space<vmem>>, vector<2x32xf32>
    tpu.vector_store %arg11[%c8_62, %c0_63], %287 {strides = array<i32>} : memref<16x64xf32, #tpu.memory_space<vmem>>, vector<2x32xf32>,
    %c6_64 = arith.constant 6 : index
    %c32_65 = arith.constant 32 : index
    %314 = vector.load %arg11[%c6_64, %c32_65] : memref<16x64xf32, #tpu.memory_space<vmem>>, vector<2x32xf32>
    tpu.vector_store %arg11[%c6_64, %c32_65], %312 {strides = array<i32>} : memref<16x64xf32, #tpu.memory_space<vmem>>, vector<2x32xf32>,
    %315 = tpu.concatenate %287, %312 in 1 : vector<2x32xf32>, vector<2x32xf32> -> vector<2x64xf32>
    %c0_66 = arith.constant 0 : index
    %c0_67 = arith.constant 0 : index
    %316 = vector.load %arg2[%c0_66, %c0_67] : memref<64x256xf32, #tpu.memory_space<vmem>>, vector<64x256xf32>
    %cst_68 = arith.constant dense<0.000000e+00> : vector<2x256xf32>
    %317 = tpu.matmul %315, %316, %cst_68 {dimension_numbers = #tpu.dot_dimension_numbers<[1], [0], [0], [1], [0, 0, 1, 1], [], []>} : vector<2x64xf32>, vector<64x256xf32>, vector<2x256xf32> -> vector<2x256xf32>
    %318 = vector.extract_strided_slice %317 {offsets = [0, 0], sizes = [2, 128], strides = [1, 1]} : vector<2x256xf32> to vector<2x128xf32>
    %319 = vector.extract_strided_slice %5 {offsets = [10, 0], sizes = [2, 128], strides = [1, 1]} : vector<16x256xf32> to vector<2x128xf32>
    %320 = arith.addf %318, %319 : vector<2x128xf32>
    %321 = vector.extract_strided_slice %317 {offsets = [0, 128], sizes = [2, 128], strides = [1, 1]} : vector<2x256xf32> to vector<2x128xf32>
    %322 = vector.extract_strided_slice %5 {offsets = [4, 128], sizes = [2, 128], strides = [1, 1]} : vector<16x256xf32> to vector<2x128xf32>
    %323 = arith.addf %321, %322 : vector<2x128xf32>
    %324 = vector.extract_strided_slice %320 {offsets = [0, 0], sizes = [2, 32], strides = [1, 1]} : vector<2x128xf32> to vector<2x32xf32>
    %325 = arith.negf %324 : vector<2x32xf32>
    %326 = math.exp %325 : vector<2x32xf32>
    %cst_69 = arith.constant 1.000000e+00 : f32
    %327 = vector.broadcast %cst_69 : f32 to vector<2x32xf32>
    %328 = arith.addf %327, %326 : vector<2x32xf32>
    %329 = arith.divf %327, %328 : vector<2x32xf32>
    %330 = vector.extract_strided_slice %320 {offsets = [0, 32], sizes = [2, 32], strides = [1, 1]} : vector<2x128xf32> to vector<2x32xf32>
    %331 = arith.negf %330 : vector<2x32xf32>
    %332 = math.exp %331 : vector<2x32xf32>
    %cst_70 = arith.constant 1.000000e+00 : f32
    %333 = vector.broadcast %cst_70 : f32 to vector<2x32xf32>
    %334 = arith.addf %333, %332 : vector<2x32xf32>
    %335 = arith.divf %333, %334 : vector<2x32xf32>
    %336 = vector.extract_strided_slice %320 {offsets = [0, 64], sizes = [2, 32], strides = [1, 1]} : vector<2x128xf32> to vector<2x32xf32>
    %337 = math.tanh %336 : vector<2x32xf32>
    %338 = vector.extract_strided_slice %320 {offsets = [0, 96], sizes = [2, 32], strides = [1, 1]} : vector<2x128xf32> to vector<2x32xf32>
    %339 = arith.negf %338 : vector<2x32xf32>
    %340 = math.exp %339 : vector<2x32xf32>
    %cst_71 = arith.constant 1.000000e+00 : f32
    %341 = vector.broadcast %cst_71 : f32 to vector<2x32xf32>
    %342 = arith.addf %341, %340 : vector<2x32xf32>
    %343 = arith.divf %341, %342 : vector<2x32xf32>
    %344 = arith.mulf %335, %285 : vector<2x32xf32>
    %345 = arith.mulf %329, %337 : vector<2x32xf32>
    %346 = arith.addf %344, %345 : vector<2x32xf32>
    %347 = math.tanh %346 : vector<2x32xf32>
    %348 = arith.mulf %343, %347 : vector<2x32xf32>
    %349 = vector.extract_strided_slice %323 {offsets = [0, 0], sizes = [2, 32], strides = [1, 1]} : vector<2x128xf32> to vector<2x32xf32>
    %350 = arith.negf %349 : vector<2x32xf32>
    %351 = math.exp %350 : vector<2x32xf32>
    %cst_72 = arith.constant 1.000000e+00 : f32
    %352 = vector.broadcast %cst_72 : f32 to vector<2x32xf32>
    %353 = arith.addf %352, %351 : vector<2x32xf32>
    %354 = arith.divf %352, %353 : vector<2x32xf32>
    %355 = vector.extract_strided_slice %323 {offsets = [0, 32], sizes = [2, 32], strides = [1, 1]} : vector<2x128xf32> to vector<2x32xf32>
    %356 = arith.negf %355 : vector<2x32xf32>
    %357 = math.exp %356 : vector<2x32xf32>
    %cst_73 = arith.constant 1.000000e+00 : f32
    %358 = vector.broadcast %cst_73 : f32 to vector<2x32xf32>
    %359 = arith.addf %358, %357 : vector<2x32xf32>
    %360 = arith.divf %358, %359 : vector<2x32xf32>
    %361 = vector.extract_strided_slice %323 {offsets = [0, 64], sizes = [2, 32], strides = [1, 1]} : vector<2x128xf32> to vector<2x32xf32>
    %362 = math.tanh %361 : vector<2x32xf32>
    %363 = vector.extract_strided_slice %323 {offsets = [0, 96], sizes = [2, 32], strides = [1, 1]} : vector<2x128xf32> to vector<2x32xf32>
    %364 = arith.negf %363 : vector<2x32xf32>
    %365 = math.exp %364 : vector<2x32xf32>
    %cst_74 = arith.constant 1.000000e+00 : f32
    %366 = vector.broadcast %cst_74 : f32 to vector<2x32xf32>
    %367 = arith.addf %366, %365 : vector<2x32xf32>
    %368 = arith.divf %366, %367 : vector<2x32xf32>
    %369 = arith.mulf %360, %310 : vector<2x32xf32>
    %370 = arith.mulf %354, %362 : vector<2x32xf32>
    %371 = arith.addf %369, %370 : vector<2x32xf32>
    %372 = math.tanh %371 : vector<2x32xf32>
    %373 = arith.mulf %368, %372 : vector<2x32xf32>
    %c10_75 = arith.constant 10 : index
    %c0_76 = arith.constant 0 : index
    %374 = vector.load %arg11[%c10_75, %c0_76] : memref<16x64xf32, #tpu.memory_space<vmem>>, vector<2x32xf32>
    tpu.vector_store %arg11[%c10_75, %c0_76], %348 {strides = array<i32>} : memref<16x64xf32, #tpu.memory_space<vmem>>, vector<2x32xf32>,
    %c4_77 = arith.constant 4 : index
    %c32_78 = arith.constant 32 : index
    %375 = vector.load %arg11[%c4_77, %c32_78] : memref<16x64xf32, #tpu.memory_space<vmem>>, vector<2x32xf32>
    tpu.vector_store %arg11[%c4_77, %c32_78], %373 {strides = array<i32>} : memref<16x64xf32, #tpu.memory_space<vmem>>, vector<2x32xf32>,
    %376 = tpu.concatenate %348, %373 in 1 : vector<2x32xf32>, vector<2x32xf32> -> vector<2x64xf32>
    %c0_79 = arith.constant 0 : index
    %c0_80 = arith.constant 0 : index
    %377 = vector.load %arg2[%c0_79, %c0_80] : memref<64x256xf32, #tpu.memory_space<vmem>>, vector<64x256xf32>
    %cst_81 = arith.constant dense<0.000000e+00> : vector<2x256xf32>
    %378 = tpu.matmul %376, %377, %cst_81 {dimension_numbers = #tpu.dot_dimension_numbers<[1], [0], [0], [1], [0, 0, 1, 1], [], []>} : vector<2x64xf32>, vector<64x256xf32>, vector<2x256xf32> -> vector<2x256xf32>
    %379 = vector.extract_strided_slice %378 {offsets = [0, 0], sizes = [2, 128], strides = [1, 1]} : vector<2x256xf32> to vector<2x128xf32>
    %380 = vector.extract_strided_slice %5 {offsets = [12, 0], sizes = [2, 128], strides = [1, 1]} : vector<16x256xf32> to vector<2x128xf32>
    %381 = arith.addf %379, %380 : vector<2x128xf32>
    %382 = vector.extract_strided_slice %378 {offsets = [0, 128], sizes = [2, 128], strides = [1, 1]} : vector<2x256xf32> to vector<2x128xf32>
    %383 = vector.extract_strided_slice %5 {offsets = [2, 128], sizes = [2, 128], strides = [1, 1]} : vector<16x256xf32> to vector<2x128xf32>
    %384 = arith.addf %382, %383 : vector<2x128xf32>
    %385 = vector.extract_strided_slice %381 {offsets = [0, 0], sizes = [2, 32], strides = [1, 1]} : vector<2x128xf32> to vector<2x32xf32>
    %386 = arith.negf %385 : vector<2x32xf32>
    %387 = math.exp %386 : vector<2x32xf32>
    %cst_82 = arith.constant 1.000000e+00 : f32
    %388 = vector.broadcast %cst_82 : f32 to vector<2x32xf32>
    %389 = arith.addf %388, %387 : vector<2x32xf32>
    %390 = arith.divf %388, %389 : vector<2x32xf32>
    %391 = vector.extract_strided_slice %381 {offsets = [0, 32], sizes = [2, 32], strides = [1, 1]} : vector<2x128xf32> to vector<2x32xf32>
    %392 = arith.negf %391 : vector<2x32xf32>
    %393 = math.exp %392 : vector<2x32xf32>
    %cst_83 = arith.constant 1.000000e+00 : f32
    %394 = vector.broadcast %cst_83 : f32 to vector<2x32xf32>
    %395 = arith.addf %394, %393 : vector<2x32xf32>
    %396 = arith.divf %394, %395 : vector<2x32xf32>
    %397 = vector.extract_strided_slice %381 {offsets = [0, 64], sizes = [2, 32], strides = [1, 1]} : vector<2x128xf32> to vector<2x32xf32>
    %398 = math.tanh %397 : vector<2x32xf32>
    %399 = vector.extract_strided_slice %381 {offsets = [0, 96], sizes = [2, 32], strides = [1, 1]} : vector<2x128xf32> to vector<2x32xf32>
    %400 = arith.negf %399 : vector<2x32xf32>
    %401 = math.exp %400 : vector<2x32xf32>
    %cst_84 = arith.constant 1.000000e+00 : f32
    %402 = vector.broadcast %cst_84 : f32 to vector<2x32xf32>
    %403 = arith.addf %402, %401 : vector<2x32xf32>
    %404 = arith.divf %402, %403 : vector<2x32xf32>
    %405 = arith.mulf %396, %346 : vector<2x32xf32>
    %406 = arith.mulf %390, %398 : vector<2x32xf32>
    %407 = arith.addf %405, %406 : vector<2x32xf32>
    %408 = math.tanh %407 : vector<2x32xf32>
    %409 = arith.mulf %404, %408 : vector<2x32xf32>
    %410 = vector.extract_strided_slice %384 {offsets = [0, 0], sizes = [2, 32], strides = [1, 1]} : vector<2x128xf32> to vector<2x32xf32>
    %411 = arith.negf %410 : vector<2x32xf32>
    %412 = math.exp %411 : vector<2x32xf32>
    %cst_85 = arith.constant 1.000000e+00 : f32
    %413 = vector.broadcast %cst_85 : f32 to vector<2x32xf32>
    %414 = arith.addf %413, %412 : vector<2x32xf32>
    %415 = arith.divf %413, %414 : vector<2x32xf32>
    %416 = vector.extract_strided_slice %384 {offsets = [0, 32], sizes = [2, 32], strides = [1, 1]} : vector<2x128xf32> to vector<2x32xf32>
    %417 = arith.negf %416 : vector<2x32xf32>
    %418 = math.exp %417 : vector<2x32xf32>
    %cst_86 = arith.constant 1.000000e+00 : f32
    %419 = vector.broadcast %cst_86 : f32 to vector<2x32xf32>
    %420 = arith.addf %419, %418 : vector<2x32xf32>
    %421 = arith.divf %419, %420 : vector<2x32xf32>
    %422 = vector.extract_strided_slice %384 {offsets = [0, 64], sizes = [2, 32], strides = [1, 1]} : vector<2x128xf32> to vector<2x32xf32>
    %423 = math.tanh %422 : vector<2x32xf32>
    %424 = vector.extract_strided_slice %384 {offsets = [0, 96], sizes = [2, 32], strides = [1, 1]} : vector<2x128xf32> to vector<2x32xf32>
    %425 = arith.negf %424 : vector<2x32xf32>
    %426 = math.exp %425 : vector<2x32xf32>
    %cst_87 = arith.constant 1.000000e+00 : f32
    %427 = vector.broadcast %cst_87 : f32 to vector<2x32xf32>
    %428 = arith.addf %427, %426 : vector<2x32xf32>
    %429 = arith.divf %427, %428 : vector<2x32xf32>
    %430 = arith.mulf %421, %371 : vector<2x32xf32>
    %431 = arith.mulf %415, %423 : vector<2x32xf32>
    %432 = arith.addf %430, %431 : vector<2x32xf32>
    %433 = math.tanh %432 : vector<2x32xf32>
    %434 = arith.mulf %429, %433 : vector<2x32xf32>
    %c12_88 = arith.constant 12 : index
    %c0_89 = arith.constant 0 : index
    %435 = vector.load %arg11[%c12_88, %c0_89] : memref<16x64xf32, #tpu.memory_space<vmem>>, vector<2x32xf32>
    tpu.vector_store %arg11[%c12_88, %c0_89], %409 {strides = array<i32>} : memref<16x64xf32, #tpu.memory_space<vmem>>, vector<2x32xf32>,
    %c2_90 = arith.constant 2 : index
    %c32_91 = arith.constant 32 : index
    %436 = vector.load %arg11[%c2_90, %c32_91] : memref<16x64xf32, #tpu.memory_space<vmem>>, vector<2x32xf32>
    tpu.vector_store %arg11[%c2_90, %c32_91], %434 {strides = array<i32>} : memref<16x64xf32, #tpu.memory_space<vmem>>, vector<2x32xf32>,
    %437 = tpu.concatenate %409, %434 in 1 : vector<2x32xf32>, vector<2x32xf32> -> vector<2x64xf32>
    %c0_92 = arith.constant 0 : index
    %c0_93 = arith.constant 0 : index
    %438 = vector.load %arg2[%c0_92, %c0_93] : memref<64x256xf32, #tpu.memory_space<vmem>>, vector<64x256xf32>
    %cst_94 = arith.constant dense<0.000000e+00> : vector<2x256xf32>
    %439 = tpu.matmul %437, %438, %cst_94 {dimension_numbers = #tpu.dot_dimension_numbers<[1], [0], [0], [1], [0, 0, 1, 1], [], []>} : vector<2x64xf32>, vector<64x256xf32>, vector<2x256xf32> -> vector<2x256xf32>
    %440 = vector.extract_strided_slice %439 {offsets = [0, 0], sizes = [2, 128], strides = [1, 1]} : vector<2x256xf32> to vector<2x128xf32>
    %441 = vector.extract_strided_slice %5 {offsets = [14, 0], sizes = [2, 128], strides = [1, 1]} : vector<16x256xf32> to vector<2x128xf32>
    %442 = arith.addf %440, %441 : vector<2x128xf32>
    %443 = vector.extract_strided_slice %439 {offsets = [0, 128], sizes = [2, 128], strides = [1, 1]} : vector<2x256xf32> to vector<2x128xf32>
    %444 = vector.extract_strided_slice %5 {offsets = [0, 128], sizes = [2, 128], strides = [1, 1]} : vector<16x256xf32> to vector<2x128xf32>
    %445 = arith.addf %443, %444 : vector<2x128xf32>
    %446 = vector.extract_strided_slice %442 {offsets = [0, 0], sizes = [2, 32], strides = [1, 1]} : vector<2x128xf32> to vector<2x32xf32>
    %447 = arith.negf %446 : vector<2x32xf32>
    %448 = math.exp %447 : vector<2x32xf32>
    %cst_95 = arith.constant 1.000000e+00 : f32
    %449 = vector.broadcast %cst_95 : f32 to vector<2x32xf32>
    %450 = arith.addf %449, %448 : vector<2x32xf32>
    %451 = arith.divf %449, %450 : vector<2x32xf32>
    %452 = vector.extract_strided_slice %442 {offsets = [0, 32], sizes = [2, 32], strides = [1, 1]} : vector<2x128xf32> to vector<2x32xf32>
    %453 = arith.negf %452 : vector<2x32xf32>
    %454 = math.exp %453 : vector<2x32xf32>
    %cst_96 = arith.constant 1.000000e+00 : f32
    %455 = vector.broadcast %cst_96 : f32 to vector<2x32xf32>
    %456 = arith.addf %455, %454 : vector<2x32xf32>
    %457 = arith.divf %455, %456 : vector<2x32xf32>
    %458 = vector.extract_strided_slice %442 {offsets = [0, 64], sizes = [2, 32], strides = [1, 1]} : vector<2x128xf32> to vector<2x32xf32>
    %459 = math.tanh %458 : vector<2x32xf32>
    %460 = vector.extract_strided_slice %442 {offsets = [0, 96], sizes = [2, 32], strides = [1, 1]} : vector<2x128xf32> to vector<2x32xf32>
    %461 = arith.negf %460 : vector<2x32xf32>
    %462 = math.exp %461 : vector<2x32xf32>
    %cst_97 = arith.constant 1.000000e+00 : f32
    %463 = vector.broadcast %cst_97 : f32 to vector<2x32xf32>
    %464 = arith.addf %463, %462 : vector<2x32xf32>
    %465 = arith.divf %463, %464 : vector<2x32xf32>
    %466 = arith.mulf %457, %407 : vector<2x32xf32>
    %467 = arith.mulf %451, %459 : vector<2x32xf32>
    %468 = arith.addf %466, %467 : vector<2x32xf32>
    %469 = math.tanh %468 : vector<2x32xf32>
    %470 = arith.mulf %465, %469 : vector<2x32xf32>
    %471 = vector.extract_strided_slice %445 {offsets = [0, 0], sizes = [2, 32], strides = [1, 1]} : vector<2x128xf32> to vector<2x32xf32>
    %472 = arith.negf %471 : vector<2x32xf32>
    %473 = math.exp %472 : vector<2x32xf32>
    %cst_98 = arith.constant 1.000000e+00 : f32
    %474 = vector.broadcast %cst_98 : f32 to vector<2x32xf32>
    %475 = arith.addf %474, %473 : vector<2x32xf32>
    %476 = arith.divf %474, %475 : vector<2x32xf32>
    %477 = vector.extract_strided_slice %445 {offsets = [0, 32], sizes = [2, 32], strides = [1, 1]} : vector<2x128xf32> to vector<2x32xf32>
    %478 = arith.negf %477 : vector<2x32xf32>
    %479 = math.exp %478 : vector<2x32xf32>
    %cst_99 = arith.constant 1.000000e+00 : f32
    %480 = vector.broadcast %cst_99 : f32 to vector<2x32xf32>
    %481 = arith.addf %480, %479 : vector<2x32xf32>
    %482 = arith.divf %480, %481 : vector<2x32xf32>
    %483 = vector.extract_strided_slice %445 {offsets = [0, 64], sizes = [2, 32], strides = [1, 1]} : vector<2x128xf32> to vector<2x32xf32>
    %484 = math.tanh %483 : vector<2x32xf32>
    %485 = vector.extract_strided_slice %445 {offsets = [0, 96], sizes = [2, 32], strides = [1, 1]} : vector<2x128xf32> to vector<2x32xf32>
    %486 = arith.negf %485 : vector<2x32xf32>
    %487 = math.exp %486 : vector<2x32xf32>
    %cst_100 = arith.constant 1.000000e+00 : f32
    %488 = vector.broadcast %cst_100 : f32 to vector<2x32xf32>
    %489 = arith.addf %488, %487 : vector<2x32xf32>
    %490 = arith.divf %488, %489 : vector<2x32xf32>
    %491 = arith.mulf %482, %432 : vector<2x32xf32>
    %492 = arith.mulf %476, %484 : vector<2x32xf32>
    %493 = arith.addf %491, %492 : vector<2x32xf32>
    %494 = math.tanh %493 : vector<2x32xf32>
    %495 = arith.mulf %490, %494 : vector<2x32xf32>
    %c14_101 = arith.constant 14 : index
    %c0_102 = arith.constant 0 : index
    %496 = vector.load %arg11[%c14_101, %c0_102] : memref<16x64xf32, #tpu.memory_space<vmem>>, vector<2x32xf32>
    tpu.vector_store %arg11[%c14_101, %c0_102], %470 {strides = array<i32>} : memref<16x64xf32, #tpu.memory_space<vmem>>, vector<2x32xf32>,
    %c0_103 = arith.constant 0 : index
    %c32_104 = arith.constant 32 : index
    %497 = vector.load %arg11[%c0_103, %c32_104] : memref<16x64xf32, #tpu.memory_space<vmem>>, vector<2x32xf32>
    tpu.vector_store %arg11[%c0_103, %c32_104], %495 {strides = array<i32>} : memref<16x64xf32, #tpu.memory_space<vmem>>, vector<2x32xf32>,
    %c0_105 = arith.constant 0 : index
    %c0_106 = arith.constant 0 : index
    %498 = vector.load %arg11[%c0_105, %c0_106] : memref<16x64xf32, #tpu.memory_space<vmem>>, vector<16x64xf32>
    %c0_107 = arith.constant 0 : index
    %c0_108 = arith.constant 0 : index
    %499 = vector.load %arg4[%c0_107, %c0_108] : memref<64x256xf32, #tpu.memory_space<vmem>>, vector<64x256xf32>
    %cst_109 = arith.constant dense<0.000000e+00> : vector<16x256xf32>
    %500 = tpu.matmul %498, %499, %cst_109 {dimension_numbers = #tpu.dot_dimension_numbers<[1], [0], [0], [1], [0, 0, 1, 1], [], []>} : vector<16x64xf32>, vector<64x256xf32>, vector<16x256xf32> -> vector<16x256xf32>
    %c0_110 = arith.constant 0 : index
    %c0_111 = arith.constant 0 : index
    %501 = vector.load %arg6[%c0_110, %c0_111] : memref<1x256xf32, #tpu.memory_space<vmem>>, vector<1x256xf32>
    %502 = vector.broadcast %501 : vector<1x256xf32> to vector<16x256xf32>
    %503 = arith.addf %500, %502 : vector<16x256xf32>
    %cst_112 = arith.constant 0.000000e+00 : f32
    %504 = vector.broadcast %cst_112 : f32 to vector<2x32xf32>
    %cst_113 = arith.constant 0.000000e+00 : f32
    %505 = vector.broadcast %cst_113 : f32 to vector<2x32xf32>
    %cst_114 = arith.constant 0.000000e+00 : f32
    %506 = vector.broadcast %cst_114 : f32 to vector<2x32xf32>
    %cst_115 = arith.constant 0.000000e+00 : f32
    %507 = vector.broadcast %cst_115 : f32 to vector<2x32xf32>
    %508 = tpu.concatenate %504, %506 in 1 : vector<2x32xf32>, vector<2x32xf32> -> vector<2x64xf32>
    %c0_116 = arith.constant 0 : index
    %c0_117 = arith.constant 0 : index
    %509 = vector.load %arg5[%c0_116, %c0_117] : memref<64x256xf32, #tpu.memory_space<vmem>>, vector<64x256xf32>
    %cst_118 = arith.constant dense<0.000000e+00> : vector<2x256xf32>
    %510 = tpu.matmul %508, %509, %cst_118 {dimension_numbers = #tpu.dot_dimension_numbers<[1], [0], [0], [1], [0, 0, 1, 1], [], []>} : vector<2x64xf32>, vector<64x256xf32>, vector<2x256xf32> -> vector<2x256xf32>
    %511 = vector.extract_strided_slice %510 {offsets = [0, 0], sizes = [2, 128], strides = [1, 1]} : vector<2x256xf32> to vector<2x128xf32>
    %512 = vector.extract_strided_slice %503 {offsets = [0, 0], sizes = [2, 128], strides = [1, 1]} : vector<16x256xf32> to vector<2x128xf32>
    %513 = arith.addf %511, %512 : vector<2x128xf32>
    %514 = vector.extract_strided_slice %510 {offsets = [0, 128], sizes = [2, 128], strides = [1, 1]} : vector<2x256xf32> to vector<2x128xf32>
    %515 = vector.extract_strided_slice %503 {offsets = [14, 128], sizes = [2, 128], strides = [1, 1]} : vector<16x256xf32> to vector<2x128xf32>
    %516 = arith.addf %514, %515 : vector<2x128xf32>
    %517 = vector.extract_strided_slice %513 {offsets = [0, 0], sizes = [2, 32], strides = [1, 1]} : vector<2x128xf32> to vector<2x32xf32>
    %518 = arith.negf %517 : vector<2x32xf32>
    %519 = math.exp %518 : vector<2x32xf32>
    %cst_119 = arith.constant 1.000000e+00 : f32
    %520 = vector.broadcast %cst_119 : f32 to vector<2x32xf32>
    %521 = arith.addf %520, %519 : vector<2x32xf32>
    %522 = arith.divf %520, %521 : vector<2x32xf32>
    %523 = vector.extract_strided_slice %513 {offsets = [0, 32], sizes = [2, 32], strides = [1, 1]} : vector<2x128xf32> to vector<2x32xf32>
    %524 = arith.negf %523 : vector<2x32xf32>
    %525 = math.exp %524 : vector<2x32xf32>
    %cst_120 = arith.constant 1.000000e+00 : f32
    %526 = vector.broadcast %cst_120 : f32 to vector<2x32xf32>
    %527 = arith.addf %526, %525 : vector<2x32xf32>
    %528 = arith.divf %526, %527 : vector<2x32xf32>
    %529 = vector.extract_strided_slice %513 {offsets = [0, 64], sizes = [2, 32], strides = [1, 1]} : vector<2x128xf32> to vector<2x32xf32>
    %530 = math.tanh %529 : vector<2x32xf32>
    %531 = vector.extract_strided_slice %513 {offsets = [0, 96], sizes = [2, 32], strides = [1, 1]} : vector<2x128xf32> to vector<2x32xf32>
    %532 = arith.negf %531 : vector<2x32xf32>
    %533 = math.exp %532 : vector<2x32xf32>
    %cst_121 = arith.constant 1.000000e+00 : f32
    %534 = vector.broadcast %cst_121 : f32 to vector<2x32xf32>
    %535 = arith.addf %534, %533 : vector<2x32xf32>
    %536 = arith.divf %534, %535 : vector<2x32xf32>
    %537 = arith.mulf %528, %505 : vector<2x32xf32>
    %538 = arith.mulf %522, %530 : vector<2x32xf32>
    %539 = arith.addf %537, %538 : vector<2x32xf32>
    %540 = math.tanh %539 : vector<2x32xf32>
    %541 = arith.mulf %536, %540 : vector<2x32xf32>
    %542 = vector.extract_strided_slice %516 {offsets = [0, 0], sizes = [2, 32], strides = [1, 1]} : vector<2x128xf32> to vector<2x32xf32>
    %543 = arith.negf %542 : vector<2x32xf32>
    %544 = math.exp %543 : vector<2x32xf32>
    %cst_122 = arith.constant 1.000000e+00 : f32
    %545 = vector.broadcast %cst_122 : f32 to vector<2x32xf32>
    %546 = arith.addf %545, %544 : vector<2x32xf32>
    %547 = arith.divf %545, %546 : vector<2x32xf32>
    %548 = vector.extract_strided_slice %516 {offsets = [0, 32], sizes = [2, 32], strides = [1, 1]} : vector<2x128xf32> to vector<2x32xf32>
    %549 = arith.negf %548 : vector<2x32xf32>
    %550 = math.exp %549 : vector<2x32xf32>
    %cst_123 = arith.constant 1.000000e+00 : f32
    %551 = vector.broadcast %cst_123 : f32 to vector<2x32xf32>
    %552 = arith.addf %551, %550 : vector<2x32xf32>
    %553 = arith.divf %551, %552 : vector<2x32xf32>
    %554 = vector.extract_strided_slice %516 {offsets = [0, 64], sizes = [2, 32], strides = [1, 1]} : vector<2x128xf32> to vector<2x32xf32>
    %555 = math.tanh %554 : vector<2x32xf32>
    %556 = vector.extract_strided_slice %516 {offsets = [0, 96], sizes = [2, 32], strides = [1, 1]} : vector<2x128xf32> to vector<2x32xf32>
    %557 = arith.negf %556 : vector<2x32xf32>
    %558 = math.exp %557 : vector<2x32xf32>
    %cst_124 = arith.constant 1.000000e+00 : f32
    %559 = vector.broadcast %cst_124 : f32 to vector<2x32xf32>
    %560 = arith.addf %559, %558 : vector<2x32xf32>
    %561 = arith.divf %559, %560 : vector<2x32xf32>
    %562 = arith.mulf %553, %507 : vector<2x32xf32>
    %563 = arith.mulf %547, %555 : vector<2x32xf32>
    %564 = arith.addf %562, %563 : vector<2x32xf32>
    %565 = math.tanh %564 : vector<2x32xf32>
    %566 = arith.mulf %561, %565 : vector<2x32xf32>
    %567 = tpu.concatenate %541, %566 in 1 : vector<2x32xf32>, vector<2x32xf32> -> vector<2x64xf32>
    %c0_125 = arith.constant 0 : index
    %c0_126 = arith.constant 0 : index
    %568 = vector.load %arg5[%c0_125, %c0_126] : memref<64x256xf32, #tpu.memory_space<vmem>>, vector<64x256xf32>
    %cst_127 = arith.constant dense<0.000000e+00> : vector<2x256xf32>
    %569 = tpu.matmul %567, %568, %cst_127 {dimension_numbers = #tpu.dot_dimension_numbers<[1], [0], [0], [1], [0, 0, 1, 1], [], []>} : vector<2x64xf32>, vector<64x256xf32>, vector<2x256xf32> -> vector<2x256xf32>
    %570 = vector.extract_strided_slice %569 {offsets = [0, 0], sizes = [2, 128], strides = [1, 1]} : vector<2x256xf32> to vector<2x128xf32>
    %571 = vector.extract_strided_slice %503 {offsets = [2, 0], sizes = [2, 128], strides = [1, 1]} : vector<16x256xf32> to vector<2x128xf32>
    %572 = arith.addf %570, %571 : vector<2x128xf32>
    %573 = vector.extract_strided_slice %569 {offsets = [0, 128], sizes = [2, 128], strides = [1, 1]} : vector<2x256xf32> to vector<2x128xf32>
    %574 = vector.extract_strided_slice %503 {offsets = [12, 128], sizes = [2, 128], strides = [1, 1]} : vector<16x256xf32> to vector<2x128xf32>
    %575 = arith.addf %573, %574 : vector<2x128xf32>
    %576 = vector.extract_strided_slice %572 {offsets = [0, 0], sizes = [2, 32], strides = [1, 1]} : vector<2x128xf32> to vector<2x32xf32>
    %577 = arith.negf %576 : vector<2x32xf32>
    %578 = math.exp %577 : vector<2x32xf32>
    %cst_128 = arith.constant 1.000000e+00 : f32
    %579 = vector.broadcast %cst_128 : f32 to vector<2x32xf32>
    %580 = arith.addf %579, %578 : vector<2x32xf32>
    %581 = arith.divf %579, %580 : vector<2x32xf32>
    %582 = vector.extract_strided_slice %572 {offsets = [0, 32], sizes = [2, 32], strides = [1, 1]} : vector<2x128xf32> to vector<2x32xf32>
    %583 = arith.negf %582 : vector<2x32xf32>
    %584 = math.exp %583 : vector<2x32xf32>
    %cst_129 = arith.constant 1.000000e+00 : f32
    %585 = vector.broadcast %cst_129 : f32 to vector<2x32xf32>
    %586 = arith.addf %585, %584 : vector<2x32xf32>
    %587 = arith.divf %585, %586 : vector<2x32xf32>
    %588 = vector.extract_strided_slice %572 {offsets = [0, 64], sizes = [2, 32], strides = [1, 1]} : vector<2x128xf32> to vector<2x32xf32>
    %589 = math.tanh %588 : vector<2x32xf32>
    %590 = vector.extract_strided_slice %572 {offsets = [0, 96], sizes = [2, 32], strides = [1, 1]} : vector<2x128xf32> to vector<2x32xf32>
    %591 = arith.negf %590 : vector<2x32xf32>
    %592 = math.exp %591 : vector<2x32xf32>
    %cst_130 = arith.constant 1.000000e+00 : f32
    %593 = vector.broadcast %cst_130 : f32 to vector<2x32xf32>
    %594 = arith.addf %593, %592 : vector<2x32xf32>
    %595 = arith.divf %593, %594 : vector<2x32xf32>
    %596 = arith.mulf %587, %539 : vector<2x32xf32>
    %597 = arith.mulf %581, %589 : vector<2x32xf32>
    %598 = arith.addf %596, %597 : vector<2x32xf32>
    %599 = math.tanh %598 : vector<2x32xf32>
    %600 = arith.mulf %595, %599 : vector<2x32xf32>
    %601 = vector.extract_strided_slice %575 {offsets = [0, 0], sizes = [2, 32], strides = [1, 1]} : vector<2x128xf32> to vector<2x32xf32>
    %602 = arith.negf %601 : vector<2x32xf32>
    %603 = math.exp %602 : vector<2x32xf32>
    %cst_131 = arith.constant 1.000000e+00 : f32
    %604 = vector.broadcast %cst_131 : f32 to vector<2x32xf32>
    %605 = arith.addf %604, %603 : vector<2x32xf32>
    %606 = arith.divf %604, %605 : vector<2x32xf32>
    %607 = vector.extract_strided_slice %575 {offsets = [0, 32], sizes = [2, 32], strides = [1, 1]} : vector<2x128xf32> to vector<2x32xf32>
    %608 = arith.negf %607 : vector<2x32xf32>
    %609 = math.exp %608 : vector<2x32xf32>
    %cst_132 = arith.constant 1.000000e+00 : f32
    %610 = vector.broadcast %cst_132 : f32 to vector<2x32xf32>
    %611 = arith.addf %610, %609 : vector<2x32xf32>
    %612 = arith.divf %610, %611 : vector<2x32xf32>
    %613 = vector.extract_strided_slice %575 {offsets = [0, 64], sizes = [2, 32], strides = [1, 1]} : vector<2x128xf32> to vector<2x32xf32>
    %614 = math.tanh %613 : vector<2x32xf32>
    %615 = vector.extract_strided_slice %575 {offsets = [0, 96], sizes = [2, 32], strides = [1, 1]} : vector<2x128xf32> to vector<2x32xf32>
    %616 = arith.negf %615 : vector<2x32xf32>
    %617 = math.exp %616 : vector<2x32xf32>
    %cst_133 = arith.constant 1.000000e+00 : f32
    %618 = vector.broadcast %cst_133 : f32 to vector<2x32xf32>
    %619 = arith.addf %618, %617 : vector<2x32xf32>
    %620 = arith.divf %618, %619 : vector<2x32xf32>
    %621 = arith.mulf %612, %564 : vector<2x32xf32>
    %622 = arith.mulf %606, %614 : vector<2x32xf32>
    %623 = arith.addf %621, %622 : vector<2x32xf32>
    %624 = math.tanh %623 : vector<2x32xf32>
    %625 = arith.mulf %620, %624 : vector<2x32xf32>
    %626 = tpu.concatenate %600, %625 in 1 : vector<2x32xf32>, vector<2x32xf32> -> vector<2x64xf32>
    %c0_134 = arith.constant 0 : index
    %c0_135 = arith.constant 0 : index
    %627 = vector.load %arg5[%c0_134, %c0_135] : memref<64x256xf32, #tpu.memory_space<vmem>>, vector<64x256xf32>
    %cst_136 = arith.constant dense<0.000000e+00> : vector<2x256xf32>
    %628 = tpu.matmul %626, %627, %cst_136 {dimension_numbers = #tpu.dot_dimension_numbers<[1], [0], [0], [1], [0, 0, 1, 1], [], []>} : vector<2x64xf32>, vector<64x256xf32>, vector<2x256xf32> -> vector<2x256xf32>
    %629 = vector.extract_strided_slice %628 {offsets = [0, 0], sizes = [2, 128], strides = [1, 1]} : vector<2x256xf32> to vector<2x128xf32>
    %630 = vector.extract_strided_slice %503 {offsets = [4, 0], sizes = [2, 128], strides = [1, 1]} : vector<16x256xf32> to vector<2x128xf32>
    %631 = arith.addf %629, %630 : vector<2x128xf32>
    %632 = vector.extract_strided_slice %628 {offsets = [0, 128], sizes = [2, 128], strides = [1, 1]} : vector<2x256xf32> to vector<2x128xf32>
    %633 = vector.extract_strided_slice %503 {offsets = [10, 128], sizes = [2, 128], strides = [1, 1]} : vector<16x256xf32> to vector<2x128xf32>
    %634 = arith.addf %632, %633 : vector<2x128xf32>
    %635 = vector.extract_strided_slice %631 {offsets = [0, 0], sizes = [2, 32], strides = [1, 1]} : vector<2x128xf32> to vector<2x32xf32>
    %636 = arith.negf %635 : vector<2x32xf32>
    %637 = math.exp %636 : vector<2x32xf32>
    %cst_137 = arith.constant 1.000000e+00 : f32
    %638 = vector.broadcast %cst_137 : f32 to vector<2x32xf32>
    %639 = arith.addf %638, %637 : vector<2x32xf32>
    %640 = arith.divf %638, %639 : vector<2x32xf32>
    %641 = vector.extract_strided_slice %631 {offsets = [0, 32], sizes = [2, 32], strides = [1, 1]} : vector<2x128xf32> to vector<2x32xf32>
    %642 = arith.negf %641 : vector<2x32xf32>
    %643 = math.exp %642 : vector<2x32xf32>
    %cst_138 = arith.constant 1.000000e+00 : f32
    %644 = vector.broadcast %cst_138 : f32 to vector<2x32xf32>
    %645 = arith.addf %644, %643 : vector<2x32xf32>
    %646 = arith.divf %644, %645 : vector<2x32xf32>
    %647 = vector.extract_strided_slice %631 {offsets = [0, 64], sizes = [2, 32], strides = [1, 1]} : vector<2x128xf32> to vector<2x32xf32>
    %648 = math.tanh %647 : vector<2x32xf32>
    %649 = vector.extract_strided_slice %631 {offsets = [0, 96], sizes = [2, 32], strides = [1, 1]} : vector<2x128xf32> to vector<2x32xf32>
    %650 = arith.negf %649 : vector<2x32xf32>
    %651 = math.exp %650 : vector<2x32xf32>
    %cst_139 = arith.constant 1.000000e+00 : f32
    %652 = vector.broadcast %cst_139 : f32 to vector<2x32xf32>
    %653 = arith.addf %652, %651 : vector<2x32xf32>
    %654 = arith.divf %652, %653 : vector<2x32xf32>
    %655 = arith.mulf %646, %598 : vector<2x32xf32>
    %656 = arith.mulf %640, %648 : vector<2x32xf32>
    %657 = arith.addf %655, %656 : vector<2x32xf32>
    %658 = math.tanh %657 : vector<2x32xf32>
    %659 = arith.mulf %654, %658 : vector<2x32xf32>
    %660 = vector.extract_strided_slice %634 {offsets = [0, 0], sizes = [2, 32], strides = [1, 1]} : vector<2x128xf32> to vector<2x32xf32>
    %661 = arith.negf %660 : vector<2x32xf32>
    %662 = math.exp %661 : vector<2x32xf32>
    %cst_140 = arith.constant 1.000000e+00 : f32
    %663 = vector.broadcast %cst_140 : f32 to vector<2x32xf32>
    %664 = arith.addf %663, %662 : vector<2x32xf32>
    %665 = arith.divf %663, %664 : vector<2x32xf32>
    %666 = vector.extract_strided_slice %634 {offsets = [0, 32], sizes = [2, 32], strides = [1, 1]} : vector<2x128xf32> to vector<2x32xf32>
    %667 = arith.negf %666 : vector<2x32xf32>
    %668 = math.exp %667 : vector<2x32xf32>
    %cst_141 = arith.constant 1.000000e+00 : f32
    %669 = vector.broadcast %cst_141 : f32 to vector<2x32xf32>
    %670 = arith.addf %669, %668 : vector<2x32xf32>
    %671 = arith.divf %669, %670 : vector<2x32xf32>
    %672 = vector.extract_strided_slice %634 {offsets = [0, 64], sizes = [2, 32], strides = [1, 1]} : vector<2x128xf32> to vector<2x32xf32>
    %673 = math.tanh %672 : vector<2x32xf32>
    %674 = vector.extract_strided_slice %634 {offsets = [0, 96], sizes = [2, 32], strides = [1, 1]} : vector<2x128xf32> to vector<2x32xf32>
    %675 = arith.negf %674 : vector<2x32xf32>
    %676 = math.exp %675 : vector<2x32xf32>
    %cst_142 = arith.constant 1.000000e+00 : f32
    %677 = vector.broadcast %cst_142 : f32 to vector<2x32xf32>
    %678 = arith.addf %677, %676 : vector<2x32xf32>
    %679 = arith.divf %677, %678 : vector<2x32xf32>
    %680 = arith.mulf %671, %623 : vector<2x32xf32>
    %681 = arith.mulf %665, %673 : vector<2x32xf32>
    %682 = arith.addf %680, %681 : vector<2x32xf32>
    %683 = math.tanh %682 : vector<2x32xf32>
    %684 = arith.mulf %679, %683 : vector<2x32xf32>
    %685 = tpu.concatenate %659, %684 in 1 : vector<2x32xf32>, vector<2x32xf32> -> vector<2x64xf32>
    %c0_143 = arith.constant 0 : index
    %c0_144 = arith.constant 0 : index
    %686 = vector.load %arg5[%c0_143, %c0_144] : memref<64x256xf32, #tpu.memory_space<vmem>>, vector<64x256xf32>
    %cst_145 = arith.constant dense<0.000000e+00> : vector<2x256xf32>
    %687 = tpu.matmul %685, %686, %cst_145 {dimension_numbers = #tpu.dot_dimension_numbers<[1], [0], [0], [1], [0, 0, 1, 1], [], []>} : vector<2x64xf32>, vector<64x256xf32>, vector<2x256xf32> -> vector<2x256xf32>
    %688 = vector.extract_strided_slice %687 {offsets = [0, 0], sizes = [2, 128], strides = [1, 1]} : vector<2x256xf32> to vector<2x128xf32>
    %689 = vector.extract_strided_slice %503 {offsets = [6, 0], sizes = [2, 128], strides = [1, 1]} : vector<16x256xf32> to vector<2x128xf32>
    %690 = arith.addf %688, %689 : vector<2x128xf32>
    %691 = vector.extract_strided_slice %687 {offsets = [0, 128], sizes = [2, 128], strides = [1, 1]} : vector<2x256xf32> to vector<2x128xf32>
    %692 = vector.extract_strided_slice %503 {offsets = [8, 128], sizes = [2, 128], strides = [1, 1]} : vector<16x256xf32> to vector<2x128xf32>
    %693 = arith.addf %691, %692 : vector<2x128xf32>
    %694 = vector.extract_strided_slice %690 {offsets = [0, 0], sizes = [2, 32], strides = [1, 1]} : vector<2x128xf32> to vector<2x32xf32>
    %695 = arith.negf %694 : vector<2x32xf32>
    %696 = math.exp %695 : vector<2x32xf32>
    %cst_146 = arith.constant 1.000000e+00 : f32
    %697 = vector.broadcast %cst_146 : f32 to vector<2x32xf32>
    %698 = arith.addf %697, %696 : vector<2x32xf32>
    %699 = arith.divf %697, %698 : vector<2x32xf32>
    %700 = vector.extract_strided_slice %690 {offsets = [0, 32], sizes = [2, 32], strides = [1, 1]} : vector<2x128xf32> to vector<2x32xf32>
    %701 = arith.negf %700 : vector<2x32xf32>
    %702 = math.exp %701 : vector<2x32xf32>
    %cst_147 = arith.constant 1.000000e+00 : f32
    %703 = vector.broadcast %cst_147 : f32 to vector<2x32xf32>
    %704 = arith.addf %703, %702 : vector<2x32xf32>
    %705 = arith.divf %703, %704 : vector<2x32xf32>
    %706 = vector.extract_strided_slice %690 {offsets = [0, 64], sizes = [2, 32], strides = [1, 1]} : vector<2x128xf32> to vector<2x32xf32>
    %707 = math.tanh %706 : vector<2x32xf32>
    %708 = vector.extract_strided_slice %690 {offsets = [0, 96], sizes = [2, 32], strides = [1, 1]} : vector<2x128xf32> to vector<2x32xf32>
    %709 = arith.negf %708 : vector<2x32xf32>
    %710 = math.exp %709 : vector<2x32xf32>
    %cst_148 = arith.constant 1.000000e+00 : f32
    %711 = vector.broadcast %cst_148 : f32 to vector<2x32xf32>
    %712 = arith.addf %711, %710 : vector<2x32xf32>
    %713 = arith.divf %711, %712 : vector<2x32xf32>
    %714 = arith.mulf %705, %657 : vector<2x32xf32>
    %715 = arith.mulf %699, %707 : vector<2x32xf32>
    %716 = arith.addf %714, %715 : vector<2x32xf32>
    %717 = math.tanh %716 : vector<2x32xf32>
    %718 = arith.mulf %713, %717 : vector<2x32xf32>
    %719 = vector.extract_strided_slice %693 {offsets = [0, 0], sizes = [2, 32], strides = [1, 1]} : vector<2x128xf32> to vector<2x32xf32>
    %720 = arith.negf %719 : vector<2x32xf32>
    %721 = math.exp %720 : vector<2x32xf32>
    %cst_149 = arith.constant 1.000000e+00 : f32
    %722 = vector.broadcast %cst_149 : f32 to vector<2x32xf32>
    %723 = arith.addf %722, %721 : vector<2x32xf32>
    %724 = arith.divf %722, %723 : vector<2x32xf32>
    %725 = vector.extract_strided_slice %693 {offsets = [0, 32], sizes = [2, 32], strides = [1, 1]} : vector<2x128xf32> to vector<2x32xf32>
    %726 = arith.negf %725 : vector<2x32xf32>
    %727 = math.exp %726 : vector<2x32xf32>
    %cst_150 = arith.constant 1.000000e+00 : f32
    %728 = vector.broadcast %cst_150 : f32 to vector<2x32xf32>
    %729 = arith.addf %728, %727 : vector<2x32xf32>
    %730 = arith.divf %728, %729 : vector<2x32xf32>
    %731 = vector.extract_strided_slice %693 {offsets = [0, 64], sizes = [2, 32], strides = [1, 1]} : vector<2x128xf32> to vector<2x32xf32>
    %732 = math.tanh %731 : vector<2x32xf32>
    %733 = vector.extract_strided_slice %693 {offsets = [0, 96], sizes = [2, 32], strides = [1, 1]} : vector<2x128xf32> to vector<2x32xf32>
    %734 = arith.negf %733 : vector<2x32xf32>
    %735 = math.exp %734 : vector<2x32xf32>
    %cst_151 = arith.constant 1.000000e+00 : f32
    %736 = vector.broadcast %cst_151 : f32 to vector<2x32xf32>
    %737 = arith.addf %736, %735 : vector<2x32xf32>
    %738 = arith.divf %736, %737 : vector<2x32xf32>
    %739 = arith.mulf %730, %682 : vector<2x32xf32>
    %740 = arith.mulf %724, %732 : vector<2x32xf32>
    %741 = arith.addf %739, %740 : vector<2x32xf32>
    %742 = math.tanh %741 : vector<2x32xf32>
    %743 = arith.mulf %738, %742 : vector<2x32xf32>
    %744 = tpu.concatenate %718, %743 in 1 : vector<2x32xf32>, vector<2x32xf32> -> vector<2x64xf32>
    %c0_152 = arith.constant 0 : index
    %c0_153 = arith.constant 0 : index
    %745 = vector.load %arg5[%c0_152, %c0_153] : memref<64x256xf32, #tpu.memory_space<vmem>>, vector<64x256xf32>
    %cst_154 = arith.constant dense<0.000000e+00> : vector<2x256xf32>
    %746 = tpu.matmul %744, %745, %cst_154 {dimension_numbers = #tpu.dot_dimension_numbers<[1], [0], [0], [1], [0, 0, 1, 1], [], []>} : vector<2x64xf32>, vector<64x256xf32>, vector<2x256xf32> -> vector<2x256xf32>
    %747 = vector.extract_strided_slice %746 {offsets = [0, 0], sizes = [2, 128], strides = [1, 1]} : vector<2x256xf32> to vector<2x128xf32>
    %748 = vector.extract_strided_slice %503 {offsets = [8, 0], sizes = [2, 128], strides = [1, 1]} : vector<16x256xf32> to vector<2x128xf32>
    %749 = arith.addf %747, %748 : vector<2x128xf32>
    %750 = vector.extract_strided_slice %746 {offsets = [0, 128], sizes = [2, 128], strides = [1, 1]} : vector<2x256xf32> to vector<2x128xf32>
    %751 = vector.extract_strided_slice %503 {offsets = [6, 128], sizes = [2, 128], strides = [1, 1]} : vector<16x256xf32> to vector<2x128xf32>
    %752 = arith.addf %750, %751 : vector<2x128xf32>
    %753 = vector.extract_strided_slice %749 {offsets = [0, 0], sizes = [2, 32], strides = [1, 1]} : vector<2x128xf32> to vector<2x32xf32>
    %754 = arith.negf %753 : vector<2x32xf32>
    %755 = math.exp %754 : vector<2x32xf32>
    %cst_155 = arith.constant 1.000000e+00 : f32
    %756 = vector.broadcast %cst_155 : f32 to vector<2x32xf32>
    %757 = arith.addf %756, %755 : vector<2x32xf32>
    %758 = arith.divf %756, %757 : vector<2x32xf32>
    %759 = vector.extract_strided_slice %749 {offsets = [0, 32], sizes = [2, 32], strides = [1, 1]} : vector<2x128xf32> to vector<2x32xf32>
    %760 = arith.negf %759 : vector<2x32xf32>
    %761 = math.exp %760 : vector<2x32xf32>
    %cst_156 = arith.constant 1.000000e+00 : f32
    %762 = vector.broadcast %cst_156 : f32 to vector<2x32xf32>
    %763 = arith.addf %762, %761 : vector<2x32xf32>
    %764 = arith.divf %762, %763 : vector<2x32xf32>
    %765 = vector.extract_strided_slice %749 {offsets = [0, 64], sizes = [2, 32], strides = [1, 1]} : vector<2x128xf32> to vector<2x32xf32>
    %766 = math.tanh %765 : vector<2x32xf32>
    %767 = vector.extract_strided_slice %749 {offsets = [0, 96], sizes = [2, 32], strides = [1, 1]} : vector<2x128xf32> to vector<2x32xf32>
    %768 = arith.negf %767 : vector<2x32xf32>
    %769 = math.exp %768 : vector<2x32xf32>
    %cst_157 = arith.constant 1.000000e+00 : f32
    %770 = vector.broadcast %cst_157 : f32 to vector<2x32xf32>
    %771 = arith.addf %770, %769 : vector<2x32xf32>
    %772 = arith.divf %770, %771 : vector<2x32xf32>
    %773 = arith.mulf %764, %716 : vector<2x32xf32>
    %774 = arith.mulf %758, %766 : vector<2x32xf32>
    %775 = arith.addf %773, %774 : vector<2x32xf32>
    %776 = math.tanh %775 : vector<2x32xf32>
    %777 = arith.mulf %772, %776 : vector<2x32xf32>
    %778 = vector.extract_strided_slice %752 {offsets = [0, 0], sizes = [2, 32], strides = [1, 1]} : vector<2x128xf32> to vector<2x32xf32>
    %779 = arith.negf %778 : vector<2x32xf32>
    %780 = math.exp %779 : vector<2x32xf32>
    %cst_158 = arith.constant 1.000000e+00 : f32
    %781 = vector.broadcast %cst_158 : f32 to vector<2x32xf32>
    %782 = arith.addf %781, %780 : vector<2x32xf32>
    %783 = arith.divf %781, %782 : vector<2x32xf32>
    %784 = vector.extract_strided_slice %752 {offsets = [0, 32], sizes = [2, 32], strides = [1, 1]} : vector<2x128xf32> to vector<2x32xf32>
    %785 = arith.negf %784 : vector<2x32xf32>
    %786 = math.exp %785 : vector<2x32xf32>
    %cst_159 = arith.constant 1.000000e+00 : f32
    %787 = vector.broadcast %cst_159 : f32 to vector<2x32xf32>
    %788 = arith.addf %787, %786 : vector<2x32xf32>
    %789 = arith.divf %787, %788 : vector<2x32xf32>
    %790 = vector.extract_strided_slice %752 {offsets = [0, 64], sizes = [2, 32], strides = [1, 1]} : vector<2x128xf32> to vector<2x32xf32>
    %791 = math.tanh %790 : vector<2x32xf32>
    %792 = vector.extract_strided_slice %752 {offsets = [0, 96], sizes = [2, 32], strides = [1, 1]} : vector<2x128xf32> to vector<2x32xf32>
    %793 = arith.negf %792 : vector<2x32xf32>
    %794 = math.exp %793 : vector<2x32xf32>
    %cst_160 = arith.constant 1.000000e+00 : f32
    %795 = vector.broadcast %cst_160 : f32 to vector<2x32xf32>
    %796 = arith.addf %795, %794 : vector<2x32xf32>
    %797 = arith.divf %795, %796 : vector<2x32xf32>
    %798 = arith.mulf %789, %741 : vector<2x32xf32>
    %799 = arith.mulf %783, %791 : vector<2x32xf32>
    %800 = arith.addf %798, %799 : vector<2x32xf32>
    %801 = math.tanh %800 : vector<2x32xf32>
    %802 = arith.mulf %797, %801 : vector<2x32xf32>
    %803 = tpu.concatenate %777, %802 in 1 : vector<2x32xf32>, vector<2x32xf32> -> vector<2x64xf32>
    %c0_161 = arith.constant 0 : index
    %c0_162 = arith.constant 0 : index
    %804 = vector.load %arg5[%c0_161, %c0_162] : memref<64x256xf32, #tpu.memory_space<vmem>>, vector<64x256xf32>
    %cst_163 = arith.constant dense<0.000000e+00> : vector<2x256xf32>
    %805 = tpu.matmul %803, %804, %cst_163 {dimension_numbers = #tpu.dot_dimension_numbers<[1], [0], [0], [1], [0, 0, 1, 1], [], []>} : vector<2x64xf32>, vector<64x256xf32>, vector<2x256xf32> -> vector<2x256xf32>
    %806 = vector.extract_strided_slice %805 {offsets = [0, 0], sizes = [2, 128], strides = [1, 1]} : vector<2x256xf32> to vector<2x128xf32>
    %807 = vector.extract_strided_slice %503 {offsets = [10, 0], sizes = [2, 128], strides = [1, 1]} : vector<16x256xf32> to vector<2x128xf32>
    %808 = arith.addf %806, %807 : vector<2x128xf32>
    %809 = vector.extract_strided_slice %805 {offsets = [0, 128], sizes = [2, 128], strides = [1, 1]} : vector<2x256xf32> to vector<2x128xf32>
    %810 = vector.extract_strided_slice %503 {offsets = [4, 128], sizes = [2, 128], strides = [1, 1]} : vector<16x256xf32> to vector<2x128xf32>
    %811 = arith.addf %809, %810 : vector<2x128xf32>
    %812 = vector.extract_strided_slice %808 {offsets = [0, 0], sizes = [2, 32], strides = [1, 1]} : vector<2x128xf32> to vector<2x32xf32>
    %813 = arith.negf %812 : vector<2x32xf32>
    %814 = math.exp %813 : vector<2x32xf32>
    %cst_164 = arith.constant 1.000000e+00 : f32
    %815 = vector.broadcast %cst_164 : f32 to vector<2x32xf32>
    %816 = arith.addf %815, %814 : vector<2x32xf32>
    %817 = arith.divf %815, %816 : vector<2x32xf32>
    %818 = vector.extract_strided_slice %808 {offsets = [0, 32], sizes = [2, 32], strides = [1, 1]} : vector<2x128xf32> to vector<2x32xf32>
    %819 = arith.negf %818 : vector<2x32xf32>
    %820 = math.exp %819 : vector<2x32xf32>
    %cst_165 = arith.constant 1.000000e+00 : f32
    %821 = vector.broadcast %cst_165 : f32 to vector<2x32xf32>
    %822 = arith.addf %821, %820 : vector<2x32xf32>
    %823 = arith.divf %821, %822 : vector<2x32xf32>
    %824 = vector.extract_strided_slice %808 {offsets = [0, 64], sizes = [2, 32], strides = [1, 1]} : vector<2x128xf32> to vector<2x32xf32>
    %825 = math.tanh %824 : vector<2x32xf32>
    %826 = vector.extract_strided_slice %808 {offsets = [0, 96], sizes = [2, 32], strides = [1, 1]} : vector<2x128xf32> to vector<2x32xf32>
    %827 = arith.negf %826 : vector<2x32xf32>
    %828 = math.exp %827 : vector<2x32xf32>
    %cst_166 = arith.constant 1.000000e+00 : f32
    %829 = vector.broadcast %cst_166 : f32 to vector<2x32xf32>
    %830 = arith.addf %829, %828 : vector<2x32xf32>
    %831 = arith.divf %829, %830 : vector<2x32xf32>
    %832 = arith.mulf %823, %775 : vector<2x32xf32>
    %833 = arith.mulf %817, %825 : vector<2x32xf32>
    %834 = arith.addf %832, %833 : vector<2x32xf32>
    %835 = math.tanh %834 : vector<2x32xf32>
    %836 = arith.mulf %831, %835 : vector<2x32xf32>
    %837 = vector.extract_strided_slice %811 {offsets = [0, 0], sizes = [2, 32], strides = [1, 1]} : vector<2x128xf32> to vector<2x32xf32>
    %838 = arith.negf %837 : vector<2x32xf32>
    %839 = math.exp %838 : vector<2x32xf32>
    %cst_167 = arith.constant 1.000000e+00 : f32
    %840 = vector.broadcast %cst_167 : f32 to vector<2x32xf32>
    %841 = arith.addf %840, %839 : vector<2x32xf32>
    %842 = arith.divf %840, %841 : vector<2x32xf32>
    %843 = vector.extract_strided_slice %811 {offsets = [0, 32], sizes = [2, 32], strides = [1, 1]} : vector<2x128xf32> to vector<2x32xf32>
    %844 = arith.negf %843 : vector<2x32xf32>
    %845 = math.exp %844 : vector<2x32xf32>
    %cst_168 = arith.constant 1.000000e+00 : f32
    %846 = vector.broadcast %cst_168 : f32 to vector<2x32xf32>
    %847 = arith.addf %846, %845 : vector<2x32xf32>
    %848 = arith.divf %846, %847 : vector<2x32xf32>
    %849 = vector.extract_strided_slice %811 {offsets = [0, 64], sizes = [2, 32], strides = [1, 1]} : vector<2x128xf32> to vector<2x32xf32>
    %850 = math.tanh %849 : vector<2x32xf32>
    %851 = vector.extract_strided_slice %811 {offsets = [0, 96], sizes = [2, 32], strides = [1, 1]} : vector<2x128xf32> to vector<2x32xf32>
    %852 = arith.negf %851 : vector<2x32xf32>
    %853 = math.exp %852 : vector<2x32xf32>
    %cst_169 = arith.constant 1.000000e+00 : f32
    %854 = vector.broadcast %cst_169 : f32 to vector<2x32xf32>
    %855 = arith.addf %854, %853 : vector<2x32xf32>
    %856 = arith.divf %854, %855 : vector<2x32xf32>
    %857 = arith.mulf %848, %800 : vector<2x32xf32>
    %858 = arith.mulf %842, %850 : vector<2x32xf32>
    %859 = arith.addf %857, %858 : vector<2x32xf32>
    %860 = math.tanh %859 : vector<2x32xf32>
    %861 = arith.mulf %856, %860 : vector<2x32xf32>
    %862 = tpu.concatenate %836, %861 in 1 : vector<2x32xf32>, vector<2x32xf32> -> vector<2x64xf32>
    %c0_170 = arith.constant 0 : index
    %c0_171 = arith.constant 0 : index
    %863 = vector.load %arg5[%c0_170, %c0_171] : memref<64x256xf32, #tpu.memory_space<vmem>>, vector<64x256xf32>
    %cst_172 = arith.constant dense<0.000000e+00> : vector<2x256xf32>
    %864 = tpu.matmul %862, %863, %cst_172 {dimension_numbers = #tpu.dot_dimension_numbers<[1], [0], [0], [1], [0, 0, 1, 1], [], []>} : vector<2x64xf32>, vector<64x256xf32>, vector<2x256xf32> -> vector<2x256xf32>
    %865 = vector.extract_strided_slice %864 {offsets = [0, 0], sizes = [2, 128], strides = [1, 1]} : vector<2x256xf32> to vector<2x128xf32>
    %866 = vector.extract_strided_slice %503 {offsets = [12, 0], sizes = [2, 128], strides = [1, 1]} : vector<16x256xf32> to vector<2x128xf32>
    %867 = arith.addf %865, %866 : vector<2x128xf32>
    %868 = vector.extract_strided_slice %864 {offsets = [0, 128], sizes = [2, 128], strides = [1, 1]} : vector<2x256xf32> to vector<2x128xf32>
    %869 = vector.extract_strided_slice %503 {offsets = [2, 128], sizes = [2, 128], strides = [1, 1]} : vector<16x256xf32> to vector<2x128xf32>
    %870 = arith.addf %868, %869 : vector<2x128xf32>
    %871 = vector.extract_strided_slice %867 {offsets = [0, 0], sizes = [2, 32], strides = [1, 1]} : vector<2x128xf32> to vector<2x32xf32>
    %872 = arith.negf %871 : vector<2x32xf32>
    %873 = math.exp %872 : vector<2x32xf32>
    %cst_173 = arith.constant 1.000000e+00 : f32
    %874 = vector.broadcast %cst_173 : f32 to vector<2x32xf32>
    %875 = arith.addf %874, %873 : vector<2x32xf32>
    %876 = arith.divf %874, %875 : vector<2x32xf32>
    %877 = vector.extract_strided_slice %867 {offsets = [0, 32], sizes = [2, 32], strides = [1, 1]} : vector<2x128xf32> to vector<2x32xf32>
    %878 = arith.negf %877 : vector<2x32xf32>
    %879 = math.exp %878 : vector<2x32xf32>
    %cst_174 = arith.constant 1.000000e+00 : f32
    %880 = vector.broadcast %cst_174 : f32 to vector<2x32xf32>
    %881 = arith.addf %880, %879 : vector<2x32xf32>
    %882 = arith.divf %880, %881 : vector<2x32xf32>
    %883 = vector.extract_strided_slice %867 {offsets = [0, 64], sizes = [2, 32], strides = [1, 1]} : vector<2x128xf32> to vector<2x32xf32>
    %884 = math.tanh %883 : vector<2x32xf32>
    %885 = vector.extract_strided_slice %867 {offsets = [0, 96], sizes = [2, 32], strides = [1, 1]} : vector<2x128xf32> to vector<2x32xf32>
    %886 = arith.negf %885 : vector<2x32xf32>
    %887 = math.exp %886 : vector<2x32xf32>
    %cst_175 = arith.constant 1.000000e+00 : f32
    %888 = vector.broadcast %cst_175 : f32 to vector<2x32xf32>
    %889 = arith.addf %888, %887 : vector<2x32xf32>
    %890 = arith.divf %888, %889 : vector<2x32xf32>
    %891 = arith.mulf %882, %834 : vector<2x32xf32>
    %892 = arith.mulf %876, %884 : vector<2x32xf32>
    %893 = arith.addf %891, %892 : vector<2x32xf32>
    %894 = math.tanh %893 : vector<2x32xf32>
    %895 = arith.mulf %890, %894 : vector<2x32xf32>
    %896 = vector.extract_strided_slice %870 {offsets = [0, 0], sizes = [2, 32], strides = [1, 1]} : vector<2x128xf32> to vector<2x32xf32>
    %897 = arith.negf %896 : vector<2x32xf32>
    %898 = math.exp %897 : vector<2x32xf32>
    %cst_176 = arith.constant 1.000000e+00 : f32
    %899 = vector.broadcast %cst_176 : f32 to vector<2x32xf32>
    %900 = arith.addf %899, %898 : vector<2x32xf32>
    %901 = arith.divf %899, %900 : vector<2x32xf32>
    %902 = vector.extract_strided_slice %870 {offsets = [0, 32], sizes = [2, 32], strides = [1, 1]} : vector<2x128xf32> to vector<2x32xf32>
    %903 = arith.negf %902 : vector<2x32xf32>
    %904 = math.exp %903 : vector<2x32xf32>
    %cst_177 = arith.constant 1.000000e+00 : f32
    %905 = vector.broadcast %cst_177 : f32 to vector<2x32xf32>
    %906 = arith.addf %905, %904 : vector<2x32xf32>
    %907 = arith.divf %905, %906 : vector<2x32xf32>
    %908 = vector.extract_strided_slice %870 {offsets = [0, 64], sizes = [2, 32], strides = [1, 1]} : vector<2x128xf32> to vector<2x32xf32>
    %909 = math.tanh %908 : vector<2x32xf32>
    %910 = vector.extract_strided_slice %870 {offsets = [0, 96], sizes = [2, 32], strides = [1, 1]} : vector<2x128xf32> to vector<2x32xf32>
    %911 = arith.negf %910 : vector<2x32xf32>
    %912 = math.exp %911 : vector<2x32xf32>
    %cst_178 = arith.constant 1.000000e+00 : f32
    %913 = vector.broadcast %cst_178 : f32 to vector<2x32xf32>
    %914 = arith.addf %913, %912 : vector<2x32xf32>
    %915 = arith.divf %913, %914 : vector<2x32xf32>
    %916 = arith.mulf %907, %859 : vector<2x32xf32>
    %917 = arith.mulf %901, %909 : vector<2x32xf32>
    %918 = arith.addf %916, %917 : vector<2x32xf32>
    %919 = math.tanh %918 : vector<2x32xf32>
    %920 = arith.mulf %915, %919 : vector<2x32xf32>
    %921 = tpu.concatenate %895, %920 in 1 : vector<2x32xf32>, vector<2x32xf32> -> vector<2x64xf32>
    %c0_179 = arith.constant 0 : index
    %c0_180 = arith.constant 0 : index
    %922 = vector.load %arg5[%c0_179, %c0_180] : memref<64x256xf32, #tpu.memory_space<vmem>>, vector<64x256xf32>
    %cst_181 = arith.constant dense<0.000000e+00> : vector<2x256xf32>
    %923 = tpu.matmul %921, %922, %cst_181 {dimension_numbers = #tpu.dot_dimension_numbers<[1], [0], [0], [1], [0, 0, 1, 1], [], []>} : vector<2x64xf32>, vector<64x256xf32>, vector<2x256xf32> -> vector<2x256xf32>
    %924 = vector.extract_strided_slice %923 {offsets = [0, 0], sizes = [2, 128], strides = [1, 1]} : vector<2x256xf32> to vector<2x128xf32>
    %925 = vector.extract_strided_slice %503 {offsets = [14, 0], sizes = [2, 128], strides = [1, 1]} : vector<16x256xf32> to vector<2x128xf32>
    %926 = arith.addf %924, %925 : vector<2x128xf32>
    %927 = vector.extract_strided_slice %926 {offsets = [0, 0], sizes = [2, 32], strides = [1, 1]} : vector<2x128xf32> to vector<2x32xf32>
    %928 = arith.negf %927 : vector<2x32xf32>
    %929 = math.exp %928 : vector<2x32xf32>
    %cst_182 = arith.constant 1.000000e+00 : f32
    %930 = vector.broadcast %cst_182 : f32 to vector<2x32xf32>
    %931 = arith.addf %930, %929 : vector<2x32xf32>
    %932 = arith.divf %930, %931 : vector<2x32xf32>
    %933 = vector.extract_strided_slice %926 {offsets = [0, 32], sizes = [2, 32], strides = [1, 1]} : vector<2x128xf32> to vector<2x32xf32>
    %934 = arith.negf %933 : vector<2x32xf32>
    %935 = math.exp %934 : vector<2x32xf32>
    %cst_183 = arith.constant 1.000000e+00 : f32
    %936 = vector.broadcast %cst_183 : f32 to vector<2x32xf32>
    %937 = arith.addf %936, %935 : vector<2x32xf32>
    %938 = arith.divf %936, %937 : vector<2x32xf32>
    %939 = vector.extract_strided_slice %926 {offsets = [0, 64], sizes = [2, 32], strides = [1, 1]} : vector<2x128xf32> to vector<2x32xf32>
    %940 = math.tanh %939 : vector<2x32xf32>
    %941 = vector.extract_strided_slice %926 {offsets = [0, 96], sizes = [2, 32], strides = [1, 1]} : vector<2x128xf32> to vector<2x32xf32>
    %942 = arith.negf %941 : vector<2x32xf32>
    %943 = math.exp %942 : vector<2x32xf32>
    %cst_184 = arith.constant 1.000000e+00 : f32
    %944 = vector.broadcast %cst_184 : f32 to vector<2x32xf32>
    %945 = arith.addf %944, %943 : vector<2x32xf32>
    %946 = arith.divf %944, %945 : vector<2x32xf32>
    %947 = arith.mulf %938, %893 : vector<2x32xf32>
    %948 = arith.mulf %932, %940 : vector<2x32xf32>
    %949 = arith.addf %947, %948 : vector<2x32xf32>
    %950 = math.tanh %949 : vector<2x32xf32>
    %951 = arith.mulf %946, %950 : vector<2x32xf32>
    %952 = tpu.concatenate %951, %566 in 1 : vector<2x32xf32>, vector<2x32xf32> -> vector<2x64xf32>
    %c0_185 = arith.constant 0 : index
    %c0_186 = arith.constant 0 : index
    %953 = vector.load %arg7[%c0_185, %c0_186] : memref<64x32xf32, #tpu.memory_space<vmem>>, vector<64x32xf32>
    %cst_187 = arith.constant dense<0.000000e+00> : vector<2x32xf32>
    %954 = tpu.matmul %952, %953, %cst_187 {dimension_numbers = #tpu.dot_dimension_numbers<[1], [0], [0], [1], [0, 0, 1, 1], [], []>} : vector<2x64xf32>, vector<64x32xf32>, vector<2x32xf32> -> vector<2x32xf32>
    %c0_188 = arith.constant 0 : index
    %c0_189 = arith.constant 0 : index
    %955 = vector.load %arg8[%c0_188, %c0_189] : memref<1x32xf32, #tpu.memory_space<vmem>>, vector<1x32xf32>
    %956 = vector.broadcast %955 : vector<1x32xf32> to vector<2x32xf32>
    %957 = arith.addf %954, %956 : vector<2x32xf32>
    %958 = vector.extract_strided_slice %957 {offsets = [0, 0], sizes = [2, 16], strides = [1, 1]} : vector<2x32xf32> to vector<2x16xf32>
    %959 = vector.extract_strided_slice %957 {offsets = [0, 16], sizes = [2, 16], strides = [1, 1]} : vector<2x32xf32> to vector<2x16xf32>
    %cst_190 = arith.constant 0.000000e+00 : f32
    %960 = vector.broadcast %cst_190 : f32 to vector<2x16xf32>
    %961 = arith.maximumf %959, %960 : vector<2x16xf32>
    %962 = math.absf %959 : vector<2x16xf32>
    %cst_191 = arith.constant 0.000000e+00 : f32
    %963 = vector.broadcast %cst_191 : f32 to vector<2x16xf32>
    %964 = arith.subf %963, %962 : vector<2x16xf32>
    %965 = math.exp %964 : vector<2x16xf32>
    %cst_192 = arith.constant 1.000000e+00 : f32
    %966 = vector.broadcast %cst_192 : f32 to vector<2x16xf32>
    %967 = arith.addf %965, %966 : vector<2x16xf32>
    %968 = math.log %967 : vector<2x16xf32>
    %969 = arith.addf %961, %968 : vector<2x16xf32>
    %c0_193 = arith.constant 0 : index
    %c0_194 = arith.constant 0 : index
    %970 = vector.load %arg9[%c0_193, %c0_194] : memref<2x16xf32, #tpu.memory_space<vmem>>, vector<2x16xf32>
    %971 = arith.mulf %970, %969 : vector<2x16xf32>
    %972 = arith.addf %958, %971 : vector<2x16xf32>
    %973 = tpu.concatenate %958, %969, %972 in 1 : vector<2x16xf32>, vector<2x16xf32>, vector<2x16xf32> -> vector<2x48xf32>
    %c0_195 = arith.constant 0 : index
    %c0_196 = arith.constant 0 : index
    %974 = vector.load %arg10[%c0_195, %c0_196] : memref<2x48xf32, #tpu.memory_space<vmem>>, vector<2x48xf32>
    tpu.vector_store %arg10[%c0_195, %c0_196], %973 {strides = array<i32>} : memref<2x48xf32, #tpu.memory_space<vmem>>, vector<2x48xf32>,
    return
  }
}

</mosaic_0001>

<bundles_post_ra>
// kernel: tpu_custom_call.1
= control target key start
LH: loop header
LB: loop body
LE: loop exit
PB: predicated region body
PF: predicated region fallthrough
CT: control target
= control target key end

     0   :  { %15 = vsyncpa [#allocation4], 0  ;;  %s4085_s0 = inlined_call_operand.vmem [shape: f32[16,16], index: 0, kind: input, shape index: {}]   ;;  %s4086_s1 = inlined_call_operand.vmem [shape: f32[16,256], index: 1, kind: input, shape index: {}]   ;;  %s4087_s2 = inlined_call_operand.hbm [shape: f32[64,256], index: 2, kind: input, shape index: {}]   ;;  %s4088_s3 = inlined_call_operand.vmem [shape: f32[1,256], index: 3, kind: input, shape index: {}]   ;;  %s4089_s4 = inlined_call_operand.hbm [shape: f32[64,256], index: 4, kind: input, shape index: {}]   ;;  %s4090_s5 = inlined_call_operand.hbm [shape: f32[64,256], index: 5, kind: input, shape index: {}]   ;;  %s4091_s6 = inlined_call_operand.vmem [shape: f32[1,256], index: 6, kind: input, shape index: {}]   ;;  %s4092_s7 = inlined_call_operand.vmem [shape: f32[64,32], index: 7, kind: input, shape index: {}]   ;;  %s4093_s8 = inlined_call_operand.vmem [shape: f32[1,32], index: 8, kind: input, shape index: {}]   ;;  %s4094_s9 = inlined_call_operand.vmem [shape: f32[2,16], index: 9, kind: input, shape index: {}]   ;;  %s4095_s10 = inlined_call_operand.hbm [shape: f32[2,48], index: 10, kind: output, shape index: {}]  }
   0x1   :  { %16 = vsyncpa [#allocation7], 0 }
   0x2   :  { %17 = vsyncpa [#allocation5], 0  ;;  %s3459_s13 = smov [#allocation6]   ;;  %s3460_s15 = smov [#allocation3]  }
   0x3   :  { %s41_s14 = sshll.u32 %s3459_s13, 4  ;;  %s27_s16 = sshll.u32 %s3460_s15, 4  ;;  %s42_s14 = int_to_ptr.vmem [resolvable:$true] %s41_s14  ;;  %s3526_s16 = int_to_ptr.vmem [resolvable:$true] %s27_s16 }
   0x4   :  { %s3365_s19 = scalar_lea.hbm %s4089_s4, 2048 }
   0x5   :  { %p3366_p0 = scmp.ne.s32.totalorder %s4089_s4, %s3365_s19  ;;  %p3369_p1 = scmp.lt.u32.totalorder %s3365_s19, %s4089_s4 }
   0x7   :  { %p3371_p2 = pnand %p3369_p1, %p3366_p0 }
   0x9   :  { %3374 = shalt.err (!%p3371_p2)
}
   0xa   :  { %s3375_s24 = scalar_lea.vmem %s42_s14, 2048  ;;  %p3380_p4 = scmp.lt.s32.totalorder %s42_s14, %s42_s14 }
   0xb   :  { %p3376_p3 = scmp.ne.s32.totalorder %s42_s14, %s3375_s24  ;;  %p3381_p5 = scmp.lt.s32.totalorder %s3375_s24, %s3375_s24 }
   0xd   :  { %p3382_p6 = por %p3381_p5, %p3380_p4 }
   0xf   :  { %p3383_p7 = pnand %p3382_p6, %p3376_p3 }
  0x11   :  { %3386 = shalt.err (!%p3383_p7)
}
  0x12   :  { %s3461_s25 = smov 256   ;;  %s3462_s26 = smov 16  }
  0x13   :  { %47 = dma.hbm_to_vmem [thread:$0]  %s4089_s4, 2048, %s42_s14, [#allocation7], %s3461_s25, %s3461_s25, %s3462_s26  }
  0x14   :  { %s3387_s11 = scalar_lea.hbm %s4087_s2, 2048 }
  0x15   :  { %p3388_p8 = scmp.ne.s32.totalorder %s4087_s2, %s3387_s11  ;;  %p3391_p9 = scmp.lt.u32.totalorder %s3387_s11, %s4087_s2 }
  0x17   :  { %p3393_p10 = pnand %p3391_p9, %p3388_p8 }
  0x19   :  { %3396 = shalt.err (!%p3393_p10)
}
  0x1a   :  { %s3397_s18 = scalar_lea.vmem %s3526_s16, 2048  ;;  %p3402_p12 = scmp.lt.s32.totalorder %s3526_s16, %s3526_s16 }
  0x1b   :  { %p3398_p11 = scmp.ne.s32.totalorder %s3526_s16, %s3397_s18  ;;  %p3403_p13 = scmp.lt.s32.totalorder %s3397_s18, %s3397_s18 }
  0x1d   :  { %p3404_p0 = por %p3403_p13, %p3402_p12 }
  0x1f   :  { %p3405_p1 = pnand %p3404_p0, %p3398_p11 }
  0x21   :  { %3408 = shalt.err (!%p3405_p1)
}
  0x22   :  { %33 = dma.hbm_to_vmem [thread:$0]  %s4087_s2, 2048, %s3526_s16, [#allocation4], %s3461_s25, %s3461_s25, %s3462_s26  }
  0x23   :  { %s3463_s19 = smov [#allocation8]   ;;  %s3409_s23 = scalar_lea.hbm %s4090_s5, 2048 }
  0x24   :  { %s53_s20 = sshll.u32 %s3463_s19, 4  ;;  %p3410_p2 = scmp.ne.s32.totalorder %s4090_s5, %s3409_s23  ;;  %s54_s20 = int_to_ptr.vmem [resolvable:$true] %s53_s20 }
  0x25   :  { %p3413_p3 = scmp.lt.u32.totalorder %s3409_s23, %s4090_s5 }
  0x27   :  { %p3415_p4 = pnand %p3413_p3, %p3410_p2 }
  0x29   :  { %3418 = shalt.err (!%p3415_p4)
}
  0x2a   :  { %s3419_s30 = scalar_lea.vmem %s54_s20, 2048  ;;  %p3424_p6 = scmp.lt.s32.totalorder %s54_s20, %s54_s20 }
  0x2b   :  { %p3420_p5 = scmp.ne.s32.totalorder %s54_s20, %s3419_s30  ;;  %p3425_p7 = scmp.lt.s32.totalorder %s3419_s30, %s3419_s30 }
  0x2d   :  { %p3426_p8 = por %p3425_p7, %p3424_p6 }
  0x2f   :  { %p3427_p9 = pnand %p3426_p8, %p3420_p5 }
  0x31   :  { %3430 = shalt.err (!%p3427_p9)
}
  0x32   :  { %59 = dma.hbm_to_vmem [thread:$0]  %s4090_s5, 2048, %s54_s20, [#allocation7], %s3461_s25, %s3461_s25, %s3462_s26  }
  0x33   :  { %3453 = dma.done.wait [#allocation4], 2048  }
  0x34   :  { %3454 = vsyncadd [#allocation4], 4294965248 }
  0x35   :  { %3455 = dma.done.wait [#allocation7], 4096  }
  0x36   :  { %3456 = vsyncadd [#allocation7], 4294963200  ;;  %v3464_v0 = vmov 0.0   ;;  %v180_v1 = vld [vmem:[#allocation3 + $0x8] sm:$0xff]  ;;  %v182_v2 = vld [vmem:[#allocation3 + $0x18] sm:$0xff]  ;;  %vm95_vm0 = vcmask 130048   ;;  %v85_v33 = vlaneseq }
  0x37   :  { %166 = vmatprep.mubr.f32.mxu0 %v3464_v0  ;;  %263 = vmatprep.mubr.f32.mxu1 %v3464_v0  ;;  %v179_v3 = vld [vmem:[#allocation3] sm:$0xff]  ;;  %v3580_v4 = vpack.c.bf16 %v182_v2, %v180_v1  ;;  %v181_v5 = vld [vmem:[#allocation3 + $0x10] sm:$0xff]  ;;  %v80_v6 = vld [vmem:[%s4086_s1 + $0x8] sm:$0xff]  ;;  %s3466_s20 = smov 32   ;;  %vm327_vm1 = vcmask 254976   ;;  %vm333_vm2 = vcmask 517376  }
  0x38   :  { %v82_v7 = vld [vmem:[%s4086_s1 + $0x18] sm:$0xff]  ;;  %v3588_v8 = vpack.c.bf16 %v181_v5, %v179_v3  ;;  %v186_v11 = vld [vmem:[#allocation3 + $0x38] sm:$0xff]  ;;  %v79_v12 = vld [vmem:[%s4086_s1] sm:$0xff]  ;;  %v3646_v34 = vshrl.u32 %v85_v33, 7  ;;  %vm335_vm3 = vcmask 261120   ;;  %vm195_vm4 = vcmask 523264  }
  0x39   :  { %v2813_v9 = vpack.c.bf16 %v82_v7, %v80_v6  ;;  %v184_v10 = vld [vmem:[#allocation3 + $0x28] sm:$0xff]  ;;  %2818 = vmatprep.subr.bf16.mxu1 %v3580_v4  ;;  %v81_v14 = vld [vmem:[%s4086_s1 + $0x10] sm:$0xff]  ;;  %v185_v16 = vld [vmem:[#allocation3 + $0x30] sm:$0xff]  ;;  %vm3468_vm5 = vmmov 0   ;;  %s3469_s18 = smov 112   ;;  %vm2716_vm6 = vcmask 386048  }
  0x3a   :  { %v3594_v13 = vpack.c.bf16 %v186_v11, %v184_v10  ;;  %v183_v15 = vld [vmem:[#allocation3 + $0x20] sm:$0xff]  ;;  %2820 = vmatpush1.bf16.msra.mxu1 %v3588_v8  ;;  %v2815_v17 = vpack.c.bf16 %v81_v14, %v79_v12  ;;  %v188_v19 = vld [vmem:[#allocation3 + $0x48] sm:$0xff]  ;;  %v190_v20 = vld [vmem:[#allocation3 + $0x58] sm:$0xff]  ;;  %v91_v35 = vsub.s32 1, %v3646_v34  ;;  %v87_v38 = vsub.s32 0, %v3646_v34 }
  0x3b   :  { %2814 = vmatprep.subr.bf16.mxu0 %v2813_v9  ;;  %v3600_v18 = vpack.c.bf16 %v185_v16, %v183_v15  ;;  %v3603_v21 = vpack.c.bf16 %v190_v20, %v188_v19  ;;  %v187_v22 = vld [vmem:[#allocation3 + $0x40] sm:$0xff]  ;;  %v189_v23 = vld [vmem:[#allocation3 + $0x50] sm:$0xff]  ;;  %v192_v25 = vld [vmem:[#allocation3 + $0x68] sm:$0xff] }
  0x3c   :  { %2822 = vmatprep.subr.bf16.mxu1 %v3594_v13  ;;  %2816 = vmatpush1.bf16.msra.mxu0 %v2815_v17  ;;  %v77_v24 = vld [vmem:[%s4085_s0] sm:$0xff]  ;;  %v194_v26 = vld [vmem:[#allocation3 + $0x78] sm:$0xff]  ;;  %v3610_v27 = vpack.c.bf16 %v189_v23, %v187_v22  ;;  %v191_v29 = vld [vmem:[#allocation3 + $0x60] sm:$0xff] }
  0x3d   :  { %2834 = vmatprep.subr.bf16.mxu0 %v3580_v4  ;;  %v3614_v28 = vpack.c.bf16 %v194_v26, %v192_v25  ;;  %v193_v30 = vld [vmem:[#allocation3 + $0x70] sm:$0xff]  ;;  %v78_v31 = vld [vmem:[%s4085_s0 + $0x8] sm:$0xff] }
  0x3e   :  { %2824 = vmatpush1.bf16.msra.mxu1 %v3600_v18  ;;  %v3623_v32 = vpack.c.bf16 %v193_v30, %v191_v29  ;;  %v83_v36 = vld [vmem:[%s4088_s3] sm:$0x3]  ;;  %s3465_s3 = smov 64  }
  0x3f   :  { %2734 = vmatmul.mubr.msk.f32.vlgmr.msra.gmra.mrb[0].mxu0 %vm95_vm0, %v77_v24  ;;  %2826 = vmatprep.subr.bf16.mxu1 %v3603_v21  ;;  %v92_v37 = vrot.slane %v83_v36, %v91_v35  ;;  %v88_v42 = vrot.slane %v83_v36, %v87_v38 }
  0x40   :  { %172 = vmatprep.mubr.f32.mxu0 %v3464_v0  ;;  %2836 = vmatpush1.bf16.msra.mxu0 %v3588_v8 }
  0x41   :  { %2838 = vmatprep.subr.bf16.mxu0 %v3594_v13 }
  0x42   :  { %2828 = vmatpush1.bf16.msra.mxu1 %v3610_v27 }
  0x43   :  { %2735 = vmatmul.mubr.msk.f32.gmra.mrb[2].mxu0 %vm95_vm0, %v78_v31  ;;  %2830 = vmatprep.subr.bf16.mxu1 %v3614_v28 }
  0x44   :  { %2840 = vmatpush1.bf16.msra.mxu0 %v3600_v18  ;;  %420 = vmatprep.mubr.f32.mxu0 %v3464_v0 }
  0x45   :  { %2842 = vmatprep.subr.bf16.mxu0 %v3603_v21 }
  0x46   :  { %2832 = vmatpush1.bf16.msra.mxu1 %v3623_v32 }
  0x47   :  { %2850 = vmatprep.subr.bf16.mxu1 %v3580_v4 }
  0x48   :  { %2844 = vmatpush1.bf16.msra.mxu0 %v3610_v27 }
  0x49   :  { %264 = vmatmul.mubr.f32.vlgmr.msra.gmra.mrb[0].mxu1 %v3464_v0  ;;  %2846 = vmatprep.subr.bf16.mxu0 %v3614_v28 }
  0x4a   :  { %2852 = vmatpush1.bf16.msra.mxu1 %v3588_v8  ;;  %576 = vmatprep.mubr.f32.mxu1 %v3464_v0 }
  0x4b   :  { %2854 = vmatprep.subr.bf16.mxu1 %v3594_v13 }
  0x4c   :  { %2848 = vmatpush1.bf16.msra.mxu0 %v3623_v32 }
  0x4d   :  { %2866 = vmatprep.subr.bf16.mxu0 %v3580_v4 }
  0x4e   :  { %2856 = vmatpush1.bf16.msra.mxu1 %v3600_v18 }
  0x4f   :  { %2858 = vmatprep.subr.bf16.mxu1 %v3603_v21 }
  0x52   :  { %2860 = vmatpush1.bf16.msra.mxu1 %v3610_v27 }
  0x53   :  { %2862 = vmatprep.subr.bf16.mxu1 %v3614_v28 }
  0x56   :  { %2864 = vmatpush1.bf16.msra.mxu1 %v3623_v32 }
  0x57   :  { %2882 = vmatprep.subr.bf16.mxu1 %v3580_v4 }
 0x112   :  { %v168_v39 = vpop.f32.mrb[0].mxu0 }
 0x113   :  { %v170_v40 = vpop.f32.mrb[1].mxu0  ;;  %v3663_v47 = vadd.f32 %v168_v39, %v88_v42 }
 0x114   :  { %v3655_v41 = vadd.f32 %v170_v40, %v92_v37 }
 0x115   :  { %v428_v24 = vrot.slane %v3663_v47, 2 }
 0x116   :  { %v174_v43 = vpop.f32.mrb[2].mxu0 }
 0x117   :  { %v3659_v44 = vadd.f32 %v174_v43, %v88_v42  ;;  %v176_v45 = vpop.f32.mrb[3].mxu0 }
 0x118   :  { %v3661_v46 = vadd.f32 %v176_v45, %v92_v37 }
 0x11a   :  { %v272_v48 = vrot.slane %v3661_v46, 6  ;;  %v431_v26 = vrot.slane %v3661_v46, 4 }
 0x11c   :  { %v265_v49 = vpop.f32.mrb[0].mxu1 }
 0x11d   :  { %v270_v50 = vadd.f32 %v265_v49, %v3663_v47  ;;  %v267_v51 = vpop.f32.mrb[1].mxu1 }
 0x11e   :  { %v274_v52 = vadd.f32 %v272_v48, %v267_v51 }
 0x11f   :  { %3113 = vtanh.f32 %v270_v50  ;;  %v2736_v55 = vmul.f32 -1.442695, %v270_v50 }
 0x120   :  { %3115 = vtanh.f32 %v274_v52  ;;  %v2737_v56 = vmul.f32 -1.442695, %v274_v52 }
 0x121   :  { %3117 = vpow2.f32 %v2736_v55 }
 0x122   :  { %3119 = vpow2.f32 %v2737_v56 }
 0x129   :  { %v3114_v53 = vpop.eup %3113 }
 0x12a   :  { %284 = vrot.lane.b32.xlu0 %v3114_v53, %s3465_s3  ;;  %v3116_v54 = vpop.eup %3115 }
 0x12b   :  { %v3118_v57 = vpop.eup %3117 }
 0x12c   :  { %v278_v58 = vadd.f32 1.0, %v3118_v57  ;;  %v3120_v59 = vpop.eup %3119 }
 0x12d   :  { %v302_v60 = vadd.f32 1.0, %v3120_v59 }
 0x12e   :  { %308 = vrot.lane.b32.xlu0 %v3116_v54, %s3465_s3  ;;  %3121 = vrcp.f32 %v278_v58 }
 0x12f   :  { %3123 = vrcp.f32 %v302_v60 }
 0x138   :  { %v3122_v61 = vpop.eup %3121 }
 0x139   :  { %v3124_v1 = vpop.eup %3123  ;;  %v282_v5 = vmul.f32 0.0, %v3122_v61 }
 0x13a   :  { %v306_v9 = vmul.f32 0.0, %v3124_v1 }
 0x19c   :  { %v285_v62 = vpop.permute.xlu0 %284 }
 0x19d   :  { %v287_v63 = vmul.f32 %v3122_v61, %v285_v62 }
 0x19f   :  { %289 = vrot.lane.b32.xlu1 %v287_v63, %s3466_s20 }
 0x1a0   :  { %v309_v2 = vpop.permute.xlu0 %308 }
 0x1a1   :  { %v311_v3 = vmul.f32 %v3124_v1, %v309_v2 }
 0x1a3   :  { %313 = vrot.lane.b32.xlu1 %v311_v3, %s3466_s20 }
 0x211   :  { %v290_v6 = vpop.permute.xlu1 %289 }
 0x212   :  { %v3671_v7 = vadd.f32 %v290_v6, %v282_v5 }
 0x214   :  { %3125 = vtanh.f32 %v3671_v7 }
 0x215   :  { %v314_v10 = vpop.permute.xlu1 %313 }
 0x216   :  { %v3674_v11 = vadd.f32 %v314_v10, %v306_v9  ;;  %v586_v10 = vrot.slane %v3661_v46, 2 }
 0x218   :  { %3127 = vtanh.f32 %v3674_v11 }
 0x21e   :  { %v3126_v12 = vpop.eup %3125 }
 0x21f   :  { %295 = vrot.lane.b32.xlu0 %v3126_v12, %s3465_s3 }
 0x222   :  { %v3128_v14 = vpop.eup %3127 }
 0x223   :  { %319 = vrot.lane.b32.xlu1 %v3128_v14, %s3465_s3 }
 0x291   :  { %v296_v15 = vpop.permute.xlu0 %295 }
 0x292   :  { %v298_v16 = vmul.f32 %v3122_v61, %v296_v15 }
 0x294   :  { %324 = vrot.lane.b32.xlu0 %v298_v16, %s3466_s20 }
 0x295   :  { %v320_v17 = vpop.permute.xlu1 %319 }
 0x296   :  { %v322_v19 = vmul.f32 %v3124_v1, %v320_v17 }
 0x298   :  { %330 = vrot.lane.b32.xlu1 %v322_v19, %s3465_s3 }
 0x306   :  { %v325_v20 = vpop.permute.xlu0 %324 }
 0x307   :  { %328 = vst.msk [vmem:[#allocation2] sm:$0x3] %vm327_vm1, %v325_v20 }
 0x30a   :  { %v331_v22 = vpop.permute.xlu1 %330 }
 0x30b   :  { %334 = vst.msk [vmem:[#allocation2 + $0xe] sm:$0x3] %vm333_vm2, %v331_v22  ;;  %v336_v23 = vsel %vm335_vm3, %v325_v20, %v331_v22 }
 0x30c   :  { %2738 = vmatmul.mubr.msk.f32.vlgmr.msra.gmra.mrb[4].mxu0 %vm195_vm4, %v336_v23 }
 0x30d   :  { %2868 = vmatpush1.bf16.msra.mxu0 %v3588_v8  ;;  %731 = vmatprep.mubr.f32.mxu0 %v3464_v0 }
 0x30e   :  { %2870 = vmatprep.subr.bf16.mxu0 %v3594_v13 }
 0x311   :  { %2872 = vmatpush1.bf16.msra.mxu0 %v3600_v18 }
 0x312   :  { %2874 = vmatprep.subr.bf16.mxu0 %v3603_v21 }
 0x315   :  { %2876 = vmatpush1.bf16.msra.mxu0 %v3610_v27 }
 0x316   :  { %2878 = vmatprep.subr.bf16.mxu0 %v3614_v28 }
 0x319   :  { %2880 = vmatpush1.bf16.msra.mxu0 %v3623_v32 }
 0x31a   :  { %2898 = vmatprep.subr.bf16.mxu0 %v3580_v4 }
 0x3df   :  { %v422_v25 = vpop.f32.mrb[4].mxu0 }
 0x3e0   :  { %v430_v29 = vadd.f32 %v428_v24, %v422_v25  ;;  %v424_v30 = vpop.f32.mrb[5].mxu0 }
 0x3e1   :  { %v433_v31 = vadd.f32 %v431_v26, %v424_v30 }
 0x3e2   :  { %3129 = vtanh.f32 %v430_v29  ;;  %v2739_v37 = vmul.f32 -1.442695, %v430_v29 }
 0x3e3   :  { %3131 = vtanh.f32 %v433_v31  ;;  %v2740_v39 = vmul.f32 -1.442695, %v433_v31 }
 0x3e4   :  { %3133 = vpow2.f32 %v2739_v37 }
 0x3e5   :  { %3135 = vpow2.f32 %v2740_v39 }
 0x3ec   :  { %v3130_v33 = vpop.eup %3129 }
 0x3ed   :  { %v3132_v36 = vpop.eup %3131  ;;  %443 = vrot.lane.b32.xlu0 %v3130_v33, %s3465_s3 }
 0x3ee   :  { %467 = vrot.lane.b32.xlu1 %v3132_v36, %s3465_s3  ;;  %v3134_v40 = vpop.eup %3133 }
 0x3ef   :  { %v3136_v42 = vpop.eup %3135  ;;  %v437_v43 = vadd.f32 1.0, %v3134_v40 }
 0x3f0   :  { %v461_v45 = vadd.f32 1.0, %v3136_v42 }
 0x3f1   :  { %3137 = vrcp.f32 %v437_v43 }
 0x3f2   :  { %3139 = vrcp.f32 %v461_v45 }
 0x3fb   :  { %v3138_v48 = vpop.eup %3137 }
 0x3fc   :  { %v3140_v50 = vpop.eup %3139  ;;  %v441_v54 = vmul.f32 %v3138_v48, %v3671_v7  ;;  %v583_v7 = vrot.slane %v3663_v47, 4 }
 0x3fd   :  { %v465_v56 = vmul.f32 %v3140_v50, %v3674_v11 }
 0x45f   :  { %v444_v49 = vpop.permute.xlu0 %443 }
 0x460   :  { %v446_v51 = vmul.f32 %v3138_v48, %v444_v49  ;;  %v468_v52 = vpop.permute.xlu1 %467 }
 0x461   :  { %v470_v53 = vmul.f32 %v3140_v50, %v468_v52 }
 0x462   :  { %448 = vrot.lane.b32.xlu0 %v446_v51, %s3466_s20 }
 0x463   :  { %472 = vrot.lane.b32.xlu1 %v470_v53, %s3466_s20 }
 0x4d4   :  { %v449_v55 = vpop.permute.xlu0 %448 }
 0x4d5   :  { %v451_v57 = vadd.f32 %v449_v55, %v441_v54  ;;  %v473_v58 = vpop.permute.xlu1 %472  ;;  %v738_v55 = vrot.slane %v3663_v47, 6 }
 0x4d6   :  { %v475_v59 = vadd.f32 %v473_v58, %v465_v56 }
 0x4d7   :  { %3141 = vtanh.f32 %v451_v57 }
 0x4d8   :  { %3143 = vtanh.f32 %v475_v59 }
 0x4e1   :  { %v3142_v60 = vpop.eup %3141 }
 0x4e2   :  { %v3144_v61 = vpop.eup %3143  ;;  %454 = vrot.lane.b32.xlu0 %v3142_v60, %s3465_s3 }
 0x4e3   :  { %478 = vrot.lane.b32.xlu1 %v3144_v61, %s3465_s3 }
 0x554   :  { %v455_v62 = vpop.permute.xlu0 %454 }
 0x555   :  { %v457_v63 = vmul.f32 %v3138_v48, %v455_v62  ;;  %v479_v1 = vpop.permute.xlu1 %478 }
 0x556   :  { %v481_v2 = vmul.f32 %v3140_v50, %v479_v1 }
 0x557   :  { %483 = vrot.lane.b32.xlu0 %v457_v63, %s3466_s20 }
 0x558   :  { %488 = vrot.lane.b32.xlu1 %v481_v2, %s3465_s3 }
 0x5c9   :  { %v484_v3 = vpop.permute.xlu0 %483 }
 0x5ca   :  { %486 = vst.msk [vmem:[#allocation2 + $0x2] sm:$0x3] %vm327_vm1, %v484_v3  ;;  %v489_v5 = vpop.permute.xlu1 %488 }
 0x5cb   :  { %491 = vst.msk [vmem:[#allocation2 + $0xc] sm:$0x3] %vm333_vm2, %v489_v5  ;;  %v492_v6 = vsel %vm335_vm3, %v484_v3, %v489_v5 }
 0x5cc   :  { %2741 = vmatmul.mubr.msk.f32.vlgmr.msra.gmra.mrb[2].mxu1 %vm195_vm4, %v492_v6 }
 0x5cd   :  { %2884 = vmatpush1.bf16.msra.mxu1 %v3588_v8  ;;  %884 = vmatprep.mubr.f32.mxu1 %v3464_v0 }
 0x5ce   :  { %2886 = vmatprep.subr.bf16.mxu1 %v3594_v13 }
 0x5d1   :  { %2888 = vmatpush1.bf16.msra.mxu1 %v3600_v18 }
 0x5d2   :  { %2890 = vmatprep.subr.bf16.mxu1 %v3603_v21 }
 0x5d5   :  { %2892 = vmatpush1.bf16.msra.mxu1 %v3610_v27 }
 0x5d6   :  { %2894 = vmatprep.subr.bf16.mxu1 %v3614_v28 }
 0x5d9   :  { %2896 = vmatpush1.bf16.msra.mxu1 %v3623_v32 }
 0x5da   :  { %2914 = vmatprep.subr.bf16.mxu1 %v3580_v4 }
 0x69f   :  { %v578_v9 = vpop.f32.mrb[2].mxu1 }
 0x6a0   :  { %v585_v11 = vadd.f32 %v583_v7, %v578_v9  ;;  %v580_v12 = vpop.f32.mrb[3].mxu1 }
 0x6a1   :  { %v588_v14 = vadd.f32 %v586_v10, %v580_v12 }
 0x6a2   :  { %3145 = vtanh.f32 %v585_v11  ;;  %v2742_v17 = vmul.f32 -1.442695, %v585_v11 }
 0x6a3   :  { %3147 = vtanh.f32 %v588_v14  ;;  %v2743_v19 = vmul.f32 -1.442695, %v588_v14 }
 0x6a4   :  { %3149 = vpow2.f32 %v2742_v17 }
 0x6a5   :  { %3151 = vpow2.f32 %v2743_v19 }
 0x6ac   :  { %v3146_v15 = vpop.eup %3145 }
 0x6ad   :  { %v3148_v16 = vpop.eup %3147  ;;  %598 = vrot.lane.b32.xlu0 %v3146_v15, %s3465_s3 }
 0x6ae   :  { %622 = vrot.lane.b32.xlu1 %v3148_v16, %s3465_s3  ;;  %v3150_v4 = vpop.eup %3149 }
 0x6af   :  { %v3152_v20 = vpop.eup %3151  ;;  %v592_v22 = vadd.f32 1.0, %v3150_v4 }
 0x6b0   :  { %v616_v23 = vadd.f32 1.0, %v3152_v20 }
 0x6b1   :  { %3153 = vrcp.f32 %v592_v22 }
 0x6b2   :  { %3155 = vrcp.f32 %v616_v23 }
 0x6bb   :  { %v3154_v24 = vpop.eup %3153 }
 0x6bc   :  { %v3156_v26 = vpop.eup %3155  ;;  %v596_v33 = vmul.f32 %v3154_v24, %v451_v57 }
 0x6bd   :  { %v620_v37 = vmul.f32 %v3156_v26, %v475_v59 }
 0x71f   :  { %v599_v25 = vpop.permute.xlu0 %598 }
 0x720   :  { %v601_v29 = vmul.f32 %v3154_v24, %v599_v25  ;;  %v623_v30 = vpop.permute.xlu1 %622 }
 0x721   :  { %v625_v31 = vmul.f32 %v3156_v26, %v623_v30 }
 0x722   :  { %603 = vrot.lane.b32.xlu0 %v601_v29, %s3466_s20 }
 0x723   :  { %627 = vrot.lane.b32.xlu1 %v625_v31, %s3466_s20  ;;  %v893_v31 = vrot.slane %v3655_v41, 6 }
 0x794   :  { %v604_v36 = vpop.permute.xlu0 %603 }
 0x795   :  { %v606_v39 = vadd.f32 %v604_v36, %v596_v33  ;;  %v628_v40 = vpop.permute.xlu1 %627 }
 0x796   :  { %v630_v42 = vadd.f32 %v628_v40, %v620_v37 }
 0x797   :  { %3157 = vtanh.f32 %v606_v39 }
 0x798   :  { %3159 = vtanh.f32 %v630_v42 }
 0x7a1   :  { %v3158_v43 = vpop.eup %3157 }
 0x7a2   :  { %v3160_v45 = vpop.eup %3159  ;;  %609 = vrot.lane.b32.xlu0 %v3158_v43, %s3465_s3 }
 0x7a3   :  { %633 = vrot.lane.b32.xlu1 %v3160_v45, %s3465_s3 }
 0x814   :  { %v610_v48 = vpop.permute.xlu0 %609 }
 0x815   :  { %v612_v49 = vmul.f32 %v3154_v24, %v610_v48  ;;  %v634_v50 = vpop.permute.xlu1 %633 }
 0x816   :  { %v636_v51 = vmul.f32 %v3156_v26, %v634_v50 }
 0x817   :  { %638 = vrot.lane.b32.xlu0 %v612_v49, %s3466_s20 }
 0x818   :  { %643 = vrot.lane.b32.xlu1 %v636_v51, %s3465_s3 }
 0x889   :  { %v639_v52 = vpop.permute.xlu0 %638 }
 0x88a   :  { %641 = vst.msk [vmem:[#allocation2 + $0x4] sm:$0x3] %vm327_vm1, %v639_v52  ;;  %v644_v53 = vpop.permute.xlu1 %643 }
 0x88b   :  { %646 = vst.msk [vmem:[#allocation2 + $0xa] sm:$0x3] %vm333_vm2, %v644_v53  ;;  %v647_v54 = vsel %vm335_vm3, %v639_v52, %v644_v53 }
 0x88c   :  { %2744 = vmatmul.mubr.msk.f32.vlgmr.msra.gmra.mrb[6].mxu0 %vm195_vm4, %v647_v54 }
 0x88d   :  { %2900 = vmatpush1.bf16.msra.mxu0 %v3588_v8  ;;  %1038 = vmatprep.mubr.f32.mxu0 %v3464_v0 }
 0x88e   :  { %2902 = vmatprep.subr.bf16.mxu0 %v3594_v13 }
 0x891   :  { %2904 = vmatpush1.bf16.msra.mxu0 %v3600_v18 }
 0x892   :  { %2906 = vmatprep.subr.bf16.mxu0 %v3603_v21 }
 0x895   :  { %2908 = vmatpush1.bf16.msra.mxu0 %v3610_v27 }
 0x896   :  { %2910 = vmatprep.subr.bf16.mxu0 %v3614_v28 }
 0x899   :  { %2912 = vmatpush1.bf16.msra.mxu0 %v3623_v32 }
 0x95f   :  { %v733_v56 = vpop.f32.mrb[6].mxu0 }
 0x960   :  { %v740_v57 = vadd.f32 %v738_v55, %v733_v56  ;;  %v735_v58 = vpop.f32.mrb[7].mxu0 }
 0x961   :  { %v741_v59 = vadd.f32 %v735_v58, %v3661_v46 }
 0x962   :  { %3161 = vtanh.f32 %v740_v57  ;;  %v2745_v62 = vmul.f32 -1.442695, %v740_v57 }
 0x963   :  { %3163 = vtanh.f32 %v741_v59  ;;  %v2746_v63 = vmul.f32 -1.442695, %v741_v59 }
 0x964   :  { %3165 = vpow2.f32 %v2745_v62 }
 0x965   :  { %3167 = vpow2.f32 %v2746_v63 }
 0x96c   :  { %v3162_v60 = vpop.eup %3161 }
 0x96d   :  { %v3164_v61 = vpop.eup %3163  ;;  %751 = vrot.lane.b32.xlu0 %v3162_v60, %s3465_s3 }
 0x96e   :  { %775 = vrot.lane.b32.xlu1 %v3164_v61, %s3465_s3  ;;  %v3166_v1 = vpop.eup %3165 }
 0x96f   :  { %v3168_v2 = vpop.eup %3167  ;;  %v745_v47 = vadd.f32 1.0, %v3166_v1 }
 0x970   :  { %v769_v3 = vadd.f32 1.0, %v3168_v2  ;;  %v1046_v2 = vrot.slane %v3659_v44, 2 }
 0x971   :  { %3169 = vrcp.f32 %v745_v47 }
 0x972   :  { %3171 = vrcp.f32 %v769_v3  ;;  %v1049_v3 = vrot.slane %v3655_v41, 4 }
 0x97b   :  { %v3170_v5 = vpop.eup %3169 }
 0x97c   :  { %v3172_v6 = vpop.eup %3171  ;;  %v749_v11 = vmul.f32 %v3170_v5, %v606_v39 }
 0x97d   :  { %v773_v14 = vmul.f32 %v3172_v6, %v630_v42 }
 0x9df   :  { %v752_v46 = vpop.permute.xlu0 %751 }
 0x9e0   :  { %v754_v7 = vmul.f32 %v3170_v5, %v752_v46  ;;  %v776_v9 = vpop.permute.xlu1 %775 }
 0x9e1   :  { %v778_v10 = vmul.f32 %v3172_v6, %v776_v9 }
 0x9e2   :  { %756 = vrot.lane.b32.xlu0 %v754_v7, %s3466_s20 }
 0x9e3   :  { %780 = vrot.lane.b32.xlu1 %v778_v10, %s3466_s20 }
 0xa54   :  { %v757_v12 = vpop.permute.xlu0 %756 }
 0xa55   :  { %v759_v15 = vadd.f32 %v757_v12, %v749_v11  ;;  %v781_v16 = vpop.permute.xlu1 %780 }
 0xa56   :  { %v783_v17 = vadd.f32 %v781_v16, %v773_v14 }
 0xa57   :  { %3173 = vtanh.f32 %v759_v15 }
 0xa58   :  { %3175 = vtanh.f32 %v783_v17 }
 0xa61   :  { %v3174_v19 = vpop.eup %3173 }
 0xa62   :  { %v3176_v4 = vpop.eup %3175  ;;  %762 = vrot.lane.b32.xlu0 %v3174_v19, %s3465_s3 }
 0xa63   :  { %786 = vrot.lane.b32.xlu1 %v3176_v4, %s3465_s3 }
 0xad4   :  { %v763_v20 = vpop.permute.xlu0 %762 }
 0xad5   :  { %v765_v22 = vmul.f32 %v3170_v5, %v763_v20  ;;  %v787_v23 = vpop.permute.xlu1 %786 }
 0xad6   :  { %v789_v24 = vmul.f32 %v3172_v6, %v787_v23 }
 0xad7   :  { %791 = vrot.lane.b32.xlu0 %v765_v22, %s3466_s20 }
 0xad8   :  { %796 = vrot.lane.b32.xlu1 %v789_v24, %s3465_s3 }
 0xb49   :  { %v792_v25 = vpop.permute.xlu0 %791 }
 0xb4a   :  { %794 = vst.msk [vmem:[#allocation2 + $0x6] sm:$0x3] %vm327_vm1, %v792_v25  ;;  %v797_v26 = vpop.permute.xlu1 %796 }
 0xb4b   :  { %799 = vst.msk [vmem:[#allocation2 + $0x8] sm:$0x3] %vm333_vm2, %v797_v26  ;;  %v800_v29 = vsel %vm335_vm3, %v792_v25, %v797_v26 }
 0xb4c   :  { %2747 = vmatmul.mubr.msk.f32.vlgmr.msra.gmra.mrb[4].mxu1 %vm195_vm4, %v800_v29 }
 0xb4d   :  { %2916 = vmatpush1.bf16.msra.mxu1 %v3588_v8  ;;  %1194 = vmatprep.mubr.f32.mxu1 %v3464_v0 }
 0xb4e   :  { %2918 = vmatprep.subr.bf16.mxu1 %v3594_v13 }
 0xb51   :  { %2920 = vmatpush1.bf16.msra.mxu1 %v3600_v18 }
 0xb52   :  { %2922 = vmatprep.subr.bf16.mxu1 %v3603_v21 }
 0xb55   :  { %2924 = vmatpush1.bf16.msra.mxu1 %v3610_v27 }
 0xb56   :  { %2926 = vmatprep.subr.bf16.mxu1 %v3614_v28 }
 0xb59   :  { %2928 = vmatpush1.bf16.msra.mxu1 %v3623_v32 }
 0xc1f   :  { %v886_v30 = vpop.f32.mrb[4].mxu1 }
 0xc20   :  { %v891_v33 = vadd.f32 %v886_v30, %v3659_v44  ;;  %v888_v8 = vpop.f32.mrb[5].mxu1 }
 0xc21   :  { %v895_v36 = vadd.f32 %v893_v31, %v888_v8 }
 0xc22   :  { %3177 = vtanh.f32 %v891_v33  ;;  %v2748_v18 = vmul.f32 -1.442695, %v891_v33 }
 0xc23   :  { %3179 = vtanh.f32 %v895_v36  ;;  %v2749_v21 = vmul.f32 -1.442695, %v895_v36 }
 0xc24   :  { %3181 = vpow2.f32 %v2748_v18 }
 0xc25   :  { %3183 = vpow2.f32 %v2749_v21 }
 0xc2c   :  { %v3178_v13 = vpop.eup %3177 }
 0xc2d   :  { %v3180_v37 = vpop.eup %3179  ;;  %905 = vrot.lane.b32.xlu0 %v3178_v13, %s3465_s3 }
 0xc2e   :  { %929 = vrot.lane.b32.xlu1 %v3180_v37, %s3465_s3  ;;  %v3182_v27 = vpop.eup %3181 }
 0xc2f   :  { %v3184_v28 = vpop.eup %3183  ;;  %v899_v32 = vadd.f32 1.0, %v3182_v27 }
 0xc30   :  { %v923_v39 = vadd.f32 1.0, %v3184_v28 }
 0xc31   :  { %3185 = vrcp.f32 %v899_v32  ;;  %v1201_v32 = vrot.slane %v3659_v44, 4 }
 0xc32   :  { %3187 = vrcp.f32 %v923_v39 }
 0xc3b   :  { %v3186_v40 = vpop.eup %3185 }
 0xc3c   :  { %v3188_v43 = vpop.eup %3187  ;;  %v903_v50 = vmul.f32 %v3186_v40, %v759_v15 }
 0xc3d   :  { %v927_v52 = vmul.f32 %v3188_v43, %v783_v17 }
 0xc9f   :  { %v906_v42 = vpop.permute.xlu0 %905 }
 0xca0   :  { %v908_v45 = vmul.f32 %v3186_v40, %v906_v42  ;;  %v930_v48 = vpop.permute.xlu1 %929 }
 0xca1   :  { %v932_v49 = vmul.f32 %v3188_v43, %v930_v48 }
 0xca2   :  { %910 = vrot.lane.b32.xlu0 %v908_v45, %s3466_s20 }
 0xca3   :  { %934 = vrot.lane.b32.xlu1 %v932_v49, %s3466_s20 }
 0xd14   :  { %v911_v51 = vpop.permute.xlu0 %910 }
 0xd15   :  { %v913_v53 = vadd.f32 %v911_v51, %v903_v50  ;;  %v935_v54 = vpop.permute.xlu1 %934 }
 0xd16   :  { %v937_v55 = vadd.f32 %v935_v54, %v927_v52 }
 0xd17   :  { %3189 = vtanh.f32 %v913_v53 }
 0xd18   :  { %3191 = vtanh.f32 %v937_v55 }
 0xd21   :  { %v3190_v56 = vpop.eup %3189 }
 0xd22   :  { %v3192_v57 = vpop.eup %3191  ;;  %916 = vrot.lane.b32.xlu0 %v3190_v56, %s3465_s3 }
 0xd23   :  { %940 = vrot.lane.b32.xlu1 %v3192_v57, %s3465_s3 }
 0xd94   :  { %v917_v58 = vpop.permute.xlu0 %916 }
 0xd95   :  { %v919_v59 = vmul.f32 %v3186_v40, %v917_v58  ;;  %v941_v60 = vpop.permute.xlu1 %940  ;;  %v1204_v40 = vrot.slane %v3655_v41, 2 }
 0xd96   :  { %v943_v61 = vmul.f32 %v3188_v43, %v941_v60 }
 0xd97   :  { %945 = vrot.lane.b32.xlu0 %v919_v59, %s3466_s20 }
 0xd98   :  { %950 = vrot.lane.b32.xlu1 %v943_v61, %s3465_s3 }
 0xe09   :  { %v946_v62 = vpop.permute.xlu0 %945 }
 0xe0a   :  { %948 = vst.msk [vmem:[#allocation2 + $0x8] sm:$0x3] %vm327_vm1, %v946_v62  ;;  %v951_v63 = vpop.permute.xlu1 %950 }
 0xe0b   :  { %953 = vst.msk [vmem:[#allocation2 + $0x6] sm:$0x3] %vm333_vm2, %v951_v63  ;;  %v954_v1 = vsel %vm335_vm3, %v946_v62, %v951_v63 }
 0xe0c   :  { %2750 = vmatmul.mubr.msk.f32.vlgmr.msra.gmra.mrb[8].mxu0 %vm195_vm4, %v954_v1 }
 0xe0d   :  { %1349 = vmatprep.mubr.f32.mxu0 %v3464_v0 }
 0xedf   :  { %v1040_v47 = vpop.f32.mrb[8].mxu0 }
 0xee0   :  { %v1048_v5 = vadd.f32 %v1046_v2, %v1040_v47  ;;  %v1042_v46 = vpop.f32.mrb[9].mxu0 }
 0xee1   :  { %v1051_v6 = vadd.f32 %v1049_v3, %v1042_v46  ;;  %v1269_v46 = vld [vmem:[#allocation3 + $0x18] sm:$0xff] }
 0xee2   :  { %3193 = vtanh.f32 %v1048_v5  ;;  %v2751_v10 = vmul.f32 -1.442695, %v1048_v5  ;;  %v1267_v5 = vld [vmem:[#allocation3 + $0x8] sm:$0xff] }
 0xee3   :  { %3195 = vtanh.f32 %v1051_v6  ;;  %v2752_v11 = vmul.f32 -1.442695, %v1051_v6  ;;  %v1266_v6 = vld [vmem:[#allocation3] sm:$0xff] }
 0xee4   :  { %3197 = vpow2.f32 %v2751_v10  ;;  %v1271_v10 = vld [vmem:[#allocation3 + $0x28] sm:$0xff] }
 0xee5   :  { %3199 = vpow2.f32 %v2752_v11  ;;  %v1273_v11 = vld [vmem:[#allocation3 + $0x38] sm:$0xff] }
 0xeec   :  { %v3194_v7 = vpop.eup %3193 }
 0xeed   :  { %v3196_v9 = vpop.eup %3195  ;;  %1061 = vrot.lane.b32.xlu0 %v3194_v7, %s3465_s3  ;;  %v2929_v7 = vpack.c.bf16 %v1269_v46, %v1267_v5  ;;  %v1421_v5 = vld [vmem:[#allocation6 + $0x8] sm:$0xff]  ;;  %v1423_v46 = vld [vmem:[#allocation6 + $0x18] sm:$0xff] }
 0xeee   :  { %1085 = vrot.lane.b32.xlu1 %v3196_v9, %s3465_s3  ;;  %v3198_v12 = vpop.eup %3197  ;;  %v1268_v9 = vld [vmem:[#allocation3 + $0x10] sm:$0xff] }
 0xeef   :  { %v3200_v14 = vpop.eup %3199  ;;  %v1055_v15 = vadd.f32 1.0, %v3198_v12  ;;  %v2931_v12 = vpack.c.bf16 %v1268_v9, %v1266_v6  ;;  %2930 = vmatprep.subr.bf16.mxu0 %v2929_v7  ;;  %v1420_v6 = vld [vmem:[#allocation6] sm:$0xff]  ;;  %v2945_v7 = vpack.c.bf16 %v1423_v46, %v1421_v5  ;;  %v1422_v9 = vld [vmem:[#allocation6 + $0x10] sm:$0xff] }
 0xef0   :  { %v1079_v16 = vadd.f32 1.0, %v3200_v14  ;;  %v2933_v14 = vpack.c.bf16 %v1273_v11, %v1271_v10  ;;  %v1532_v10 = vld [vmem:[#allocation8 + $0x8] sm:$0xff]  ;;  %v1534_v11 = vld [vmem:[#allocation8 + $0x18] sm:$0xff]  ;;  %v1436_v5 = vld [vmem:[%s4091_s6] sm:$0x3] }
 0xef1   :  { %3201 = vrcp.f32 %v1055_v15  ;;  %v1270_v15 = vld [vmem:[#allocation3 + $0x20] sm:$0xff]  ;;  %2932 = vmatpush1.bf16.msra.mxu0 %v2931_v12  ;;  %v2947_v12 = vpack.c.bf16 %v1422_v9, %v1420_v6  ;;  %2946 = vmatprep.subr.bf16.mxu1 %v2945_v7  ;;  %v1441_v46 = vrot.slane %v1436_v5, %v87_v38  ;;  %v1445_v6 = vrot.slane %v1436_v5, %v91_v35 }
 0xef2   :  { %3203 = vrcp.f32 %v1079_v16  ;;  %v1272_v16 = vld [vmem:[#allocation3 + $0x30] sm:$0xff]  ;;  %2934 = vmatprep.subr.bf16.mxu0 %v2933_v14  ;;  %v3830_v14 = vpack.c.bf16 %v1534_v11, %v1532_v10 }
 0xefb   :  { %v3202_v17 = vpop.eup %3201 }
 0xefc   :  { %v3204_v4 = vpop.eup %3203  ;;  %v1059_v24 = vmul.f32 %v3202_v17, %v913_v53 }
 0xefd   :  { %v1083_v26 = vmul.f32 %v3204_v4, %v937_v55 }
 0xf5f   :  { %v1062_v19 = vpop.permute.xlu0 %1061 }
 0xf60   :  { %v1064_v20 = vmul.f32 %v3202_v17, %v1062_v19  ;;  %v1086_v22 = vpop.permute.xlu1 %1085  ;;  %v1277_v19 = vld [vmem:[#allocation3 + $0x58] sm:$0xff] }
 0xf61   :  { %v1088_v23 = vmul.f32 %v3204_v4, %v1086_v22  ;;  %v1274_v22 = vld [vmem:[#allocation3 + $0x40] sm:$0xff] }
 0xf62   :  { %1066 = vrot.lane.b32.xlu0 %v1064_v20, %s3466_s20 }
 0xf63   :  { %1090 = vrot.lane.b32.xlu1 %v1088_v23, %s3466_s20  ;;  %v1276_v23 = vld [vmem:[#allocation3 + $0x50] sm:$0xff] }
 0xfd4   :  { %v1067_v25 = vpop.permute.xlu0 %1066 }
 0xfd5   :  { %v1069_v29 = vadd.f32 %v1067_v25, %v1059_v24  ;;  %v1091_v30 = vpop.permute.xlu1 %1090  ;;  %v1279_v24 = vld [vmem:[#allocation3 + $0x68] sm:$0xff]  ;;  %v1281_v25 = vld [vmem:[#allocation3 + $0x78] sm:$0xff] }
 0xfd6   :  { %v1093_v31 = vadd.f32 %v1091_v30, %v1083_v26  ;;  %v2939_v26 = vpack.c.bf16 %v1276_v23, %v1274_v22  ;;  %v2941_v30 = vpack.c.bf16 %v1281_v25, %v1279_v24  ;;  %v1536_v23 = vld [vmem:[#allocation8 + $0x28] sm:$0xff]  ;;  %v1538_v24 = vld [vmem:[#allocation8 + $0x38] sm:$0xff] }
 0xfd7   :  { %3205 = vtanh.f32 %v1069_v29  ;;  %v3836_v25 = vpack.c.bf16 %v1538_v24, %v1536_v23 }
 0xfd8   :  { %3207 = vtanh.f32 %v1093_v31 }
 0xfe1   :  { %v3206_v33 = vpop.eup %3205 }
 0xfe2   :  { %v3208_v8 = vpop.eup %3207  ;;  %1072 = vrot.lane.b32.xlu0 %v3206_v33, %s3465_s3  ;;  %v1280_v33 = vld [vmem:[#allocation3 + $0x70] sm:$0xff] }
 0xfe3   :  { %1096 = vrot.lane.b32.xlu1 %v3208_v8, %s3465_s3 }
0x1054   :  { %v1073_v36 = vpop.permute.xlu0 %1072 }
0x1055   :  { %v1075_v13 = vmul.f32 %v3202_v17, %v1073_v36  ;;  %v1097_v37 = vpop.permute.xlu1 %1096  ;;  %v1275_v17 = vld [vmem:[#allocation3 + $0x48] sm:$0xff] }
0x1056   :  { %v1099_v18 = vmul.f32 %v3204_v4, %v1097_v37  ;;  %v2935_v4 = vpack.c.bf16 %v1272_v16, %v1270_v15  ;;  %v2937_v20 = vpack.c.bf16 %v1277_v19, %v1275_v17  ;;  %v1533_v15 = vld [vmem:[#allocation8 + $0x10] sm:$0xff]  ;;  %v1425_v16 = vld [vmem:[#allocation6 + $0x28] sm:$0xff]  ;;  %v1427_v17 = vld [vmem:[#allocation6 + $0x38] sm:$0xff] }
0x1057   :  { %1101 = vrot.lane.b32.xlu0 %v1075_v13, %s3466_s20  ;;  %v1424_v19 = vld [vmem:[#allocation6 + $0x20] sm:$0xff] }
0x1058   :  { %1106 = vrot.lane.b32.xlu1 %v1099_v18, %s3465_s3  ;;  %2936 = vmatpush1.bf16.msra.mxu0 %v2935_v4  ;;  %v1426_v4 = vld [vmem:[#allocation6 + $0x30] sm:$0xff] }
0x1059   :  { %2938 = vmatprep.subr.bf16.mxu0 %v2937_v20  ;;  %v2949_v20 = vpack.c.bf16 %v1427_v17, %v1425_v16  ;;  %v2951_v22 = vpack.c.bf16 %v1426_v4, %v1424_v19 }
0x105c   :  { %2940 = vmatpush1.bf16.msra.mxu0 %v2939_v26 }
0x105d   :  { %2942 = vmatprep.subr.bf16.mxu0 %v2941_v30  ;;  %v1535_v30 = vld [vmem:[#allocation8 + $0x20] sm:$0xff] }
0x10c9   :  { %v1102_v21 = vpop.permute.xlu0 %1101 }
0x10ca   :  { %1104 = vst.msk [vmem:[#allocation2 + $0xa] sm:$0x3] %vm327_vm1, %v1102_v21  ;;  %v1107_v27 = vpop.permute.xlu1 %1106 }
0x10cb   :  { %1109 = vst.msk [vmem:[#allocation2 + $0x4] sm:$0x3] %vm333_vm2, %v1107_v27  ;;  %v1110_v28 = vsel %vm335_vm3, %v1102_v21, %v1107_v27 }
0x10cc   :  { %2753 = vmatmul.mubr.msk.f32.vlgmr.msra.gmra.mrb[6].mxu1 %vm195_vm4, %v1110_v28 }
0x10cd   :  { %1518 = vmatprep.mubr.f32.mxu1 %v3464_v0  ;;  %2948 = vmatpush1.bf16.msra.mxu1 %v2947_v12 }
0x10ce   :  { %2950 = vmatprep.subr.bf16.mxu1 %v2949_v20 }
0x10d1   :  { %2952 = vmatpush1.bf16.msra.mxu1 %v2951_v22 }
0x119f   :  { %v1196_v39 = vpop.f32.mrb[6].mxu1 }
0x11a0   :  { %v1203_v42 = vadd.f32 %v1201_v32, %v1196_v39  ;;  %v1198_v43 = vpop.f32.mrb[7].mxu1  ;;  %v1356_v39 = vrot.slane %v3659_v44, 6 }
0x11a1   :  { %v1206_v45 = vadd.f32 %v1204_v40, %v1198_v43 }
0x11a2   :  { %3209 = vtanh.f32 %v1203_v42  ;;  %v2754_v50 = vmul.f32 -1.442695, %v1203_v42 }
0x11a3   :  { %3211 = vtanh.f32 %v1206_v45  ;;  %v2755_v51 = vmul.f32 -1.442695, %v1206_v45 }
0x11a4   :  { %3213 = vpow2.f32 %v2754_v50 }
0x11a5   :  { %3215 = vpow2.f32 %v2755_v51 }
0x11ac   :  { %v3210_v48 = vpop.eup %3209 }
0x11ad   :  { %v3212_v49 = vpop.eup %3211  ;;  %1216 = vrot.lane.b32.xlu0 %v3210_v48, %s3465_s3 }
0x11ae   :  { %1240 = vrot.lane.b32.xlu1 %v3212_v49, %s3465_s3  ;;  %v3214_v52 = vpop.eup %3213 }
0x11af   :  { %v3216_v53 = vpop.eup %3215  ;;  %v1210_v54 = vadd.f32 1.0, %v3214_v52 }
0x11b0   :  { %v1234_v55 = vadd.f32 1.0, %v3216_v53 }
0x11b1   :  { %3217 = vrcp.f32 %v1210_v54 }
0x11b2   :  { %3219 = vrcp.f32 %v1234_v55 }
0x11bb   :  { %v3218_v56 = vpop.eup %3217 }
0x11bc   :  { %v3220_v58 = vpop.eup %3219  ;;  %v1214_v62 = vmul.f32 %v3218_v56, %v1069_v29 }
0x11bd   :  { %v1238_v1 = vmul.f32 %v3220_v58, %v1093_v31  ;;  %v1278_v31 = vld [vmem:[#allocation3 + $0x60] sm:$0xff] }
0x11be   :  { %v2943_v36 = vpack.c.bf16 %v1280_v33, %v1278_v31  ;;  %v1537_v31 = vld [vmem:[#allocation8 + $0x30] sm:$0xff] }
0x11bf   :  { %v3841_v33 = vpack.c.bf16 %v1537_v31, %v1535_v30 }
0x11c0   :  { %2944 = vmatpush1.bf16.msra.mxu0 %v2943_v36  ;;  %v1431_v36 = vld [vmem:[#allocation6 + $0x58] sm:$0xff] }
0x11c1   :  { %2962 = vmatprep.subr.bf16.mxu0 %v3830_v14 }
0x121f   :  { %v1217_v57 = vpop.permute.xlu0 %1216 }
0x1220   :  { %v1219_v59 = vmul.f32 %v3218_v56, %v1217_v57  ;;  %v1241_v60 = vpop.permute.xlu1 %1240 }
0x1221   :  { %v1243_v61 = vmul.f32 %v3220_v58, %v1241_v60 }
0x1222   :  { %1221 = vrot.lane.b32.xlu0 %v1219_v59, %s3466_s20 }
0x1223   :  { %1245 = vrot.lane.b32.xlu1 %v1243_v61, %s3466_s20 }
0x1294   :  { %v1222_v63 = vpop.permute.xlu0 %1221 }
0x1295   :  { %v3799_v2 = vadd.f32 %v1222_v63, %v1214_v62  ;;  %v1246_v47 = vpop.permute.xlu1 %1245 }
0x1296   :  { %v3801_v3 = vadd.f32 %v1246_v47, %v1238_v1 }
0x1297   :  { %3221 = vtanh.f32 %v3799_v2 }
0x1298   :  { %3223 = vtanh.f32 %v3801_v3 }
0x12a1   :  { %v3222_v29 = vpop.eup %3221 }
0x12a2   :  { %v3224_v8 = vpop.eup %3223  ;;  %1227 = vrot.lane.b32.xlu0 %v3222_v29, %s3465_s3 }
0x12a3   :  { %1251 = vrot.lane.b32.xlu1 %v3224_v8, %s3465_s3  ;;  %v1429_v8 = vld [vmem:[#allocation6 + $0x48] sm:$0xff] }
0x1314   :  { %v1228_v13 = vpop.permute.xlu0 %1227 }
0x1315   :  { %v1230_v37 = vmul.f32 %v3218_v56, %v1228_v13  ;;  %v1252_v18 = vpop.permute.xlu1 %1251  ;;  %v2953_v13 = vpack.c.bf16 %v1431_v36, %v1429_v8 }
0x1316   :  { %v1254_v21 = vmul.f32 %v3220_v58, %v1252_v18  ;;  %v1430_v18 = vld [vmem:[#allocation6 + $0x50] sm:$0xff] }
0x1317   :  { %1256 = vrot.lane.b32.xlu0 %v1230_v37, %s3466_s20  ;;  %v1428_v37 = vld [vmem:[#allocation6 + $0x40] sm:$0xff]  ;;  %2954 = vmatprep.subr.bf16.mxu1 %v2953_v13 }
0x1318   :  { %1261 = vrot.lane.b32.xlu1 %v1254_v21, %s3465_s3  ;;  %v2955_v21 = vpack.c.bf16 %v1430_v18, %v1428_v37 }
0x131a   :  { %2956 = vmatpush1.bf16.msra.mxu1 %v2955_v21 }
0x1389   :  { %v1257_v27 = vpop.permute.xlu0 %1256 }
0x138a   :  { %1259 = vst.msk [vmem:[#allocation2 + $0xc] sm:$0x3] %vm327_vm1, %v1257_v27  ;;  %v1262_v28 = vpop.permute.xlu1 %1261 }
0x138b   :  { %1264 = vst.msk [vmem:[#allocation2 + $0x2] sm:$0x3] %vm333_vm2, %v1262_v28  ;;  %v1265_v32 = vsel %vm335_vm3, %v1257_v27, %v1262_v28  ;;  %v1540_v27 = vld [vmem:[#allocation8 + $0x48] sm:$0xff]  ;;  %v1542_v28 = vld [vmem:[#allocation8 + $0x58] sm:$0xff] }
0x138c   :  { %2756 = vmatmul.mubr.msk.f32.vlgmr.msra.gmra.mrb[10].mxu0 %vm195_vm4, %v1265_v32  ;;  %v3844_v32 = vpack.c.bf16 %v1542_v28, %v1540_v27 }
0x138d   :  { %1611 = vmatprep.mubr.f32.mxu0 %v3464_v0 }
0x145f   :  { %v1351_v40 = vpop.f32.mrb[10].mxu0 }
0x1460   :  { %v1358_v42 = vadd.f32 %v1356_v39, %v1351_v40  ;;  %v1353_v43 = vpop.f32.mrb[11].mxu0  ;;  %v1539_v39 = vld [vmem:[#allocation8 + $0x40] sm:$0xff]  ;;  %v1541_v40 = vld [vmem:[#allocation8 + $0x50] sm:$0xff] }
0x1461   :  { %v1359_v45 = vadd.f32 %v1353_v43, %v3655_v41  ;;  %v3846_v43 = vpack.c.bf16 %v1541_v40, %v1539_v39 }
0x1462   :  { %3225 = vtanh.f32 %v1358_v42  ;;  %v2757_v50 = vmul.f32 -1.442695, %v1358_v42  ;;  %v1433_v42 = vld [vmem:[#allocation6 + $0x68] sm:$0xff] }
0x1463   :  { %3227 = vtanh.f32 %v1359_v45  ;;  %v2758_v51 = vmul.f32 -1.442695, %v1359_v45  ;;  %v1435_v45 = vld [vmem:[#allocation6 + $0x78] sm:$0xff] }
0x1464   :  { %3229 = vpow2.f32 %v2757_v50  ;;  %v2957_v50 = vpack.c.bf16 %v1435_v45, %v1433_v42 }
0x1465   :  { %3231 = vpow2.f32 %v2758_v51 }
0x1466   :  { %2958 = vmatprep.subr.bf16.mxu1 %v2957_v50 }
0x146c   :  { %v3226_v48 = vpop.eup %3225 }
0x146d   :  { %v3228_v49 = vpop.eup %3227  ;;  %1369 = vrot.lane.b32.xlu1 %v3226_v48, %s3465_s3  ;;  %v1432_v48 = vld [vmem:[#allocation6 + $0x60] sm:$0xff] }
0x146e   :  { %1393 = vrot.lane.b32.xlu0 %v3228_v49, %s3465_s3  ;;  %v3230_v52 = vpop.eup %3229  ;;  %v1434_v49 = vld [vmem:[#allocation6 + $0x70] sm:$0xff] }
0x146f   :  { %v3232_v53 = vpop.eup %3231  ;;  %v1363_v44 = vadd.f32 1.0, %v3230_v52  ;;  %v2959_v51 = vpack.c.bf16 %v1434_v49, %v1432_v48  ;;  %v1544_v52 = vld [vmem:[#allocation8 + $0x68] sm:$0xff] }
0x1470   :  { %v1387_v54 = vadd.f32 1.0, %v3232_v53  ;;  %v1546_v53 = vld [vmem:[#allocation8 + $0x78] sm:$0xff] }
0x1471   :  { %3233 = vrcp.f32 %v1363_v44  ;;  %v1543_v44 = vld [vmem:[#allocation8 + $0x60] sm:$0xff]  ;;  %2960 = vmatpush1.bf16.msra.mxu1 %v2959_v51 }
0x1472   :  { %3235 = vrcp.f32 %v1387_v54  ;;  %v3850_v54 = vpack.c.bf16 %v1546_v53, %v1544_v52  ;;  %2978 = vmatprep.subr.bf16.mxu1 %v3830_v14 }
0x147b   :  { %v3818_v55 = vpop.eup %3233 }
0x147c   :  { %v3820_v56 = vpop.eup %3235  ;;  %v1367_v60 = vmul.f32 %v3818_v55, %v3799_v2  ;;  %v1531_v2 = vld [vmem:[#allocation8] sm:$0xff] }
0x147d   :  { %v1391_v62 = vmul.f32 %v3820_v56, %v3801_v3  ;;  %v3832_v3 = vpack.c.bf16 %v1533_v15, %v1531_v2 }
0x147f   :  { %2964 = vmatpush1.bf16.msra.mxu0 %v3832_v3 }
0x1480   :  { %2966 = vmatprep.subr.bf16.mxu0 %v3836_v25 }
0x1483   :  { %2968 = vmatpush1.bf16.msra.mxu0 %v3841_v33 }
0x1484   :  { %2970 = vmatprep.subr.bf16.mxu0 %v3844_v32 }
0x1487   :  { %2972 = vmatpush1.bf16.msra.mxu0 %v3846_v43 }
0x1488   :  { %2974 = vmatprep.subr.bf16.mxu0 %v3850_v54 }
0x14df   :  { %v1370_v41 = vpop.permute.xlu1 %1369 }
0x14e0   :  { %v1372_v57 = vmul.f32 %v3818_v55, %v1370_v41  ;;  %v1394_v58 = vpop.permute.xlu0 %1393  ;;  %v1545_v41 = vld [vmem:[#allocation8 + $0x70] sm:$0xff] }
0x14e1   :  { %v1396_v59 = vmul.f32 %v3820_v56, %v1394_v58 }
0x14e2   :  { %1374 = vrot.lane.b32.xlu1 %v1372_v57, %s3466_s20  ;;  %v3852_v57 = vpack.c.bf16 %v1545_v41, %v1543_v44 }
0x14e3   :  { %1398 = vrot.lane.b32.xlu0 %v1396_v59, %s3466_s20 }
0x14e4   :  { %2976 = vmatpush1.bf16.msra.mxu0 %v3852_v57 }
0x14e5   :  { %2994 = vmatprep.subr.bf16.mxu0 %v3830_v14 }
0x14e7   :  { %1612 = vmatmul.mubr.f32.vlgmr.msra.gmra.mrb[12].mxu0 %v3464_v0 }
0x14e8   :  { %2996 = vmatpush1.bf16.msra.mxu0 %v3832_v3  ;;  %1885 = vmatprep.mubr.f32.mxu0 %v3464_v0 }
0x14e9   :  { %2998 = vmatprep.subr.bf16.mxu0 %v3836_v25 }
0x14ec   :  { %3000 = vmatpush1.bf16.msra.mxu0 %v3841_v33 }
0x14ed   :  { %3002 = vmatprep.subr.bf16.mxu0 %v3844_v32 }
0x14f0   :  { %3004 = vmatpush1.bf16.msra.mxu0 %v3846_v43 }
0x14f1   :  { %3006 = vmatprep.subr.bf16.mxu0 %v3850_v54 }
0x14f4   :  { %3008 = vmatpush1.bf16.msra.mxu0 %v3852_v57 }
0x14f5   :  { %3026 = vmatprep.subr.bf16.mxu0 %v3830_v14 }
0x1554   :  { %v1375_v61 = vpop.permute.xlu1 %1374 }
0x1555   :  { %v1377_v63 = vadd.f32 %v1375_v61, %v1367_v60  ;;  %v1399_v1 = vpop.permute.xlu0 %1398 }
0x1556   :  { %v1401_v47 = vadd.f32 %v1399_v1, %v1391_v62 }
0x1557   :  { %3237 = vtanh.f32 %v1377_v63 }
0x1558   :  { %3239 = vtanh.f32 %v1401_v47 }
0x1561   :  { %v3238_v26 = vpop.eup %3237 }
0x1562   :  { %v3240_v29 = vpop.eup %3239  ;;  %1380 = vrot.lane.b32.xlu1 %v3238_v26, %s3465_s3 }
0x1563   :  { %1404 = vrot.lane.b32.xlu0 %v3240_v29, %s3465_s3 }
0x15ba   :  { %v1613_v1 = vpop.f32.mrb[12].mxu0 }
0x15bb   :  { %v1615_v47 = vpop.f32.mrb[13].mxu0 }
0x15d4   :  { %v1381_v58 = vpop.permute.xlu1 %1380 }
0x15d5   :  { %v1383_v59 = vmul.f32 %v3818_v55, %v1381_v58  ;;  %v1405_v60 = vpop.permute.xlu0 %1404 }
0x15d6   :  { %v1407_v61 = vmul.f32 %v3820_v56, %v1405_v60 }
0x15d7   :  { %1409 = vrot.lane.b32.xlu1 %v1383_v59, %s3466_s20 }
0x15d8   :  { %1414 = vrot.lane.b32.xlu0 %v1407_v61, %s3465_s3 }
0x1649   :  { %v1410_v55 = vpop.permute.xlu1 %1409 }
0x164a   :  { %1412 = vst.msk [vmem:[#allocation2 + $0xe] sm:$0x3] %vm327_vm1, %v1410_v55  ;;  %v1415_v56 = vpop.permute.xlu0 %1414 }
0x164b   :  { %1417 = vst.msk [vmem:[#allocation2] sm:$0x3] %vm333_vm2, %v1415_v56 }
0x1651   :  { %v1419_v63 = vld [vmem:[#allocation2 + $0x8] sm:$0xff] }
0x1652   :  { %v1418_v62 = vld [vmem:[#allocation2] sm:$0xff] }
0x1653   :  { %2759 = vmatmul.mubr.msk.f32.vlgmr.msra.gmra.mrb[8].mxu1 %vm195_vm4, %v1418_v62 }
0x1654   :  { %1524 = vmatprep.mubr.f32.mxu1 %v3464_v0  ;;  %2980 = vmatpush1.bf16.msra.mxu1 %v3832_v3 }
0x1655   :  { %2982 = vmatprep.subr.bf16.mxu1 %v3836_v25 }
0x1657   :  { %2760 = vmatmul.mubr.msk.f32.gmra.mrb[10].mxu1 %vm195_vm4, %v1419_v63 }
0x1658   :  { %2984 = vmatpush1.bf16.msra.mxu1 %v3841_v33  ;;  %1747 = vmatprep.mubr.f32.mxu1 %v3464_v0 }
0x1659   :  { %2986 = vmatprep.subr.bf16.mxu1 %v3844_v32 }
0x165c   :  { %2988 = vmatpush1.bf16.msra.mxu1 %v3846_v43 }
0x165d   :  { %2990 = vmatprep.subr.bf16.mxu1 %v3850_v54 }
0x1660   :  { %2992 = vmatpush1.bf16.msra.mxu1 %v3852_v57 }
0x1661   :  { %3010 = vmatprep.subr.bf16.mxu1 %v3830_v14 }
0x1726   :  { %v1520_v7 = vpop.f32.mrb[8].mxu1 }
0x1727   :  { %v3893_v9 = vadd.f32 %v1520_v7, %v1441_v46  ;;  %v1522_v10 = vpop.f32.mrb[9].mxu1 }
0x1728   :  { %v3895_v11 = vadd.f32 %v1522_v10, %v1445_v6 }
0x1729   :  { %v1618_v12 = vadd.f32 %v1613_v1, %v3893_v9  ;;  %v1755_v44 = vrot.slane %v3893_v9, 2 }
0x172a   :  { %v1526_v2 = vpop.f32.mrb[10].mxu1 }
0x172b   :  { %3241 = vtanh.f32 %v1618_v12  ;;  %v3898_v15 = vadd.f32 %v1526_v2, %v1441_v46  ;;  %v1528_v16 = vpop.f32.mrb[11].mxu1  ;;  %v2761_v4 = vmul.f32 -1.442695, %v1618_v12 }
0x172c   :  { %v3900_v17 = vadd.f32 %v1528_v16, %v1445_v6 }
0x172e   :  { %v1620_v38 = vrot.slane %v3900_v17, 6  ;;  %v1758_v58 = vrot.slane %v3900_v17, 4 }
0x1730   :  { %v1622_v19 = vadd.f32 %v1620_v38, %v1615_v47 }
0x1732   :  { %3243 = vtanh.f32 %v1622_v19  ;;  %v2762_v20 = vmul.f32 -1.442695, %v1622_v19 }
0x1733   :  { %3245 = vpow2.f32 %v2761_v4 }
0x1734   :  { %3247 = vpow2.f32 %v2762_v20 }
0x1735   :  { %v3242_v34 = vpop.eup %3241 }
0x1736   :  { %1632 = vrot.lane.b32.xlu0 %v3242_v34, %s3465_s3 }
0x173c   :  { %v3244_v35 = vpop.eup %3243 }
0x173d   :  { %1656 = vrot.lane.b32.xlu1 %v3244_v35, %s3465_s3  ;;  %v3246_v22 = vpop.eup %3245 }
0x173e   :  { %v1626_v23 = vadd.f32 1.0, %v3246_v22  ;;  %v3248_v24 = vpop.eup %3247 }
0x173f   :  { %v1650_v26 = vadd.f32 1.0, %v3248_v24 }
0x1740   :  { %3249 = vrcp.f32 %v1626_v23 }
0x1741   :  { %3251 = vrcp.f32 %v1650_v26 }
0x174a   :  { %v3250_v29 = vpop.eup %3249 }
0x174b   :  { %v3252_v8 = vpop.eup %3251  ;;  %v1630_v37 = vmul.f32 0.0, %v3250_v29 }
0x174c   :  { %v1654_v27 = vmul.f32 0.0, %v3252_v8 }
0x17a8   :  { %v1633_v30 = vpop.permute.xlu0 %1632 }
0x17a9   :  { %v1635_v31 = vmul.f32 %v3250_v29, %v1633_v30 }
0x17ab   :  { %1637 = vrot.lane.b32.xlu0 %v1635_v31, %s3466_s20 }
0x17af   :  { %v1657_v36 = vpop.permute.xlu1 %1656 }
0x17b0   :  { %v1659_v13 = vmul.f32 %v3252_v8, %v1657_v36 }
0x17b2   :  { %1661 = vrot.lane.b32.xlu1 %v1659_v13, %s3466_s20  ;;  %v1892_v13 = vrot.slane %v3893_v9, 4 }
0x181d   :  { %v1638_v18 = vpop.permute.xlu0 %1637 }
0x181e   :  { %v1640_v21 = vadd.f32 %v1638_v18, %v1630_v37  ;;  %v1895_v18 = vrot.slane %v3900_v17, 2 }
0x1820   :  { %3253 = vtanh.f32 %v1640_v21 }
0x1824   :  { %v1662_v28 = vpop.permute.xlu1 %1661 }
0x1825   :  { %v1664_v39 = vadd.f32 %v1662_v28, %v1654_v27 }
0x1827   :  { %3255 = vtanh.f32 %v1664_v39 }
0x182a   :  { %v3254_v40 = vpop.eup %3253 }
0x182b   :  { %1643 = vrot.lane.b32.xlu0 %v3254_v40, %s3465_s3 }
0x1831   :  { %v3256_v42 = vpop.eup %3255 }
0x1832   :  { %1667 = vrot.lane.b32.xlu1 %v3256_v42, %s3465_s3 }
0x189d   :  { %v1644_v45 = vpop.permute.xlu0 %1643 }
0x189e   :  { %v1646_v48 = vmul.f32 %v3250_v29, %v1644_v45 }
0x18a0   :  { %1672 = vrot.lane.b32.xlu0 %v1646_v48, %s3466_s20 }
0x18a4   :  { %v1668_v49 = vpop.permute.xlu1 %1667 }
0x18a5   :  { %v1670_v50 = vmul.f32 %v3252_v8, %v1668_v49 }
0x18a7   :  { %1676 = vrot.lane.b32.xlu1 %v1670_v50, %s3465_s3 }
0x1912   :  { %v1673_v51 = vpop.permute.xlu0 %1672 }
0x1919   :  { %v3911_v52 = vpop.permute.xlu1 %1676 }
0x191a   :  { %v1679_v53 = vsel %vm335_vm3, %v1673_v51, %v3911_v52 }
0x191b   :  { %2763 = vmatmul.mubr.msk.f32.vlgmr.msra.gmra.mrb[12].mxu1 %vm195_vm4, %v1679_v53 }
0x191c   :  { %3012 = vmatpush1.bf16.msra.mxu1 %v3832_v3  ;;  %2022 = vmatprep.mubr.f32.mxu1 %v3464_v0 }
0x191d   :  { %3014 = vmatprep.subr.bf16.mxu1 %v3836_v25 }
0x1920   :  { %3016 = vmatpush1.bf16.msra.mxu1 %v3841_v33 }
0x1921   :  { %3018 = vmatprep.subr.bf16.mxu1 %v3844_v32 }
0x1924   :  { %3020 = vmatpush1.bf16.msra.mxu1 %v3846_v43 }
0x1925   :  { %3022 = vmatprep.subr.bf16.mxu1 %v3850_v54 }
0x1928   :  { %3024 = vmatpush1.bf16.msra.mxu1 %v3852_v57 }
0x1929   :  { %3042 = vmatprep.subr.bf16.mxu1 %v3830_v14 }
0x19ee   :  { %v1749_v41 = vpop.f32.mrb[12].mxu1 }
0x19ef   :  { %v1757_v59 = vadd.f32 %v1755_v44, %v1749_v41  ;;  %v1751_v60 = vpop.f32.mrb[13].mxu1 }
0x19f0   :  { %v1760_v61 = vadd.f32 %v1758_v58, %v1751_v60 }
0x19f1   :  { %3257 = vtanh.f32 %v1757_v59  ;;  %v2764_v62 = vmul.f32 -1.442695, %v1757_v59 }
0x19f2   :  { %3259 = vtanh.f32 %v1760_v61  ;;  %v2765_v63 = vmul.f32 -1.442695, %v1760_v61 }
0x19f3   :  { %3261 = vpow2.f32 %v2764_v62 }
0x19f4   :  { %3263 = vpow2.f32 %v2765_v63 }
0x19fb   :  { %v3258_v55 = vpop.eup %3257 }
0x19fc   :  { %v3260_v56 = vpop.eup %3259  ;;  %1770 = vrot.lane.b32.xlu0 %v3258_v55, %s3465_s3 }
0x19fd   :  { %1794 = vrot.lane.b32.xlu1 %v3260_v56, %s3465_s3  ;;  %v3262_v1 = vpop.eup %3261 }
0x19fe   :  { %v3264_v47 = vpop.eup %3263  ;;  %v1764_v5 = vadd.f32 1.0, %v3262_v1 }
0x19ff   :  { %v1788_v46 = vadd.f32 1.0, %v3264_v47 }
0x1a00   :  { %3265 = vrcp.f32 %v1764_v5 }
0x1a01   :  { %3267 = vrcp.f32 %v1788_v46 }
0x1a0a   :  { %v3266_v6 = vpop.eup %3265 }
0x1a0b   :  { %v3268_v10 = vpop.eup %3267  ;;  %v1768_v38 = vmul.f32 %v3266_v6, %v1640_v21 }
0x1a0c   :  { %v1792_v34 = vmul.f32 %v3268_v10, %v1664_v39 }
0x1a6e   :  { %v1771_v7 = vpop.permute.xlu0 %1770 }
0x1a6f   :  { %v1773_v12 = vmul.f32 %v3266_v6, %v1771_v7  ;;  %v1795_v2 = vpop.permute.xlu1 %1794 }
0x1a70   :  { %v1797_v16 = vmul.f32 %v3268_v10, %v1795_v2 }
0x1a71   :  { %1775 = vrot.lane.b32.xlu0 %v1773_v12, %s3466_s20 }
0x1a72   :  { %1799 = vrot.lane.b32.xlu1 %v1797_v16, %s3466_s20 }
0x1ae3   :  { %v1776_v19 = vpop.permute.xlu0 %1775 }
0x1ae4   :  { %v1778_v35 = vadd.f32 %v1776_v19, %v1768_v38  ;;  %v1800_v4 = vpop.permute.xlu1 %1799  ;;  %v2029_v38 = vrot.slane %v3893_v9, 6 }
0x1ae5   :  { %v1802_v20 = vadd.f32 %v1800_v4, %v1792_v34 }
0x1ae6   :  { %3269 = vtanh.f32 %v1778_v35 }
0x1ae7   :  { %3271 = vtanh.f32 %v1802_v20 }
0x1af0   :  { %v3270_v22 = vpop.eup %3269 }
0x1af1   :  { %v3272_v23 = vpop.eup %3271  ;;  %1781 = vrot.lane.b32.xlu0 %v3270_v22, %s3465_s3 }
0x1af2   :  { %1805 = vrot.lane.b32.xlu1 %v3272_v23, %s3465_s3 }
0x1b63   :  { %v1782_v24 = vpop.permute.xlu0 %1781 }
0x1b64   :  { %v1784_v26 = vmul.f32 %v3266_v6, %v1782_v24  ;;  %v1806_v29 = vpop.permute.xlu1 %1805 }
0x1b65   :  { %v1808_v30 = vmul.f32 %v3268_v10, %v1806_v29 }
0x1b66   :  { %1810 = vrot.lane.b32.xlu0 %v1784_v26, %s3466_s20 }
0x1b67   :  { %1814 = vrot.lane.b32.xlu1 %v1808_v30, %s3465_s3 }
0x1bd8   :  { %v1811_v31 = vpop.permute.xlu0 %1810 }
0x1bd9   :  { %v1815_v8 = vpop.permute.xlu1 %1814 }
0x1bda   :  { %v1817_v36 = vsel %vm335_vm3, %v1811_v31, %v1815_v8 }
0x1bdb   :  { %2766 = vmatmul.mubr.msk.f32.vlgmr.msra.gmra.mrb[14].mxu0 %vm195_vm4, %v1817_v36 }
0x1bdc   :  { %3028 = vmatpush1.bf16.msra.mxu0 %v3832_v3  ;;  %2157 = vmatprep.mubr.f32.mxu0 %v3464_v0 }
0x1bdd   :  { %3030 = vmatprep.subr.bf16.mxu0 %v3836_v25 }
0x1be0   :  { %3032 = vmatpush1.bf16.msra.mxu0 %v3841_v33 }
0x1be1   :  { %3034 = vmatprep.subr.bf16.mxu0 %v3844_v32 }
0x1be4   :  { %3036 = vmatpush1.bf16.msra.mxu0 %v3846_v43 }
0x1be5   :  { %3038 = vmatprep.subr.bf16.mxu0 %v3850_v54 }
0x1be8   :  { %3040 = vmatpush1.bf16.msra.mxu0 %v3852_v57 }
0x1be9   :  { %3058 = vmatprep.subr.bf16.mxu0 %v3830_v14 }
0x1cae   :  { %v1887_v37 = vpop.f32.mrb[14].mxu0 }
0x1caf   :  { %v1894_v21 = vadd.f32 %v1892_v13, %v1887_v37  ;;  %v1889_v27 = vpop.f32.mrb[15].mxu0 }
0x1cb0   :  { %v1897_v28 = vadd.f32 %v1895_v18, %v1889_v27 }
0x1cb1   :  { %3273 = vtanh.f32 %v1894_v21  ;;  %v2767_v42 = vmul.f32 -1.442695, %v1894_v21 }
0x1cb2   :  { %3275 = vtanh.f32 %v1897_v28  ;;  %v2768_v45 = vmul.f32 -1.442695, %v1897_v28 }
0x1cb3   :  { %3277 = vpow2.f32 %v2767_v42 }
0x1cb4   :  { %3279 = vpow2.f32 %v2768_v45 }
0x1cbb   :  { %v3274_v39 = vpop.eup %3273 }
0x1cbc   :  { %v3276_v40 = vpop.eup %3275  ;;  %1907 = vrot.lane.b32.xlu0 %v3274_v39, %s3465_s3 }
0x1cbd   :  { %1931 = vrot.lane.b32.xlu1 %v3276_v40, %s3465_s3  ;;  %v3278_v48 = vpop.eup %3277 }
0x1cbe   :  { %v3280_v49 = vpop.eup %3279  ;;  %v1901_v50 = vadd.f32 1.0, %v3278_v48 }
0x1cbf   :  { %v1925_v51 = vadd.f32 1.0, %v3280_v49 }
0x1cc0   :  { %3281 = vrcp.f32 %v1901_v50 }
0x1cc1   :  { %3283 = vrcp.f32 %v1925_v51 }
0x1cca   :  { %v3282_v53 = vpop.eup %3281 }
0x1ccb   :  { %v3284_v41 = vpop.eup %3283  ;;  %v1905_v61 = vmul.f32 %v3282_v53, %v1778_v35 }
0x1ccc   :  { %v1929_v56 = vmul.f32 %v3284_v41, %v1802_v20 }
0x1d2e   :  { %v1908_v44 = vpop.permute.xlu0 %1907 }
0x1d2f   :  { %v1910_v58 = vmul.f32 %v3282_v53, %v1908_v44  ;;  %v1932_v59 = vpop.permute.xlu1 %1931 }
0x1d30   :  { %v1934_v60 = vmul.f32 %v3284_v41, %v1932_v59 }
0x1d31   :  { %1912 = vrot.lane.b32.xlu0 %v1910_v58, %s3466_s20  ;;  %v2166_v58 = vrot.slane %v3895_v11, 6 }
0x1d32   :  { %1936 = vrot.lane.b32.xlu1 %v1934_v60, %s3466_s20 }
0x1da3   :  { %v1913_v55 = vpop.permute.xlu0 %1912 }
0x1da4   :  { %v1915_v62 = vadd.f32 %v1913_v55, %v1905_v61  ;;  %v1937_v63 = vpop.permute.xlu1 %1936 }
0x1da5   :  { %v1939_v1 = vadd.f32 %v1937_v63, %v1929_v56 }
0x1da6   :  { %3285 = vtanh.f32 %v1915_v62 }
0x1da7   :  { %3287 = vtanh.f32 %v1939_v1 }
0x1db0   :  { %v3286_v47 = vpop.eup %3285 }
0x1db1   :  { %v3288_v5 = vpop.eup %3287  ;;  %1918 = vrot.lane.b32.xlu0 %v3286_v47, %s3465_s3 }
0x1db2   :  { %1942 = vrot.lane.b32.xlu1 %v3288_v5, %s3465_s3 }
0x1e23   :  { %v1919_v46 = vpop.permute.xlu0 %1918 }
0x1e24   :  { %v1921_v6 = vmul.f32 %v3282_v53, %v1919_v46  ;;  %v1943_v7 = vpop.permute.xlu1 %1942 }
0x1e25   :  { %v1945_v10 = vmul.f32 %v3284_v41, %v1943_v7 }
0x1e26   :  { %1947 = vrot.lane.b32.xlu0 %v1921_v6, %s3466_s20 }
0x1e27   :  { %1951 = vrot.lane.b32.xlu1 %v1945_v10, %s3465_s3 }
0x1e98   :  { %v1948_v12 = vpop.permute.xlu0 %1947 }
0x1e99   :  { %v1952_v2 = vpop.permute.xlu1 %1951 }
0x1e9a   :  { %v1954_v16 = vsel %vm335_vm3, %v1948_v12, %v1952_v2 }
0x1e9b   :  { %2769 = vmatmul.mubr.msk.f32.vlgmr.msra.gmra.mrb[14].mxu1 %vm195_vm4, %v1954_v16 }
0x1e9c   :  { %3044 = vmatpush1.bf16.msra.mxu1 %v3832_v3  ;;  %2293 = vmatprep.mubr.f32.mxu1 %v3464_v0 }
0x1e9d   :  { %3046 = vmatprep.subr.bf16.mxu1 %v3836_v25 }
0x1ea0   :  { %3048 = vmatpush1.bf16.msra.mxu1 %v3841_v33 }
0x1ea1   :  { %3050 = vmatprep.subr.bf16.mxu1 %v3844_v32 }
0x1ea4   :  { %3052 = vmatpush1.bf16.msra.mxu1 %v3846_v43 }
0x1ea5   :  { %3054 = vmatprep.subr.bf16.mxu1 %v3850_v54 }
0x1ea8   :  { %3056 = vmatpush1.bf16.msra.mxu1 %v3852_v57 }
0x1ea9   :  { %3074 = vmatprep.subr.bf16.mxu1 %v3830_v14 }
0x1f6e   :  { %v2024_v19 = vpop.f32.mrb[14].mxu1 }
0x1f6f   :  { %v2031_v34 = vadd.f32 %v2029_v38, %v2024_v19  ;;  %v2026_v35 = vpop.f32.mrb[15].mxu1 }
0x1f70   :  { %v2032_v4 = vadd.f32 %v2026_v35, %v3900_v17 }
0x1f71   :  { %3289 = vtanh.f32 %v2031_v34  ;;  %v2770_v23 = vmul.f32 -1.442695, %v2031_v34 }
0x1f72   :  { %3291 = vtanh.f32 %v2032_v4  ;;  %v2771_v24 = vmul.f32 -1.442695, %v2032_v4 }
0x1f73   :  { %3293 = vpow2.f32 %v2770_v23 }
0x1f74   :  { %3295 = vpow2.f32 %v2771_v24 }
0x1f7b   :  { %v3290_v20 = vpop.eup %3289 }
0x1f7c   :  { %v3292_v22 = vpop.eup %3291  ;;  %2042 = vrot.lane.b32.xlu0 %v3290_v20, %s3465_s3 }
0x1f7d   :  { %2066 = vrot.lane.b32.xlu1 %v3292_v22, %s3465_s3  ;;  %v3294_v14 = vpop.eup %3293 }
0x1f7e   :  { %v3296_v26 = vpop.eup %3295  ;;  %v2036_v9 = vadd.f32 1.0, %v3294_v14 }
0x1f7f   :  { %v2060_v29 = vadd.f32 1.0, %v3296_v26 }
0x1f80   :  { %3297 = vrcp.f32 %v2036_v9 }
0x1f81   :  { %3299 = vrcp.f32 %v2060_v29 }
0x1f8a   :  { %v3298_v30 = vpop.eup %3297 }
0x1f8b   :  { %v3300_v31 = vpop.eup %3299  ;;  %v2040_v37 = vmul.f32 %v3298_v30, %v1915_v62 }
0x1f8c   :  { %v2064_v21 = vmul.f32 %v3300_v31, %v1939_v1 }
0x1fee   :  { %v2043_v17 = vpop.permute.xlu0 %2042 }
0x1fef   :  { %v2045_v8 = vmul.f32 %v3298_v30, %v2043_v17  ;;  %v2067_v36 = vpop.permute.xlu1 %2066 }
0x1ff0   :  { %v2069_v13 = vmul.f32 %v3300_v31, %v2067_v36  ;;  %v2304_v36 = vrot.slane %v3895_v11, 4 }
0x1ff1   :  { %2047 = vrot.lane.b32.xlu0 %v2045_v8, %s3466_s20 }
0x1ff2   :  { %2071 = vrot.lane.b32.xlu1 %v2069_v13, %s3466_s20 }
0x2063   :  { %v2048_v18 = vpop.permute.xlu0 %2047 }
0x2064   :  { %v2050_v27 = vadd.f32 %v2048_v18, %v2040_v37  ;;  %v2072_v28 = vpop.permute.xlu1 %2071 }
0x2065   :  { %v2074_v39 = vadd.f32 %v2072_v28, %v2064_v21 }
0x2066   :  { %3301 = vtanh.f32 %v2050_v27 }
0x2067   :  { %3303 = vtanh.f32 %v2074_v39 }
0x2070   :  { %v3302_v40 = vpop.eup %3301 }
0x2071   :  { %v3304_v42 = vpop.eup %3303  ;;  %2053 = vrot.lane.b32.xlu0 %v3302_v40, %s3465_s3 }
0x2072   :  { %2077 = vrot.lane.b32.xlu1 %v3304_v42, %s3465_s3 }
0x20e3   :  { %v2054_v45 = vpop.permute.xlu0 %2053 }
0x20e4   :  { %v2056_v48 = vmul.f32 %v3298_v30, %v2054_v45  ;;  %v2078_v49 = vpop.permute.xlu1 %2077 }
0x20e5   :  { %v2080_v50 = vmul.f32 %v3300_v31, %v2078_v49  ;;  %v2301_v31 = vrot.slane %v3898_v15, 2 }
0x20e6   :  { %2082 = vrot.lane.b32.xlu0 %v2056_v48, %s3466_s20 }
0x20e7   :  { %2086 = vrot.lane.b32.xlu1 %v2080_v50, %s3465_s3 }
0x2158   :  { %v2083_v51 = vpop.permute.xlu0 %2082 }
0x2159   :  { %v2087_v53 = vpop.permute.xlu1 %2086 }
0x215a   :  { %v2089_v44 = vsel %vm335_vm3, %v2083_v51, %v2087_v53 }
0x215b   :  { %2772 = vmatmul.mubr.msk.f32.vlgmr.msra.gmra.mrb[16].mxu0 %vm195_vm4, %v2089_v44 }
0x215c   :  { %3060 = vmatpush1.bf16.msra.mxu0 %v3832_v3  ;;  %2431 = vmatprep.mubr.f32.mxu0 %v3464_v0 }
0x215d   :  { %3062 = vmatprep.subr.bf16.mxu0 %v3836_v25 }
0x2160   :  { %3064 = vmatpush1.bf16.msra.mxu0 %v3841_v33 }
0x2161   :  { %3066 = vmatprep.subr.bf16.mxu0 %v3844_v32 }
0x2164   :  { %3068 = vmatpush1.bf16.msra.mxu0 %v3846_v43 }
0x2165   :  { %3070 = vmatprep.subr.bf16.mxu0 %v3850_v54 }
0x2168   :  { %3072 = vmatpush1.bf16.msra.mxu0 %v3852_v57 }
0x222e   :  { %v2159_v41 = vpop.f32.mrb[16].mxu0 }
0x222f   :  { %v2164_v59 = vadd.f32 %v2159_v41, %v3898_v15  ;;  %v2161_v60 = vpop.f32.mrb[17].mxu0 }
0x2230   :  { %v2168_v61 = vadd.f32 %v2166_v58, %v2161_v60 }
0x2231   :  { %3305 = vtanh.f32 %v2164_v59  ;;  %v2773_v62 = vmul.f32 -1.442695, %v2164_v59 }
0x2232   :  { %3307 = vtanh.f32 %v2168_v61  ;;  %v2774_v63 = vmul.f32 -1.442695, %v2168_v61 }
0x2233   :  { %3309 = vpow2.f32 %v2773_v62 }
0x2234   :  { %3311 = vpow2.f32 %v2774_v63 }
0x223b   :  { %v3306_v55 = vpop.eup %3305 }
0x223c   :  { %v3308_v56 = vpop.eup %3307  ;;  %2178 = vrot.lane.b32.xlu0 %v3306_v55, %s3465_s3 }
0x223d   :  { %2202 = vrot.lane.b32.xlu1 %v3308_v56, %s3465_s3  ;;  %v3310_v1 = vpop.eup %3309 }
0x223e   :  { %v3312_v47 = vpop.eup %3311  ;;  %v2172_v5 = vadd.f32 1.0, %v3310_v1  ;;  %v2438_v1 = vrot.slane %v3898_v15, 4 }
0x223f   :  { %v2196_v46 = vadd.f32 1.0, %v3312_v47 }
0x2240   :  { %3313 = vrcp.f32 %v2172_v5  ;;  %v2441_v5 = vrot.slane %v3895_v11, 2 }
0x2241   :  { %3315 = vrcp.f32 %v2196_v46 }
0x224a   :  { %v3314_v6 = vpop.eup %3313 }
0x224b   :  { %v3316_v10 = vpop.eup %3315  ;;  %v2176_v38 = vmul.f32 %v3314_v6, %v2050_v27 }
0x224c   :  { %v2200_v34 = vmul.f32 %v3316_v10, %v2074_v39 }
0x22ae   :  { %v2179_v7 = vpop.permute.xlu0 %2178 }
0x22af   :  { %v2181_v12 = vmul.f32 %v3314_v6, %v2179_v7  ;;  %v2203_v2 = vpop.permute.xlu1 %2202 }
0x22b0   :  { %v2205_v16 = vmul.f32 %v3316_v10, %v2203_v2 }
0x22b1   :  { %2183 = vrot.lane.b32.xlu0 %v2181_v12, %s3466_s20 }
0x22b2   :  { %2207 = vrot.lane.b32.xlu1 %v2205_v16, %s3466_s20 }
0x2323   :  { %v2184_v19 = vpop.permute.xlu0 %2183 }
0x2324   :  { %v2186_v35 = vadd.f32 %v2184_v19, %v2176_v38  ;;  %v2208_v4 = vpop.permute.xlu1 %2207 }
0x2325   :  { %v2210_v20 = vadd.f32 %v2208_v4, %v2200_v34 }
0x2326   :  { %3317 = vtanh.f32 %v2186_v35 }
0x2327   :  { %3319 = vtanh.f32 %v2210_v20 }
0x2330   :  { %v3318_v22 = vpop.eup %3317 }
0x2331   :  { %v3320_v23 = vpop.eup %3319  ;;  %2189 = vrot.lane.b32.xlu0 %v3318_v22, %s3465_s3 }
0x2332   :  { %2213 = vrot.lane.b32.xlu1 %v3320_v23, %s3465_s3 }
0x23a3   :  { %v2190_v24 = vpop.permute.xlu0 %2189 }
0x23a4   :  { %v2192_v14 = vmul.f32 %v3314_v6, %v2190_v24  ;;  %v2214_v26 = vpop.permute.xlu1 %2213 }
0x23a5   :  { %v2216_v9 = vmul.f32 %v3316_v10, %v2214_v26 }
0x23a6   :  { %2218 = vrot.lane.b32.xlu0 %v2192_v14, %s3466_s20 }
0x23a7   :  { %2222 = vrot.lane.b32.xlu1 %v2216_v9, %s3465_s3 }
0x2418   :  { %v2219_v29 = vpop.permute.xlu0 %2218 }
0x2419   :  { %v2223_v30 = vpop.permute.xlu1 %2222 }
0x241a   :  { %v2225_v17 = vsel %vm335_vm3, %v2219_v29, %v2223_v30 }
0x241b   :  { %2775 = vmatmul.mubr.msk.f32.vlgmr.msra.gmra.mrb[16].mxu1 %vm195_vm4, %v2225_v17 }
0x241c   :  { %3076 = vmatpush1.bf16.msra.mxu1 %v3832_v3  ;;  %2568 = vmatprep.mubr.f32.mxu1 %v3464_v0 }
0x241d   :  { %3078 = vmatprep.subr.bf16.mxu1 %v3836_v25 }
0x2420   :  { %3080 = vmatpush1.bf16.msra.mxu1 %v3841_v33 }
0x2421   :  { %3082 = vmatprep.subr.bf16.mxu1 %v3844_v32 }
0x2424   :  { %3084 = vmatpush1.bf16.msra.mxu1 %v3846_v43 }
0x2425   :  { %3086 = vmatprep.subr.bf16.mxu1 %v3850_v54 }
0x2428   :  { %3088 = vmatpush1.bf16.msra.mxu1 %v3852_v57 }
0x24ee   :  { %v2295_v8 = vpop.f32.mrb[16].mxu1 }
0x24ef   :  { %v2303_v3 = vadd.f32 %v2301_v31, %v2295_v8  ;;  %v2297_v13 = vpop.f32.mrb[17].mxu1 }
0x24f0   :  { %v2306_v37 = vadd.f32 %v2304_v36, %v2297_v13 }
0x24f1   :  { %3321 = vtanh.f32 %v2303_v3  ;;  %v2776_v32 = vmul.f32 -1.442695, %v2303_v3 }
0x24f2   :  { %3323 = vtanh.f32 %v2306_v37  ;;  %v2777_v43 = vmul.f32 -1.442695, %v2306_v37 }
0x24f3   :  { %3325 = vpow2.f32 %v2776_v32 }
0x24f4   :  { %3327 = vpow2.f32 %v2777_v43  ;;  %v2574_v43 = vrot.slane %v3898_v15, 6 }
0x24fb   :  { %v3322_v25 = vpop.eup %3321 }
0x24fc   :  { %v3324_v33 = vpop.eup %3323  ;;  %2316 = vrot.lane.b32.xlu0 %v3322_v25, %s3465_s3 }
0x24fd   :  { %2340 = vrot.lane.b32.xlu1 %v3324_v33, %s3465_s3  ;;  %v3326_v54 = vpop.eup %3325 }
0x24fe   :  { %v3328_v57 = vpop.eup %3327  ;;  %v2310_v18 = vadd.f32 1.0, %v3326_v54 }
0x24ff   :  { %v2334_v21 = vadd.f32 1.0, %v3328_v57 }
0x2500   :  { %3329 = vrcp.f32 %v2310_v18 }
0x2501   :  { %3331 = vrcp.f32 %v2334_v21 }
0x250a   :  { %v3330_v27 = vpop.eup %3329 }
0x250b   :  { %v3332_v39 = vpop.eup %3331  ;;  %v2314_v48 = vmul.f32 %v3330_v27, %v2186_v35 }
0x250c   :  { %v2338_v50 = vmul.f32 %v3332_v39, %v2210_v20 }
0x256e   :  { %v2317_v28 = vpop.permute.xlu0 %2316 }
0x256f   :  { %v2319_v40 = vmul.f32 %v3330_v27, %v2317_v28  ;;  %v2341_v42 = vpop.permute.xlu1 %2340 }
0x2570   :  { %v2343_v45 = vmul.f32 %v3332_v39, %v2341_v42 }
0x2571   :  { %2321 = vrot.lane.b32.xlu0 %v2319_v40, %s3466_s20 }
0x2572   :  { %2345 = vrot.lane.b32.xlu1 %v2343_v45, %s3466_s20 }
0x25e3   :  { %v2322_v49 = vpop.permute.xlu0 %2321 }
0x25e4   :  { %v2324_v51 = vadd.f32 %v2322_v49, %v2314_v48  ;;  %v2346_v53 = vpop.permute.xlu1 %2345 }
0x25e5   :  { %v2348_v44 = vadd.f32 %v2346_v53, %v2338_v50  ;;  %v2606_v50 = vld [vmem:[%s4092_s7] sm:$0xff]  ;;  %v2608_v53 = vld [vmem:[%s4092_s7 + $0x10] sm:$0xff] }
0x25e6   :  { %3333 = vtanh.f32 %v2324_v51 }
0x25e7   :  { %3335 = vtanh.f32 %v2348_v44 }
0x25f0   :  { %v3334_v41 = vpop.eup %3333 }
0x25f1   :  { %v3336_v58 = vpop.eup %3335  ;;  %2327 = vrot.lane.b32.xlu0 %v3334_v41, %s3465_s3 }
0x25f2   :  { %2351 = vrot.lane.b32.xlu1 %v3336_v58, %s3465_s3  ;;  %v2609_v58 = vld [vmem:[%s4092_s7 + $0x18] sm:$0xff] }
0x2663   :  { %v2328_v59 = vpop.permute.xlu0 %2327 }
0x2664   :  { %v2330_v60 = vmul.f32 %v3330_v27, %v2328_v59  ;;  %v2352_v61 = vpop.permute.xlu1 %2351  ;;  %v3093_v59 = vpack.c.bf16 %v2609_v58, %v2608_v53 }
0x2665   :  { %v2354_v55 = vmul.f32 %v3332_v39, %v2352_v61  ;;  %v2611_v61 = vld [vmem:[%s4092_s7 + $0x28] sm:$0xff] }
0x2666   :  { %2356 = vrot.lane.b32.xlu0 %v2330_v60, %s3466_s20  ;;  %v2610_v60 = vld [vmem:[%s4092_s7 + $0x20] sm:$0xff] }
0x2667   :  { %2360 = vrot.lane.b32.xlu1 %v2354_v55, %s3465_s3  ;;  %v3096_v55 = vpack.c.bf16 %v2611_v61, %v2610_v60 }
0x26d8   :  { %v2357_v56 = vpop.permute.xlu0 %2356 }
0x26d9   :  { %v2361_v62 = vpop.permute.xlu1 %2360 }
0x26da   :  { %v2363_v63 = vsel %vm335_vm3, %v2357_v56, %v2361_v62  ;;  %v2612_v56 = vld [vmem:[%s4092_s7 + $0x30] sm:$0xff]  ;;  %v2613_v62 = vld [vmem:[%s4092_s7 + $0x38] sm:$0xff] }
0x26db   :  { %2778 = vmatmul.mubr.msk.f32.vlgmr.msra.gmra.mrb[18].mxu0 %vm195_vm4, %v2363_v63 }
0x26dc   :  { %2810 = vmatprep.mubr.msk.f32.mxu0 %vm3468_vm5, %v3464_v0 }
0x27ae   :  { %v2433_v47 = vpop.f32.mrb[18].mxu0 }
0x27af   :  { %v2440_v46 = vadd.f32 %v2438_v1, %v2433_v47  ;;  %v2435_v6 = vpop.f32.mrb[19].mxu0  ;;  %v3099_v1 = vpack.c.bf16 %v2613_v62, %v2612_v56 }
0x27b0   :  { %v2443_v7 = vadd.f32 %v2441_v5, %v2435_v6 }
0x27b1   :  { %3337 = vtanh.f32 %v2440_v46  ;;  %v2779_v2 = vmul.f32 -1.442695, %v2440_v46 }
0x27b2   :  { %3339 = vtanh.f32 %v2443_v7  ;;  %v2780_v16 = vmul.f32 -1.442695, %v2443_v7  ;;  %v2783_v7 = vld [vmem:[%s4093_s8] ss:$0 sm:$0xff]  ;;  %s3470_s8 = smov [#allocation9]  }
0x27b3   :  { %3341 = vpow2.f32 %v2779_v2  ;;  %s2724_s14 = sshll.u32 %s3470_s8, 4  ;;  %s2725_s14 = int_to_ptr.vmem [resolvable:$true] %s2724_s14 }
0x27b4   :  { %3343 = vpow2.f32 %v2780_v16  ;;  %s3431_s0 = scalar_lea.vmem %s2725_s14, 32  ;;  %p3436_p11 = scmp.lt.s32.totalorder %s2725_s14, %s2725_s14 }
0x27b5   :  { %p3432_p10 = scmp.ne.s32.totalorder %s2725_s14, %s3431_s0  ;;  %p3437_p12 = scmp.lt.s32.totalorder %s3431_s0, %s3431_s0 }
0x27b7   :  { %p3438_p13 = por %p3437_p12, %p3436_p11 }
0x27b9   :  { %p3439_p0 = pnand %p3438_p13, %p3432_p10 }
0x27bb   :  { %v3338_v10 = vpop.eup %3337 }
0x27bc   :  { %v3340_v12 = vpop.eup %3339  ;;  %2453 = vrot.lane.b32.xlu0 %v3338_v10, %s3465_s3 }
0x27bd   :  { %2477 = vrot.lane.b32.xlu1 %v3340_v12, %s3465_s3  ;;  %v3342_v38 = vpop.eup %3341 }
0x27be   :  { %v3344_v19 = vpop.eup %3343  ;;  %v2447_v34 = vadd.f32 1.0, %v3342_v38 }
0x27bf   :  { %v2471_v35 = vadd.f32 1.0, %v3344_v19 }
0x27c0   :  { %3345 = vrcp.f32 %v2447_v34 }
0x27c1   :  { %3347 = vrcp.f32 %v2471_v35 }
0x27ca   :  { %v3346_v11 = vpop.eup %3345 }
0x27cb   :  { %v3348_v20 = vpop.eup %3347  ;;  %v2451_v14 = vmul.f32 %v3346_v11, %v2324_v51  ;;  %v2607_v51 = vld [vmem:[%s4092_s7 + $0x8] sm:$0xff] }
0x27cc   :  { %v2475_v9 = vmul.f32 %v3348_v20, %v2348_v44  ;;  %v3467_v44 = vmov 0.0|0.0   ;;  %v3090_v41 = vpack.c.bf16 %v2607_v51, %v2606_v50 }
0x27cd   :  { %3089 = vmatprep.subr.bf16.mxu0 %v3467_v44 }
0x27ce   :  { %3091 = vmatpush3.bf16.msra.mxu0 %v3090_v41 }
0x27cf   :  { %3092 = vmatprep.subr.bf16.mxu0 %v3467_v44 }
0x27d2   :  { %3094 = vmatpush3.bf16.msra.mxu0 %v3093_v59 }
0x27d3   :  { %3095 = vmatprep.subr.bf16.mxu0 %v3467_v44 }
0x27d6   :  { %3097 = vmatpush3.bf16.msra.mxu0 %v3096_v55 }
0x27d7   :  { %3098 = vmatprep.subr.bf16.mxu0 %v3467_v44 }
0x27da   :  { %3100 = vmatpush3.bf16.msra.mxu0 %v3099_v1 }
0x282e   :  { %v2454_v4 = vpop.permute.xlu0 %2453 }
0x282f   :  { %v2456_v22 = vmul.f32 %v3346_v11, %v2454_v4  ;;  %v2478_v23 = vpop.permute.xlu1 %2477 }
0x2830   :  { %v2480_v24 = vmul.f32 %v3348_v20, %v2478_v23 }
0x2831   :  { %2458 = vrot.lane.b32.xlu0 %v2456_v22, %s3466_s20 }
0x2832   :  { %2482 = vrot.lane.b32.xlu1 %v2480_v24, %s3466_s20 }
0x28a3   :  { %v2459_v26 = vpop.permute.xlu0 %2458 }
0x28a4   :  { %v2461_v29 = vadd.f32 %v2459_v26, %v2451_v14  ;;  %v2483_v30 = vpop.permute.xlu1 %2482 }
0x28a5   :  { %v2485_v17 = vadd.f32 %v2483_v30, %v2475_v9 }
0x28a6   :  { %3349 = vtanh.f32 %v2461_v29 }
0x28a7   :  { %3351 = vtanh.f32 %v2485_v17 }
0x28b0   :  { %v3350_v31 = vpop.eup %3349 }
0x28b1   :  { %v3352_v8 = vpop.eup %3351  ;;  %2464 = vrot.lane.b32.xlu0 %v3350_v31, %s3465_s3 }
0x28b2   :  { %2488 = vrot.lane.b32.xlu1 %v3352_v8, %s3465_s3 }
0x2923   :  { %v2465_v36 = vpop.permute.xlu0 %2464 }
0x2924   :  { %v2467_v3 = vmul.f32 %v3346_v11, %v2465_v36  ;;  %v2489_v13 = vpop.permute.xlu1 %2488 }
0x2925   :  { %v2491_v37 = vmul.f32 %v3348_v20, %v2489_v13  ;;  %v2703_v20 = vld [vmem:[%s4094_s9] sm:$0x3] }
0x2926   :  { %2493 = vrot.lane.b32.xlu0 %v2467_v3, %s3466_s20 }
0x2927   :  { %2497 = vrot.lane.b32.xlu1 %v2491_v37, %s3465_s3 }
0x2998   :  { %v2494_v25 = vpop.permute.xlu0 %2493 }
0x2999   :  { %v2498_v33 = vpop.permute.xlu1 %2497 }
0x299a   :  { %v2500_v32 = vsel %vm335_vm3, %v2494_v25, %v2498_v33 }
0x299b   :  { %2781 = vmatmul.mubr.msk.f32.vlgmr.msra.gmra.mrb[18].mxu1 %vm195_vm4, %v2500_v32 }
0x2a6e   :  { %v2570_v54 = vpop.f32.mrb[18].mxu1 }
0x2a6f   :  { %v2576_v57 = vadd.f32 %v2574_v43, %v2570_v54  ;;  %v2572_v18 = vpop.f32.mrb[19].mxu1 }
0x2a71   :  { %3353 = vtanh.f32 %v2576_v57  ;;  %v2782_v27 = vmul.f32 -1.442695, %v2576_v57 }
0x2a73   :  { %3355 = vpow2.f32 %v2782_v27 }
0x2a7b   :  { %v3354_v21 = vpop.eup %3353 }
0x2a7c   :  { %2586 = vrot.lane.b32.xlu0 %v3354_v21, %s3465_s3 }
0x2a7d   :  { %v3356_v28 = vpop.eup %3355 }
0x2a7e   :  { %v2580_v39 = vadd.f32 1.0, %v3356_v28 }
0x2a80   :  { %3357 = vrcp.f32 %v2580_v39 }
0x2a8a   :  { %v3358_v40 = vpop.eup %3357 }
0x2a8b   :  { %v2584_v48 = vmul.f32 %v3358_v40, %v2461_v29 }
0x2aee   :  { %v2587_v42 = vpop.permute.xlu0 %2586 }
0x2aef   :  { %v2589_v45 = vmul.f32 %v3358_v40, %v2587_v42 }
0x2af1   :  { %2591 = vrot.lane.b32.xlu1 %v2589_v45, %s3466_s20 }
0x2b63   :  { %v2592_v49 = vpop.permute.xlu1 %2591 }
0x2b64   :  { %v2594_v15 = vadd.f32 %v2592_v49, %v2584_v48 }
0x2b66   :  { %3359 = vtanh.f32 %v2594_v15 }
0x2b70   :  { %v3360_v63 = vpop.eup %3359 }
0x2b71   :  { %2597 = vrot.lane.b32.xlu0 %v3360_v63, %s3465_s3 }
0x2be3   :  { %v2598_v47 = vpop.permute.xlu0 %2597 }
0x2be4   :  { %v2600_v5 = vmul.f32 %v3358_v40, %v2598_v47 }
0x2be6   :  { %2602 = vrot.lane.b32.xlu1 %v2600_v5, %s3466_s20 }
0x2c58   :  { %v2603_v46 = vpop.permute.xlu1 %2602 }
0x2c59   :  { %v2605_v6 = vsel %vm335_vm3, %v2603_v46, %v3911_v52 }
0x2c5a   :  { %2811 = vmatmul.mubr.msk.f32.vlgmr.msra.gmra.mrb[20].mxu0 %vm195_vm4, %v2605_v6 }
0x2d2d   :  { %v2690_v10 = vpop.f32.mrb[20].mxu0 }
0x2d2e   :  { %v2691_v12 = vadd.f32 %v2783_v7, %v2690_v10  ;;  %v2812_v2 = vpop.f32.mrb[21].mxu0 }
0x2d30   :  { %v2695_v16 = vand.u32 2147483647, %v2691_v12  ;;  %v2694_v11 = vmax.f32 %v2691_v12, 0.0 }
0x2d32   :  { %v2696_v38 = vsub.f32 0.0, %v2695_v16 }
0x2d34   :  { %v2697_v0 = vmul.f32 1.442695, %v2696_v38 }
0x2d36   :  { %3361 = vpow2.f32 %v2697_v0 }
0x2d40   :  { %v3362_v19 = vpop.eup %3361 }
0x2d41   :  { %v2699_v34 = vadd.f32 1.0, %v3362_v19 }
0x2d43   :  { %3363 = vlog2.f32 %v2699_v34 }
0x2d4d   :  { %v3364_v35 = vpop.eup %3363 }
0x2d4e   :  { %v2701_v4 = vmul.f32 0.6931472, %v3364_v35 }
0x2d50   :  { %v2702_v52 = vadd.f32 %v2701_v4, %v2694_v11 }
0x2d52   :  { %2705 = vrot.lane.b32.xlu0 %v2702_v52, %s3469_s18  ;;  %v2714_v26 = vsel %vm95_vm0, %v2691_v12, %v2702_v52 }
0x2dc4   :  { %v2706_v22 = vpop.permute.xlu0 %2705 }
0x2dc5   :  { %v2708_v23 = vmul.f32 %v2706_v22, %v2703_v20 }
0x2dc7   :  { %v2709_v24 = vadd.f32 %v2708_v23, %v2691_v12 }
0x2dc9   :  { %2711 = vrot.lane.b32.xlu1 %v2709_v24, %s3466_s20 }
0x2e3b   :  { %v2712_v14 = vpop.permute.xlu1 %2711 }
0x2e3c   :  { %v2715_v9 = vsel %vm335_vm3, %v2714_v26, %v2712_v14 }
0x2e3d   :  { %2717 = vst.msk [vmem:[#allocation9] sm:$0x3] %vm2716_vm6, %v2715_v9 }
0x2e3e   :  { %3442 = shalt.err (!%p3439_p0)
}
0x2e3f   :  { %s3443_s3 = scalar_lea.hbm %s4095_s10, 32 }
0x2e40   :  { %p3444_p1 = scmp.ne.s32.totalorder %s4095_s10, %s3443_s3  ;;  %p3447_p2 = scmp.lt.u32.totalorder %s3443_s3, %s4095_s10 }
0x2e42   :  { %p3449_p3 = pnand %p3447_p2, %p3444_p1 }
0x2e44   :  { %3452 = shalt.err (!%p3449_p3)
}
0x2e45   :  { %2727 = dma.vmem_to_hbm [thread:$0]  %s2725_s14, 32, %s4095_s10, [#allocation5]  }
0x2e46   :  { %3457 = dma.done.wait [#allocation5], 32  }
0x2e47   :  { %3458 = vsyncadd [#allocation5], 4294967264 }
0x2e48   :  { %2731 = vsyncpa [#allocation4], 1 }
0x2e49   :  { %2732 = vsyncpa [#allocation7], 1 }
0x2e4a   :  { %2733 = vsyncpa [#allocation5], 1 }

</bundles_post_ra>
